<compile_context>
chip_gen: v7x
topology: tpu7x:2x2x1
jax: 0.10.0
libtpu: 0.0.40
codegen_flags: <defaults>
</compile_context>

<pallas_src>
import functools
import math

import jax
import jax.numpy as jnp
from jax.experimental import pallas as pl
from jax.experimental.pallas import tpu as pltpu


def _round_up(x, m):
    return ((x + m - 1) // m) * m


# =============================================================================
# Fused GEMM kernel:  out = act( sum_k A_tile @ W_tile + bias ) [+ residual]
#   * A / W fed to the MXU as bf16, accumulation in f32 VMEM scratch.
#   * BatchNorm scale is folded into W by the caller; only the shift (bias) remains.
#   * Post-matmul epilogue stays in f32 (v5e-friendly).
# =============================================================================
def _stable_swish(y):
    # swish = y * sigmoid(y), overflow-free; exp and approx reciprocal ride the EUP slot.
    e = jnp.exp(-jnp.abs(y))
    sig_pos = pl.reciprocal(1.0 + e, approx=True)
    sig = jnp.where(y >= 0, sig_pos, 1.0 - sig_pos)
    return y * sig


def _epilogue(y, act):
    if act == "relu":
        return jnp.maximum(y, 0.0)
    if act == "swish":
        return _stable_swish(y)
    return y


def _gemm_kernel(a_ref, w_ref, b_ref, o_ref, acc_ref, *, act):
    k = pl.program_id(2)

    @pl.when(k == 0)
    def _():
        acc_ref[...] = jnp.zeros_like(acc_ref)

    acc_ref[...] += jnp.dot(a_ref[...], w_ref[...], preferred_element_type=jnp.float32)

    @pl.when(k == pl.num_programs(2) - 1)
    def _():
        o_ref[...] = _epilogue(acc_ref[...] + b_ref[...], act)


def _gemm_res_kernel(a_ref, w_ref, b_ref, res_ref, o_ref, acc_ref, *, act):
    k = pl.program_id(2)

    @pl.when(k == 0)
    def _():
        acc_ref[...] = jnp.zeros_like(acc_ref)

    acc_ref[...] += jnp.dot(a_ref[...], w_ref[...], preferred_element_type=jnp.float32)

    @pl.when(k == pl.num_programs(2) - 1)
    def _():
        o_ref[...] = _epilogue(acc_ref[...] + b_ref[...], act) + res_ref[...]


_K_SINGLE_MAX = 2048   # below this, one K step (the whole-K tile easily fits VMEM)


def fused_matmul(a, w, bias, act="none", residual=None, tm=256, tn=128):
    """act(a @ w + bias) [+ residual];  a:(M,K)  w:(K,N)  bias:(N,)  residual:(M,N)."""
    M, K = a.shape
    N = w.shape[1]

    tm = min(tm, _round_up(M, 8))
    Mp = _round_up(M, tm)
    Np = _round_up(N, tn)          # lane-dense (multiple-of-128) output stores
    if K <= _K_SINGLE_MAX:
        tk = _round_up(K, 8)
        Kp = tk
    else:
        tk = 512
        Kp = _round_up(K, tk)

    a_p = jnp.pad(a.astype(jnp.bfloat16), ((0, Mp - M), (0, Kp - K)))
    w_p = jnp.pad(w.astype(jnp.bfloat16), ((0, Kp - K), (0, Np - N)))
    b_p = jnp.pad(bias.astype(jnp.float32).reshape(1, N), ((0, 0), (0, Np - N)))

    in_specs = [
        pl.BlockSpec((tm, tk), lambda i, j, k: (i, k)),
        pl.BlockSpec((tk, tn), lambda i, j, k: (k, j)),
        pl.BlockSpec((1, tn), lambda i, j, k: (0, j)),
    ]
    args = [a_p, w_p, b_p]
    if residual is None:
        kernel = functools.partial(_gemm_kernel, act=act)
    else:
        r_p = jnp.pad(residual.astype(jnp.float32), ((0, Mp - M), (0, Np - N)))
        in_specs.append(pl.BlockSpec((tm, tn), lambda i, j, k: (i, j)))
        args.append(r_p)
        kernel = functools.partial(_gemm_res_kernel, act=act)

    out = pl.pallas_call(
        kernel,
        grid_spec=pltpu.PrefetchScalarGridSpec(
            num_scalar_prefetch=0,
            grid=(Mp // tm, Np // tn, Kp // tk),
            in_specs=in_specs,
            out_specs=pl.BlockSpec((tm, tn), lambda i, j, k: (i, j)),
            scratch_shapes=[pltpu.VMEM((tm, tn), jnp.float32)],
        ),
        out_shape=jax.ShapeDtypeStruct((Mp, Np), jnp.float32),
        compiler_params=pltpu.CompilerParams(
            dimension_semantics=("parallel", "parallel", "arbitrary"),
            # worst-case tiles (A 256x2048 bf16, W 2048x128 bf16, out/res/acc f32),
            # double buffered, stay under ~8 MiB -> 32 MiB is safe on v5e/v6e/v7x.
            vmem_limit_bytes=32 * 1024 * 1024,
        ),
    )(*args)
    return out[:M, :N]


# =============================================================================
# Conv = im2col (JAX glue) + fused Pallas GEMM with folded BN
# =============================================================================
def _im2col(x_nhwc, kh, kw, stride, pad):
    B, H, W, C = x_nhwc.shape
    xp = jnp.pad(x_nhwc, ((0, 0), (pad, pad), (pad, pad), (0, 0)))
    Ho = (H + 2 * pad - kh) // stride + 1
    Wo = (W + 2 * pad - kw) // stride + 1
    cols = []
    for i in range(kh):
        for j in range(kw):
            cols.append(xp[:, i:i + Ho * stride:stride, j:j + Wo * stride:stride, :])
    patches = jnp.stack(cols, axis=-2)                  # (B,Ho,Wo,kh*kw,C)
    return patches.reshape(B * Ho * Wo, kh * kw * C), (B, Ho, Wo)


def conv_bn_act(x, w, scale, shift, stride, pad, act, residual=None):
    # TODO(synk): fold the kh*kw patch loop into the GEMM K grid axis instead of
    #             materializing im2col in HBM (9x activation traffic for 3x3 convs).
    kh, kw, cin, cout = w.shape
    a, (B, Ho, Wo) = _im2col(x, kh, kw, stride, pad)
    w2 = (w * scale.reshape(1, 1, 1, cout)).reshape(kh * kw * cin, cout)   # fold BN scale
    res = None if residual is None else residual.reshape(B * Ho * Wo, cout)
    y = fused_matmul(a, w2, shift, act=act, residual=res)
    return y.reshape(B, Ho, Wo, cout)


# -----------------------------------------------------------------------------
# Simplified EfficientNet backbone (stride-4, 32-channel output at 1/4 scale)
# TODO(synk): full pretrained EfficientNet MBConv block stack not replicated;
#             stand-in = conv-stem(s2)+BN+swish followed by one stride-2 conv+BN+swish.
# -----------------------------------------------------------------------------
def backbone_forward(img_nhwc, p):
    x = conv_bn_act(img_nhwc, p["stem_w"], p["stem_s"], p["stem_b"], 2, 1, "swish")
    x = conv_bn_act(x, p["red_w"], p["red_s"], p["red_b"], 2, 1, "swish")
    return x  # (B, H/4, W/4, 32)


# -----------------------------------------------------------------------------
# MyBlock:  cbr2(cbr1(x)) + resconn(x)   (residual fused into the second GEMM)
# TODO(synk): DCN deformable offsets have no clean Pallas equivalent; the DCN inside
#             CBR is realized as a standard 3x3 conv.
# -----------------------------------------------------------------------------
def my_block(x, bp):
    t = conv_bn_act(x, bp["w1"], bp["s1"], bp["b1"], 1, 1, "relu")
    res = conv_bn_act(x, bp["wr"], jnp.ones_like(bp["br"]), bp["br"], 1, 0, "none")
    out = conv_bn_act(t, bp["w2"], bp["s2"], bp["b2"], 1, 1, "relu", residual=res)
    return out


# =============================================================================
# ROI-align (1x1 output, sampling_ratio=4, aligned=False) as a Pallas gather kernel.
# Indices / bilinear weights are tiny (R, 64) arrays; the dense (R, B*Hf*Wf) weight
# matrix of the previous version is gone.
# =============================================================================
_SAMPLING_RATIO = 4
_ROI_SAMPLES = 4 * _SAMPLING_RATIO * _SAMPLING_RATIO   # 4 bilinear corners per sample
_DMA_WINDOW = 8


def roi_gather_params(rois, Hf, Wf, spatial_scale, sampling_ratio):
    """Flat row indices (R,S) int32 and bilinear weights (R,S) f32 per ROI."""
    R = rois.shape[0]
    n = sampling_ratio
    batch = rois[:, 0].astype(jnp.int32)
    x1 = rois[:, 1] * spatial_scale
    y1 = rois[:, 2] * spatial_scale
    x2 = rois[:, 3] * spatial_scale
    y2 = rois[:, 4] * spatial_scale
    roi_w = jnp.maximum(x2 - x1, 1.0)
    roi_h = jnp.maximum(y2 - y1, 1.0)
    offs = (jnp.arange(n, dtype=jnp.float32) + 0.5) / n
    yy = y1[:, None, None] + offs[None, :, None] * roi_h[:, None, None]
    xx = x1[:, None, None] + offs[None, None, :] * roi_w[:, None, None]
    yy = jnp.broadcast_to(yy, (R, n, n))
    xx = jnp.broadcast_to(xx, (R, n, n))
    valid = (yy > -1.0) & (yy < Hf) & (xx > -1.0) & (xx < Wf)
    y = jnp.clip(yy, 0.0, None)
    x = jnp.clip(xx, 0.0, None)
    y_low0 = jnp.floor(y).astype(jnp.int32)
    x_low0 = jnp.floor(x).astype(jnp.int32)
    ycond = y_low0 >= Hf - 1
    xcond = x_low0 >= Wf - 1
    y_low = jnp.where(ycond, Hf - 1, y_low0)
    y_high = jnp.where(ycond, Hf - 1, y_low0 + 1)
    x_low = jnp.where(xcond, Wf - 1, x_low0)
    x_high = jnp.where(xcond, Wf - 1, x_low0 + 1)
    y_eff = jnp.where(ycond, jnp.float32(Hf - 1), y)
    x_eff = jnp.where(xcond, jnp.float32(Wf - 1), x)
    ly = y_eff - y_low.astype(jnp.float32)
    lx = x_eff - x_low.astype(jnp.float32)
    hy, hx = 1.0 - ly, 1.0 - lx
    vf = valid.astype(jnp.float32) / float(n * n)
    base = (batch * (Hf * Wf))[:, None, None]
    idx = jnp.stack([base + y_low * Wf + x_low,
                     base + y_low * Wf + x_high,
                     base + y_high * Wf + x_low,
                     base + y_high * Wf + x_high], axis=-1)           # (R,n,n,4)
    wts = jnp.stack([hy * hx, hy * lx, ly * hx, ly * lx], axis=-1) * vf[..., None]
    return (idx.reshape(R, n * n * 4).astype(jnp.int32),
            wts.reshape(R, n * n * 4).astype(jnp.float32))


def _roi_gather_kernel(idx_ref, feat_ref, wts_ref, o_ref, gbuf, sems,
                       *, nsamples, window):
    r = pl.program_id(0)

    def start(s, slot):
        row = idx_ref[r, s]
        pltpu.make_async_copy(feat_ref.at[pl.ds(row, 1)],
                              gbuf.at[pl.ds(s, 1)],
                              sems.at[slot]).start()

    for s0 in range(window):                    # prime a window of row fetches
        start(s0, s0)

    @pl.loop(0, nsamples)
    def _(s):
        slot = s % window
        pltpu.make_async_copy(feat_ref.at[pl.ds(0, 1)],
                              gbuf.at[pl.ds(0, 1)],
                              sems.at[slot]).wait()

        @pl.when(s + window < nsamples)
        def _():
            start(s + window, slot)

    w_row = wts_ref[...].reshape(1, nsamples)                           # (1, S)
    y = jnp.dot(w_row, gbuf[...], preferred_element_type=jnp.float32)   # (1, C) on MXU
    o_ref[...] = y.reshape(o_ref.shape)


def roi_align_gather(feat_flat, idx, wts):
    """feat_flat: (B*Hf*Wf, C) f32;  idx / wts: (R, S)  ->  (R, C)."""
    R, S = idx.shape
    _, C = feat_flat.shape
    window = min(_DMA_WINDOW, S)
    out = pl.pallas_call(
        functools.partial(_roi_gather_kernel, nsamples=S, window=window),
        grid_spec=pltpu.PrefetchScalarGridSpec(
            num_scalar_prefetch=1,                       # row indices -> SMEM
            grid=(R,),
            in_specs=[
                pl.BlockSpec(memory_space=pl.ANY),       # feature map stays in HBM
                pl.BlockSpec((1, 1, S), lambda r, idx_s: (r, 0, 0)),
            ],
            out_specs=pl.BlockSpec((1, 1, C), lambda r, idx_s: (r, 0, 0)),
            scratch_shapes=[
                pltpu.VMEM((S, C), jnp.float32),         # gathered rows
                pltpu.SemaphoreType.DMA((window,)),
            ],
        ),
        out_shape=jax.ShapeDtypeStruct((R, 1, C), jnp.float32),
        compiler_params=pltpu.CompilerParams(
            dimension_semantics=("parallel",),
            vmem_limit_bytes=32 * 1024 * 1024,
        ),
    )(idx, feat_flat, wts.reshape(R, 1, S))
    return out.reshape(R, C)


# =============================================================================
# Net.forward — all fixed-shape work is jitted; the data-dependent `ids != -1`
# filtering happens on concrete outputs, outside the jitted graph.
# =============================================================================
def _net_forward_padded(img, tlbrs, params):
    B = img.shape[0]
    max_objs = tlbrs.shape[1]
    R = B * max_objs
    R_pad = _round_up(R, 8)

    batch_col = jnp.broadcast_to(
        jnp.arange(B, dtype=jnp.float32)[:, None, None], (B, max_objs, 1))
    rois = jnp.concatenate([batch_col, tlbrs.astype(jnp.float32)], axis=-1)
    rois = jnp.pad(rois.reshape(R, 5), ((0, R_pad - R), (0, 0)))

    img_nhwc = jnp.transpose(img, (0, 2, 3, 1)).astype(jnp.float32)
    feat = backbone_forward(img_nhwc, params)          # (B, H/4, W/4, 32)
    feat = my_block(feat, params["block0"])            # (B, H/4, W/4, 64)
    feat = my_block(feat, params["block1"])            # (B, H/4, W/4, 128)

    Bf, Hf, Wf, C = feat.shape
    idx, wts = roi_gather_params(rois, Hf, Wf, 0.25, _SAMPLING_RATIO)
    features = roi_align_gather(feat.reshape(Bf * Hf * Wf, C), idx, wts)   # (R_pad, C)

    logits = fused_matmul(features, params["fc_w"], params["fc_b"], act="none")
    return logits, features


_net_forward_padded_jit = jax.jit(_net_forward_padded)


def net_forward(x_dict, params, class_num):
    del class_num  # implied by params["fc_w"].shape[1]
    img, tlbrs, ids = x_dict["img"], x_dict["tlbrs"], x_dict["ids"]
    B, max_objs = ids.shape
    R = B * max_objs
    logits_p, feats_p = _net_forward_padded_jit(img, tlbrs, params)
    mask = ids.reshape(-1) != -1
    return logits_p[:R][mask], feats_p[:R][mask]


# -----------------------------------------------------------------------------
# Deterministic parameter init (synthetic; shapes follow the module __init__).
# BatchNorm is represented as (scale, shift); scale is folded into W at call time.
# -----------------------------------------------------------------------------
def init_params(key, class_num):
    ks = list(jax.random.split(key, 32))
    it = iter(ks)

    def conv_w(kh, kw, cin, cout):
        return jax.random.normal(next(it), (kh, kw, cin, cout), jnp.float32) / math.sqrt(kh * kw * cin)

    def bn(cout):
        s = 1.0 + 0.1 * jax.random.normal(next(it), (cout,), jnp.float32)
        b = 0.1 * jax.random.normal(next(it), (cout,), jnp.float32)
        return s, b

    p = {}
    p["stem_w"] = conv_w(3, 3, 3, 32)
    p["stem_s"], p["stem_b"] = bn(32)
    p["red_w"] = conv_w(3, 3, 32, 32)
    p["red_s"], p["red_b"] = bn(32)

    def block(cin, cout):
        bp = {}
        bp["w1"] = conv_w(3, 3, cin, cout)
        bp["s1"], bp["b1"] = bn(cout)
        bp["w2"] = conv_w(3, 3, cout, cout)
        bp["s2"], bp["b2"] = bn(cout)
        bp["wr"] = conv_w(1, 1, cin, cout)
        bp["br"] = 0.1 * jax.random.normal(next(it), (cout,), jnp.float32)
        return bp

    p["block0"] = block(32, 64)
    p["block1"] = block(64, 128)
    p["fc_w"] = jax.random.normal(next(it), (128, class_num), jnp.float32) / math.sqrt(128.0)
    p["fc_b"] = 0.1 * jax.random.normal(next(it), (class_num,), jnp.float32)
    return p


if __name__ == "__main__":
    class_num = 7
    B, H, W, max_objs = 2, 32, 32, 4

    root = jax.random.PRNGKey(0)
    k_params, k_img, k_box = jax.random.split(root, 3)
    params = init_params(k_params, class_num)

    img = jax.random.normal(k_img, (B, 3, H, W), jnp.float32)
    pts = jax.random.uniform(k_box, (B, max_objs, 4), minval=2.0, maxval=30.0)
    x1 = jnp.minimum(pts[..., 0], pts[..., 2])
    x2 = jnp.maximum(pts[..., 0], pts[..., 2])
    y1 = jnp.minimum(pts[..., 1], pts[..., 3])
    y2 = jnp.maximum(pts[..., 1], pts[..., 3])
    tlbrs = jnp.stack([x1, y1, x2, y2], axis=-1)
    ids = jnp.array([[0, 1, -1, 2], [3, -1, 4, 5]], jnp.int32)

    logits, features = net_forward({"img": img, "tlbrs": tlbrs, "ids": ids},
                                   params, class_num)
    jax.block_until_ready((logits, features))

    n_valid = int((ids.reshape(-1) != -1).sum())
    assert logits.shape == (n_valid, class_num), logits.shape
    assert features.shape == (n_valid, 128), features.shape
    assert bool(jnp.all(jnp.isfinite(logits))) and bool(jnp.all(jnp.isfinite(features)))
    print("KERNEL_OK")
</pallas_src>

<mosaic_0001>
module attributes {stable_mosaic.version = 11 : i64} {
  func.func @_gemm_kernel(%arg0: i32, %arg1: i32, %arg2: i32, %arg3: memref<256x32xbf16, #tpu.memory_space<vmem>>, %arg4: memref<32x128xbf16, #tpu.memory_space<vmem>>, %arg5: memref<1x128xf32, #tpu.memory_space<vmem>>, %arg6: memref<256x128xf32, #tpu.memory_space<vmem>>, %arg7: memref<256x128xf32, #tpu.memory_space<vmem>>) attributes {dimension_semantics = [#tpu.dimension_semantics<parallel>, #tpu.dimension_semantics<parallel>, #tpu.dimension_semantics<arbitrary>], iteration_bounds = array<i64: 2, 1, 1>, scalar_prefetch = 0 : i64, scratch_operands = 1 : i64, tpu.core_type = #tpu.core_type<tc>, window_params = [{transform_indices = @transform_0, window_bounds = array<i64: 256, 32>}, {transform_indices = @transform_1, window_bounds = array<i64: 32, 128>}, {transform_indices = @transform_2, window_bounds = array<i64: 1, 128>}, {transform_indices = @transform_3, window_bounds = array<i64: 256, 128>}]} {
    %c0_i32 = arith.constant 0 : i32
    %0 = arith.cmpi eq, %arg2, %c0_i32 : i32
    %1 = arith.extui %0 : i1 to i32
    %c0_i32_0 = arith.constant 0 : i32
    %2 = arith.cmpi ne, %1, %c0_i32_0 : i32
    scf.if %2 {
      %cst_10 = arith.constant 0.000000e+00 : f32
      %12 = vector.broadcast %cst_10 : f32 to vector<256x128xf32>
      %c0_11 = arith.constant 0 : index
      %c0_12 = arith.constant 0 : index
      %13 = vector.load %arg7[%c0_11, %c0_12] : memref<256x128xf32, #tpu.memory_space<vmem>>, vector<256x128xf32>
      tpu.vector_store %arg7[%c0_11, %c0_12], %12 {strides = array<i32>} : memref<256x128xf32, #tpu.memory_space<vmem>>, vector<256x128xf32>,
    } else {
    }
    %c0 = arith.constant 0 : index
    %c0_1 = arith.constant 0 : index
    %3 = vector.load %arg7[%c0, %c0_1] : memref<256x128xf32, #tpu.memory_space<vmem>>, vector<256x128xf32>
    %c0_2 = arith.constant 0 : index
    %c0_3 = arith.constant 0 : index
    %4 = vector.load %arg3[%c0_2, %c0_3] : memref<256x32xbf16, #tpu.memory_space<vmem>>, vector<256x32xbf16>
    %c0_4 = arith.constant 0 : index
    %c0_5 = arith.constant 0 : index
    %5 = vector.load %arg4[%c0_4, %c0_5] : memref<32x128xbf16, #tpu.memory_space<vmem>>, vector<32x128xbf16>
    %cst = arith.constant dense<0.000000e+00> : vector<256x128xf32>
    %6 = tpu.matmul %4, %5, %cst {dimension_numbers = #tpu.dot_dimension_numbers<[1], [0], [0], [1], [0, 0, 1, 1], [], []>} : vector<256x32xbf16>, vector<32x128xbf16>, vector<256x128xf32> -> vector<256x128xf32>
    %7 = arith.addf %3, %6 : vector<256x128xf32>
    %c0_6 = arith.constant 0 : index
    %c0_7 = arith.constant 0 : index
    %8 = vector.load %arg7[%c0_6, %c0_7] : memref<256x128xf32, #tpu.memory_space<vmem>>, vector<256x128xf32>
    tpu.vector_store %arg7[%c0_6, %c0_7], %7 {strides = array<i32>} : memref<256x128xf32, #tpu.memory_space<vmem>>, vector<256x128xf32>,
    %c0_i32_8 = arith.constant 0 : i32
    %9 = arith.cmpi eq, %arg2, %c0_i32_8 : i32
    %10 = arith.extui %9 : i1 to i32
    %c0_i32_9 = arith.constant 0 : i32
    %11 = arith.cmpi ne, %10, %c0_i32_9 : i32
    scf.if %11 {
      %c0_10 = arith.constant 0 : index
      %c0_11 = arith.constant 0 : index
      %12 = vector.load %arg7[%c0_10, %c0_11] : memref<256x128xf32, #tpu.memory_space<vmem>>, vector<256x128xf32>
      %c0_12 = arith.constant 0 : index
      %c0_13 = arith.constant 0 : index
      %13 = vector.load %arg5[%c0_12, %c0_13] : memref<1x128xf32, #tpu.memory_space<vmem>>, vector<1x128xf32>
      %14 = vector.broadcast %13 : vector<1x128xf32> to vector<256x128xf32>
      %15 = arith.addf %12, %14 : vector<256x128xf32>
      %16 = math.absf %15 : vector<256x128xf32>
      %cst_14 = arith.constant 0.000000e+00 : f32
      %17 = vector.broadcast %cst_14 : f32 to vector<256x128xf32>
      %18 = arith.subf %17, %16 : vector<256x128xf32>
      %19 = math.exp %18 : vector<256x128xf32>
      %cst_15 = arith.constant 1.000000e+00 : f32
      %20 = vector.broadcast %cst_15 : f32 to vector<256x128xf32>
      %21 = arith.addf %20, %19 : vector<256x128xf32>
      %22 = tpu.reciprocal %21 {approx = true} : vector<256x128xf32> -> vector<256x128xf32>
      %cst_16 = arith.constant 0.000000e+00 : f32
      %23 = vector.broadcast %cst_16 : f32 to vector<256x128xf32>
      %24 = arith.cmpf oge, %15, %23 : vector<256x128xf32>
      %cst_17 = arith.constant 1.000000e+00 : f32
      %25 = vector.broadcast %cst_17 : f32 to vector<256x128xf32>
      %26 = arith.subf %25, %22 : vector<256x128xf32>
      %27 = arith.select %24, %22, %26 : vector<256x128xi1>, vector<256x128xf32>
      %28 = arith.mulf %15, %27 : vector<256x128xf32>
      %c0_18 = arith.constant 0 : index
      %c0_19 = arith.constant 0 : index
      %29 = vector.load %arg6[%c0_18, %c0_19] : memref<256x128xf32, #tpu.memory_space<vmem>>, vector<256x128xf32>
      tpu.vector_store %arg6[%c0_18, %c0_19], %28 {strides = array<i32>} : memref<256x128xf32, #tpu.memory_space<vmem>>, vector<256x128xf32>,
    } else {
    }
    return
  }
  func.func @transform_0(%arg0: i32, %arg1: i32, %arg2: i32) -> (i32, i32) {
    %c0_i32 = arith.constant 0 : i32
    return %arg0, %arg2 : i32, i32
  }
  func.func @transform_1(%arg0: i32, %arg1: i32, %arg2: i32) -> (i32, i32) {
    %c0_i32 = arith.constant 0 : i32
    return %arg2, %arg1 : i32, i32
  }
  func.func @transform_2(%arg0: i32, %arg1: i32, %arg2: i32) -> (i32, i32) {
    %c0_i32 = arith.constant 0 : i32
    %c0_i32_0 = arith.constant 0 : i32
    return %c0_i32, %arg1 : i32, i32
  }
  func.func @transform_3(%arg0: i32, %arg1: i32, %arg2: i32) -> (i32, i32) {
    %c0_i32 = arith.constant 0 : i32
    return %arg0, %arg1 : i32, i32
  }
}

module attributes {stable_mosaic.version = 11 : i64} {
  func.func @_gemm_kernel(%arg0: i32, %arg1: i32, %arg2: i32, %arg3: memref<128x288xbf16, #tpu.memory_space<vmem>>, %arg4: memref<288x128xbf16, #tpu.memory_space<vmem>>, %arg5: memref<1x128xf32, #tpu.memory_space<vmem>>, %arg6: memref<128x128xf32, #tpu.memory_space<vmem>>, %arg7: memref<128x128xf32, #tpu.memory_space<vmem>>) attributes {dimension_semantics = [#tpu.dimension_semantics<parallel>, #tpu.dimension_semantics<parallel>, #tpu.dimension_semantics<arbitrary>], iteration_bounds = array<i64: 1, 1, 1>, scalar_prefetch = 0 : i64, scratch_operands = 1 : i64, tpu.core_type = #tpu.core_type<tc>, window_params = [{transform_indices = @transform_0, window_bounds = array<i64: 128, 288>}, {transform_indices = @transform_1, window_bounds = array<i64: 288, 128>}, {transform_indices = @transform_2, window_bounds = array<i64: 1, 128>}, {transform_indices = @transform_3, window_bounds = array<i64: 128, 128>}]} {
    %c0_i32 = arith.constant 0 : i32
    %0 = arith.cmpi eq, %arg2, %c0_i32 : i32
    %1 = arith.extui %0 : i1 to i32
    %c0_i32_0 = arith.constant 0 : i32
    %2 = arith.cmpi ne, %1, %c0_i32_0 : i32
    scf.if %2 {
      %cst_10 = arith.constant 0.000000e+00 : f32
      %12 = vector.broadcast %cst_10 : f32 to vector<128x128xf32>
      %c0_11 = arith.constant 0 : index
      %c0_12 = arith.constant 0 : index
      %13 = vector.load %arg7[%c0_11, %c0_12] : memref<128x128xf32, #tpu.memory_space<vmem>>, vector<128x128xf32>
      tpu.vector_store %arg7[%c0_11, %c0_12], %12 {strides = array<i32>} : memref<128x128xf32, #tpu.memory_space<vmem>>, vector<128x128xf32>,
    } else {
    }
    %c0 = arith.constant 0 : index
    %c0_1 = arith.constant 0 : index
    %3 = vector.load %arg7[%c0, %c0_1] : memref<128x128xf32, #tpu.memory_space<vmem>>, vector<128x128xf32>
    %c0_2 = arith.constant 0 : index
    %c0_3 = arith.constant 0 : index
    %4 = vector.load %arg3[%c0_2, %c0_3] : memref<128x288xbf16, #tpu.memory_space<vmem>>, vector<128x288xbf16>
    %c0_4 = arith.constant 0 : index
    %c0_5 = arith.constant 0 : index
    %5 = vector.load %arg4[%c0_4, %c0_5] : memref<288x128xbf16, #tpu.memory_space<vmem>>, vector<288x128xbf16>
    %cst = arith.constant dense<0.000000e+00> : vector<128x128xf32>
    %6 = tpu.matmul %4, %5, %cst {dimension_numbers = #tpu.dot_dimension_numbers<[1], [0], [0], [1], [0, 0, 1, 1], [], []>} : vector<128x288xbf16>, vector<288x128xbf16>, vector<128x128xf32> -> vector<128x128xf32>
    %7 = arith.addf %3, %6 : vector<128x128xf32>
    %c0_6 = arith.constant 0 : index
    %c0_7 = arith.constant 0 : index
    %8 = vector.load %arg7[%c0_6, %c0_7] : memref<128x128xf32, #tpu.memory_space<vmem>>, vector<128x128xf32>
    tpu.vector_store %arg7[%c0_6, %c0_7], %7 {strides = array<i32>} : memref<128x128xf32, #tpu.memory_space<vmem>>, vector<128x128xf32>,
    %c0_i32_8 = arith.constant 0 : i32
    %9 = arith.cmpi eq, %arg2, %c0_i32_8 : i32
    %10 = arith.extui %9 : i1 to i32
    %c0_i32_9 = arith.constant 0 : i32
    %11 = arith.cmpi ne, %10, %c0_i32_9 : i32
    scf.if %11 {
      %c0_10 = arith.constant 0 : index
      %c0_11 = arith.constant 0 : index
      %12 = vector.load %arg7[%c0_10, %c0_11] : memref<128x128xf32, #tpu.memory_space<vmem>>, vector<128x128xf32>
      %c0_12 = arith.constant 0 : index
      %c0_13 = arith.constant 0 : index
      %13 = vector.load %arg5[%c0_12, %c0_13] : memref<1x128xf32, #tpu.memory_space<vmem>>, vector<1x128xf32>
      %14 = vector.broadcast %13 : vector<1x128xf32> to vector<128x128xf32>
      %15 = arith.addf %12, %14 : vector<128x128xf32>
      %16 = math.absf %15 : vector<128x128xf32>
      %cst_14 = arith.constant 0.000000e+00 : f32
      %17 = vector.broadcast %cst_14 : f32 to vector<128x128xf32>
      %18 = arith.subf %17, %16 : vector<128x128xf32>
      %19 = math.exp %18 : vector<128x128xf32>
      %cst_15 = arith.constant 1.000000e+00 : f32
      %20 = vector.broadcast %cst_15 : f32 to vector<128x128xf32>
      %21 = arith.addf %20, %19 : vector<128x128xf32>
      %22 = tpu.reciprocal %21 {approx = true} : vector<128x128xf32> -> vector<128x128xf32>
      %cst_16 = arith.constant 0.000000e+00 : f32
      %23 = vector.broadcast %cst_16 : f32 to vector<128x128xf32>
      %24 = arith.cmpf oge, %15, %23 : vector<128x128xf32>
      %cst_17 = arith.constant 1.000000e+00 : f32
      %25 = vector.broadcast %cst_17 : f32 to vector<128x128xf32>
      %26 = arith.subf %25, %22 : vector<128x128xf32>
      %27 = arith.select %24, %22, %26 : vector<128x128xi1>, vector<128x128xf32>
      %28 = arith.mulf %15, %27 : vector<128x128xf32>
      %c0_18 = arith.constant 0 : index
      %c0_19 = arith.constant 0 : index
      %29 = vector.load %arg6[%c0_18, %c0_19] : memref<128x128xf32, #tpu.memory_space<vmem>>, vector<128x128xf32>
      tpu.vector_store %arg6[%c0_18, %c0_19], %28 {strides = array<i32>} : memref<128x128xf32, #tpu.memory_space<vmem>>, vector<128x128xf32>,
    } else {
    }
    return
  }
  func.func @transform_0(%arg0: i32, %arg1: i32, %arg2: i32) -> (i32, i32) {
    %c0_i32 = arith.constant 0 : i32
    return %arg0, %arg2 : i32, i32
  }
  func.func @transform_1(%arg0: i32, %arg1: i32, %arg2: i32) -> (i32, i32) {
    %c0_i32 = arith.constant 0 : i32
    return %arg2, %arg1 : i32, i32
  }
  func.func @transform_2(%arg0: i32, %arg1: i32, %arg2: i32) -> (i32, i32) {
    %c0_i32 = arith.constant 0 : i32
    %c0_i32_0 = arith.constant 0 : i32
    return %c0_i32, %arg1 : i32, i32
  }
  func.func @transform_3(%arg0: i32, %arg1: i32, %arg2: i32) -> (i32, i32) {
    %c0_i32 = arith.constant 0 : i32
    return %arg0, %arg1 : i32, i32
  }
}

module attributes {stable_mosaic.version = 11 : i64} {
  func.func @_gemm_kernel(%arg0: i32, %arg1: i32, %arg2: i32, %arg3: memref<128x288xbf16, #tpu.memory_space<vmem>>, %arg4: memref<288x128xbf16, #tpu.memory_space<vmem>>, %arg5: memref<1x128xf32, #tpu.memory_space<vmem>>, %arg6: memref<128x128xf32, #tpu.memory_space<vmem>>, %arg7: memref<128x128xf32, #tpu.memory_space<vmem>>) attributes {dimension_semantics = [#tpu.dimension_semantics<parallel>, #tpu.dimension_semantics<parallel>, #tpu.dimension_semantics<arbitrary>], iteration_bounds = array<i64: 1, 1, 1>, scalar_prefetch = 0 : i64, scratch_operands = 1 : i64, tpu.core_type = #tpu.core_type<tc>, window_params = [{transform_indices = @transform_0, window_bounds = array<i64: 128, 288>}, {transform_indices = @transform_1, window_bounds = array<i64: 288, 128>}, {transform_indices = @transform_2, window_bounds = array<i64: 1, 128>}, {transform_indices = @transform_3, window_bounds = array<i64: 128, 128>}]} {
    %c0_i32 = arith.constant 0 : i32
    %0 = arith.cmpi eq, %arg2, %c0_i32 : i32
    %1 = arith.extui %0 : i1 to i32
    %c0_i32_0 = arith.constant 0 : i32
    %2 = arith.cmpi ne, %1, %c0_i32_0 : i32
    scf.if %2 {
      %cst_10 = arith.constant 0.000000e+00 : f32
      %12 = vector.broadcast %cst_10 : f32 to vector<128x128xf32>
      %c0_11 = arith.constant 0 : index
      %c0_12 = arith.constant 0 : index
      %13 = vector.load %arg7[%c0_11, %c0_12] : memref<128x128xf32, #tpu.memory_space<vmem>>, vector<128x128xf32>
      tpu.vector_store %arg7[%c0_11, %c0_12], %12 {strides = array<i32>} : memref<128x128xf32, #tpu.memory_space<vmem>>, vector<128x128xf32>,
    } else {
    }
    %c0 = arith.constant 0 : index
    %c0_1 = arith.constant 0 : index
    %3 = vector.load %arg7[%c0, %c0_1] : memref<128x128xf32, #tpu.memory_space<vmem>>, vector<128x128xf32>
    %c0_2 = arith.constant 0 : index
    %c0_3 = arith.constant 0 : index
    %4 = vector.load %arg3[%c0_2, %c0_3] : memref<128x288xbf16, #tpu.memory_space<vmem>>, vector<128x288xbf16>
    %c0_4 = arith.constant 0 : index
    %c0_5 = arith.constant 0 : index
    %5 = vector.load %arg4[%c0_4, %c0_5] : memref<288x128xbf16, #tpu.memory_space<vmem>>, vector<288x128xbf16>
    %cst = arith.constant dense<0.000000e+00> : vector<128x128xf32>
    %6 = tpu.matmul %4, %5, %cst {dimension_numbers = #tpu.dot_dimension_numbers<[1], [0], [0], [1], [0, 0, 1, 1], [], []>} : vector<128x288xbf16>, vector<288x128xbf16>, vector<128x128xf32> -> vector<128x128xf32>
    %7 = arith.addf %3, %6 : vector<128x128xf32>
    %c0_6 = arith.constant 0 : index
    %c0_7 = arith.constant 0 : index
    %8 = vector.load %arg7[%c0_6, %c0_7] : memref<128x128xf32, #tpu.memory_space<vmem>>, vector<128x128xf32>
    tpu.vector_store %arg7[%c0_6, %c0_7], %7 {strides = array<i32>} : memref<128x128xf32, #tpu.memory_space<vmem>>, vector<128x128xf32>,
    %c0_i32_8 = arith.constant 0 : i32
    %9 = arith.cmpi eq, %arg2, %c0_i32_8 : i32
    %10 = arith.extui %9 : i1 to i32
    %c0_i32_9 = arith.constant 0 : i32
    %11 = arith.cmpi ne, %10, %c0_i32_9 : i32
    scf.if %11 {
      %c0_10 = arith.constant 0 : index
      %c0_11 = arith.constant 0 : index
      %12 = vector.load %arg7[%c0_10, %c0_11] : memref<128x128xf32, #tpu.memory_space<vmem>>, vector<128x128xf32>
      %c0_12 = arith.constant 0 : index
      %c0_13 = arith.constant 0 : index
      %13 = vector.load %arg5[%c0_12, %c0_13] : memref<1x128xf32, #tpu.memory_space<vmem>>, vector<1x128xf32>
      %14 = vector.broadcast %13 : vector<1x128xf32> to vector<128x128xf32>
      %15 = arith.addf %12, %14 : vector<128x128xf32>
      %cst_14 = arith.constant 0.000000e+00 : f32
      %16 = vector.broadcast %cst_14 : f32 to vector<128x128xf32>
      %17 = arith.maximumf %15, %16 : vector<128x128xf32>
      %c0_15 = arith.constant 0 : index
      %c0_16 = arith.constant 0 : index
      %18 = vector.load %arg6[%c0_15, %c0_16] : memref<128x128xf32, #tpu.memory_space<vmem>>, vector<128x128xf32>
      tpu.vector_store %arg6[%c0_15, %c0_16], %17 {strides = array<i32>} : memref<128x128xf32, #tpu.memory_space<vmem>>, vector<128x128xf32>,
    } else {
    }
    return
  }
  func.func @transform_0(%arg0: i32, %arg1: i32, %arg2: i32) -> (i32, i32) {
    %c0_i32 = arith.constant 0 : i32
    return %arg0, %arg2 : i32, i32
  }
  func.func @transform_1(%arg0: i32, %arg1: i32, %arg2: i32) -> (i32, i32) {
    %c0_i32 = arith.constant 0 : i32
    return %arg2, %arg1 : i32, i32
  }
  func.func @transform_2(%arg0: i32, %arg1: i32, %arg2: i32) -> (i32, i32) {
    %c0_i32 = arith.constant 0 : i32
    %c0_i32_0 = arith.constant 0 : i32
    return %c0_i32, %arg1 : i32, i32
  }
  func.func @transform_3(%arg0: i32, %arg1: i32, %arg2: i32) -> (i32, i32) {
    %c0_i32 = arith.constant 0 : i32
    return %arg0, %arg1 : i32, i32
  }
}

module attributes {stable_mosaic.version = 11 : i64} {
  func.func @_gemm_kernel(%arg0: i32, %arg1: i32, %arg2: i32, %arg3: memref<128x32xbf16, #tpu.memory_space<vmem>>, %arg4: memref<32x128xbf16, #tpu.memory_space<vmem>>, %arg5: memref<1x128xf32, #tpu.memory_space<vmem>>, %arg6: memref<128x128xf32, #tpu.memory_space<vmem>>, %arg7: memref<128x128xf32, #tpu.memory_space<vmem>>) attributes {dimension_semantics = [#tpu.dimension_semantics<parallel>, #tpu.dimension_semantics<parallel>, #tpu.dimension_semantics<arbitrary>], iteration_bounds = array<i64: 1, 1, 1>, scalar_prefetch = 0 : i64, scratch_operands = 1 : i64, tpu.core_type = #tpu.core_type<tc>, window_params = [{transform_indices = @transform_0, window_bounds = array<i64: 128, 32>}, {transform_indices = @transform_1, window_bounds = array<i64: 32, 128>}, {transform_indices = @transform_2, window_bounds = array<i64: 1, 128>}, {transform_indices = @transform_3, window_bounds = array<i64: 128, 128>}]} {
    %c0_i32 = arith.constant 0 : i32
    %0 = arith.cmpi eq, %arg2, %c0_i32 : i32
    %1 = arith.extui %0 : i1 to i32
    %c0_i32_0 = arith.constant 0 : i32
    %2 = arith.cmpi ne, %1, %c0_i32_0 : i32
    scf.if %2 {
      %cst_10 = arith.constant 0.000000e+00 : f32
      %12 = vector.broadcast %cst_10 : f32 to vector<128x128xf32>
      %c0_11 = arith.constant 0 : index
      %c0_12 = arith.constant 0 : index
      %13 = vector.load %arg7[%c0_11, %c0_12] : memref<128x128xf32, #tpu.memory_space<vmem>>, vector<128x128xf32>
      tpu.vector_store %arg7[%c0_11, %c0_12], %12 {strides = array<i32>} : memref<128x128xf32, #tpu.memory_space<vmem>>, vector<128x128xf32>,
    } else {
    }
    %c0 = arith.constant 0 : index
    %c0_1 = arith.constant 0 : index
    %3 = vector.load %arg7[%c0, %c0_1] : memref<128x128xf32, #tpu.memory_space<vmem>>, vector<128x128xf32>
    %c0_2 = arith.constant 0 : index
    %c0_3 = arith.constant 0 : index
    %4 = vector.load %arg3[%c0_2, %c0_3] : memref<128x32xbf16, #tpu.memory_space<vmem>>, vector<128x32xbf16>
    %c0_4 = arith.constant 0 : index
    %c0_5 = arith.constant 0 : index
    %5 = vector.load %arg4[%c0_4, %c0_5] : memref<32x128xbf16, #tpu.memory_space<vmem>>, vector<32x128xbf16>
    %cst = arith.constant dense<0.000000e+00> : vector<128x128xf32>
    %6 = tpu.matmul %4, %5, %cst {dimension_numbers = #tpu.dot_dimension_numbers<[1], [0], [0], [1], [0, 0, 1, 1], [], []>} : vector<128x32xbf16>, vector<32x128xbf16>, vector<128x128xf32> -> vector<128x128xf32>
    %7 = arith.addf %3, %6 : vector<128x128xf32>
    %c0_6 = arith.constant 0 : index
    %c0_7 = arith.constant 0 : index
    %8 = vector.load %arg7[%c0_6, %c0_7] : memref<128x128xf32, #tpu.memory_space<vmem>>, vector<128x128xf32>
    tpu.vector_store %arg7[%c0_6, %c0_7], %7 {strides = array<i32>} : memref<128x128xf32, #tpu.memory_space<vmem>>, vector<128x128xf32>,
    %c0_i32_8 = arith.constant 0 : i32
    %9 = arith.cmpi eq, %arg2, %c0_i32_8 : i32
    %10 = arith.extui %9 : i1 to i32
    %c0_i32_9 = arith.constant 0 : i32
    %11 = arith.cmpi ne, %10, %c0_i32_9 : i32
    scf.if %11 {
      %c0_10 = arith.constant 0 : index
      %c0_11 = arith.constant 0 : index
      %12 = vector.load %arg7[%c0_10, %c0_11] : memref<128x128xf32, #tpu.memory_space<vmem>>, vector<128x128xf32>
      %c0_12 = arith.constant 0 : index
      %c0_13 = arith.constant 0 : index
      %13 = vector.load %arg5[%c0_12, %c0_13] : memref<1x128xf32, #tpu.memory_space<vmem>>, vector<1x128xf32>
      %14 = vector.broadcast %13 : vector<1x128xf32> to vector<128x128xf32>
      %15 = arith.addf %12, %14 : vector<128x128xf32>
      %c0_14 = arith.constant 0 : index
      %c0_15 = arith.constant 0 : index
      %16 = vector.load %arg6[%c0_14, %c0_15] : memref<128x128xf32, #tpu.memory_space<vmem>>, vector<128x128xf32>
      tpu.vector_store %arg6[%c0_14, %c0_15], %15 {strides = array<i32>} : memref<128x128xf32, #tpu.memory_space<vmem>>, vector<128x128xf32>,
    } else {
    }
    return
  }
  func.func @transform_0(%arg0: i32, %arg1: i32, %arg2: i32) -> (i32, i32) {
    %c0_i32 = arith.constant 0 : i32
    return %arg0, %arg2 : i32, i32
  }
  func.func @transform_1(%arg0: i32, %arg1: i32, %arg2: i32) -> (i32, i32) {
    %c0_i32 = arith.constant 0 : i32
    return %arg2, %arg1 : i32, i32
  }
  func.func @transform_2(%arg0: i32, %arg1: i32, %arg2: i32) -> (i32, i32) {
    %c0_i32 = arith.constant 0 : i32
    %c0_i32_0 = arith.constant 0 : i32
    return %c0_i32, %arg1 : i32, i32
  }
  func.func @transform_3(%arg0: i32, %arg1: i32, %arg2: i32) -> (i32, i32) {
    %c0_i32 = arith.constant 0 : i32
    return %arg0, %arg1 : i32, i32
  }
}

module attributes {stable_mosaic.version = 11 : i64} {
  func.func @_gemm_res_kernel(%arg0: i32, %arg1: i32, %arg2: i32, %arg3: memref<128x576xbf16, #tpu.memory_space<vmem>>, %arg4: memref<576x128xbf16, #tpu.memory_space<vmem>>, %arg5: memref<1x128xf32, #tpu.memory_space<vmem>>, %arg6: memref<128x128xf32, #tpu.memory_space<vmem>>, %arg7: memref<128x128xf32, #tpu.memory_space<vmem>>, %arg8: memref<128x128xf32, #tpu.memory_space<vmem>>) attributes {dimension_semantics = [#tpu.dimension_semantics<parallel>, #tpu.dimension_semantics<parallel>, #tpu.dimension_semantics<arbitrary>], iteration_bounds = array<i64: 1, 1, 1>, scalar_prefetch = 0 : i64, scratch_operands = 1 : i64, tpu.core_type = #tpu.core_type<tc>, window_params = [{transform_indices = @transform_0, window_bounds = array<i64: 128, 576>}, {transform_indices = @transform_1, window_bounds = array<i64: 576, 128>}, {transform_indices = @transform_2, window_bounds = array<i64: 1, 128>}, {transform_indices = @transform_3, window_bounds = array<i64: 128, 128>}, {transform_indices = @transform_4, window_bounds = array<i64: 128, 128>}]} {
    %c0_i32 = arith.constant 0 : i32
    %0 = arith.cmpi eq, %arg2, %c0_i32 : i32
    %1 = arith.extui %0 : i1 to i32
    %c0_i32_0 = arith.constant 0 : i32
    %2 = arith.cmpi ne, %1, %c0_i32_0 : i32
    scf.if %2 {
      %cst_10 = arith.constant 0.000000e+00 : f32
      %12 = vector.broadcast %cst_10 : f32 to vector<128x128xf32>
      %c0_11 = arith.constant 0 : index
      %c0_12 = arith.constant 0 : index
      %13 = vector.load %arg8[%c0_11, %c0_12] : memref<128x128xf32, #tpu.memory_space<vmem>>, vector<128x128xf32>
      tpu.vector_store %arg8[%c0_11, %c0_12], %12 {strides = array<i32>} : memref<128x128xf32, #tpu.memory_space<vmem>>, vector<128x128xf32>,
    } else {
    }
    %c0 = arith.constant 0 : index
    %c0_1 = arith.constant 0 : index
    %3 = vector.load %arg8[%c0, %c0_1] : memref<128x128xf32, #tpu.memory_space<vmem>>, vector<128x128xf32>
    %c0_2 = arith.constant 0 : index
    %c0_3 = arith.constant 0 : index
    %4 = vector.load %arg3[%c0_2, %c0_3] : memref<128x576xbf16, #tpu.memory_space<vmem>>, vector<128x576xbf16>
    %c0_4 = arith.constant 0 : index
    %c0_5 = arith.constant 0 : index
    %5 = vector.load %arg4[%c0_4, %c0_5] : memref<576x128xbf16, #tpu.memory_space<vmem>>, vector<576x128xbf16>
    %cst = arith.constant dense<0.000000e+00> : vector<128x128xf32>
    %6 = tpu.matmul %4, %5, %cst {dimension_numbers = #tpu.dot_dimension_numbers<[1], [0], [0], [1], [0, 0, 1, 1], [], []>} : vector<128x576xbf16>, vector<576x128xbf16>, vector<128x128xf32> -> vector<128x128xf32>
    %7 = arith.addf %3, %6 : vector<128x128xf32>
    %c0_6 = arith.constant 0 : index
    %c0_7 = arith.constant 0 : index
    %8 = vector.load %arg8[%c0_6, %c0_7] : memref<128x128xf32, #tpu.memory_space<vmem>>, vector<128x128xf32>
    tpu.vector_store %arg8[%c0_6, %c0_7], %7 {strides = array<i32>} : memref<128x128xf32, #tpu.memory_space<vmem>>, vector<128x128xf32>,
    %c0_i32_8 = arith.constant 0 : i32
    %9 = arith.cmpi eq, %arg2, %c0_i32_8 : i32
    %10 = arith.extui %9 : i1 to i32
    %c0_i32_9 = arith.constant 0 : i32
    %11 = arith.cmpi ne, %10, %c0_i32_9 : i32
    scf.if %11 {
      %c0_10 = arith.constant 0 : index
      %c0_11 = arith.constant 0 : index
      %12 = vector.load %arg8[%c0_10, %c0_11] : memref<128x128xf32, #tpu.memory_space<vmem>>, vector<128x128xf32>
      %c0_12 = arith.constant 0 : index
      %c0_13 = arith.constant 0 : index
      %13 = vector.load %arg5[%c0_12, %c0_13] : memref<1x128xf32, #tpu.memory_space<vmem>>, vector<1x128xf32>
      %14 = vector.broadcast %13 : vector<1x128xf32> to vector<128x128xf32>
      %15 = arith.addf %12, %14 : vector<128x128xf32>
      %cst_14 = arith.constant 0.000000e+00 : f32
      %16 = vector.broadcast %cst_14 : f32 to vector<128x128xf32>
      %17 = arith.maximumf %15, %16 : vector<128x128xf32>
      %c0_15 = arith.constant 0 : index
      %c0_16 = arith.constant 0 : index
      %18 = vector.load %arg6[%c0_15, %c0_16] : memref<128x128xf32, #tpu.memory_space<vmem>>, vector<128x128xf32>
      %19 = arith.addf %17, %18 : vector<128x128xf32>
      %c0_17 = arith.constant 0 : index
      %c0_18 = arith.constant 0 : index
      %20 = vector.load %arg7[%c0_17, %c0_18] : memref<128x128xf32, #tpu.memory_space<vmem>>, vector<128x128xf32>
      tpu.vector_store %arg7[%c0_17, %c0_18], %19 {strides = array<i32>} : memref<128x128xf32, #tpu.memory_space<vmem>>, vector<128x128xf32>,
    } else {
    }
    return
  }
  func.func @transform_0(%arg0: i32, %arg1: i32, %arg2: i32) -> (i32, i32) {
    %c0_i32 = arith.constant 0 : i32
    return %arg0, %arg2 : i32, i32
  }
  func.func @transform_1(%arg0: i32, %arg1: i32, %arg2: i32) -> (i32, i32) {
    %c0_i32 = arith.constant 0 : i32
    return %arg2, %arg1 : i32, i32
  }
  func.func @transform_2(%arg0: i32, %arg1: i32, %arg2: i32) -> (i32, i32) {
    %c0_i32 = arith.constant 0 : i32
    %c0_i32_0 = arith.constant 0 : i32
    return %c0_i32, %arg1 : i32, i32
  }
  func.func @transform_3(%arg0: i32, %arg1: i32, %arg2: i32) -> (i32, i32) {
    %c0_i32 = arith.constant 0 : i32
    return %arg0, %arg1 : i32, i32
  }
  func.func @transform_4(%arg0: i32, %arg1: i32, %arg2: i32) -> (i32, i32) {
    %c0_i32 = arith.constant 0 : i32
    return %arg0, %arg1 : i32, i32
  }
}

module attributes {stable_mosaic.version = 11 : i64} {
  func.func @_gemm_kernel(%arg0: i32, %arg1: i32, %arg2: i32, %arg3: memref<128x576xbf16, #tpu.memory_space<vmem>>, %arg4: memref<576x128xbf16, #tpu.memory_space<vmem>>, %arg5: memref<1x128xf32, #tpu.memory_space<vmem>>, %arg6: memref<128x128xf32, #tpu.memory_space<vmem>>, %arg7: memref<128x128xf32, #tpu.memory_space<vmem>>) attributes {dimension_semantics = [#tpu.dimension_semantics<parallel>, #tpu.dimension_semantics<parallel>, #tpu.dimension_semantics<arbitrary>], iteration_bounds = array<i64: 1, 1, 1>, scalar_prefetch = 0 : i64, scratch_operands = 1 : i64, tpu.core_type = #tpu.core_type<tc>, window_params = [{transform_indices = @transform_0, window_bounds = array<i64: 128, 576>}, {transform_indices = @transform_1, window_bounds = array<i64: 576, 128>}, {transform_indices = @transform_2, window_bounds = array<i64: 1, 128>}, {transform_indices = @transform_3, window_bounds = array<i64: 128, 128>}]} {
    %c0_i32 = arith.constant 0 : i32
    %0 = arith.cmpi eq, %arg2, %c0_i32 : i32
    %1 = arith.extui %0 : i1 to i32
    %c0_i32_0 = arith.constant 0 : i32
    %2 = arith.cmpi ne, %1, %c0_i32_0 : i32
    scf.if %2 {
      %cst_10 = arith.constant 0.000000e+00 : f32
      %12 = vector.broadcast %cst_10 : f32 to vector<128x128xf32>
      %c0_11 = arith.constant 0 : index
      %c0_12 = arith.constant 0 : index
      %13 = vector.load %arg7[%c0_11, %c0_12] : memref<128x128xf32, #tpu.memory_space<vmem>>, vector<128x128xf32>
      tpu.vector_store %arg7[%c0_11, %c0_12], %12 {strides = array<i32>} : memref<128x128xf32, #tpu.memory_space<vmem>>, vector<128x128xf32>,
    } else {
    }
    %c0 = arith.constant 0 : index
    %c0_1 = arith.constant 0 : index
    %3 = vector.load %arg7[%c0, %c0_1] : memref<128x128xf32, #tpu.memory_space<vmem>>, vector<128x128xf32>
    %c0_2 = arith.constant 0 : index
    %c0_3 = arith.constant 0 : index
    %4 = vector.load %arg3[%c0_2, %c0_3] : memref<128x576xbf16, #tpu.memory_space<vmem>>, vector<128x576xbf16>
    %c0_4 = arith.constant 0 : index
    %c0_5 = arith.constant 0 : index
    %5 = vector.load %arg4[%c0_4, %c0_5] : memref<576x128xbf16, #tpu.memory_space<vmem>>, vector<576x128xbf16>
    %cst = arith.constant dense<0.000000e+00> : vector<128x128xf32>
    %6 = tpu.matmul %4, %5, %cst {dimension_numbers = #tpu.dot_dimension_numbers<[1], [0], [0], [1], [0, 0, 1, 1], [], []>} : vector<128x576xbf16>, vector<576x128xbf16>, vector<128x128xf32> -> vector<128x128xf32>
    %7 = arith.addf %3, %6 : vector<128x128xf32>
    %c0_6 = arith.constant 0 : index
    %c0_7 = arith.constant 0 : index
    %8 = vector.load %arg7[%c0_6, %c0_7] : memref<128x128xf32, #tpu.memory_space<vmem>>, vector<128x128xf32>
    tpu.vector_store %arg7[%c0_6, %c0_7], %7 {strides = array<i32>} : memref<128x128xf32, #tpu.memory_space<vmem>>, vector<128x128xf32>,
    %c0_i32_8 = arith.constant 0 : i32
    %9 = arith.cmpi eq, %arg2, %c0_i32_8 : i32
    %10 = arith.extui %9 : i1 to i32
    %c0_i32_9 = arith.constant 0 : i32
    %11 = arith.cmpi ne, %10, %c0_i32_9 : i32
    scf.if %11 {
      %c0_10 = arith.constant 0 : index
      %c0_11 = arith.constant 0 : index
      %12 = vector.load %arg7[%c0_10, %c0_11] : memref<128x128xf32, #tpu.memory_space<vmem>>, vector<128x128xf32>
      %c0_12 = arith.constant 0 : index
      %c0_13 = arith.constant 0 : index
      %13 = vector.load %arg5[%c0_12, %c0_13] : memref<1x128xf32, #tpu.memory_space<vmem>>, vector<1x128xf32>
      %14 = vector.broadcast %13 : vector<1x128xf32> to vector<128x128xf32>
      %15 = arith.addf %12, %14 : vector<128x128xf32>
      %cst_14 = arith.constant 0.000000e+00 : f32
      %16 = vector.broadcast %cst_14 : f32 to vector<128x128xf32>
      %17 = arith.maximumf %15, %16 : vector<128x128xf32>
      %c0_15 = arith.constant 0 : index
      %c0_16 = arith.constant 0 : index
      %18 = vector.load %arg6[%c0_15, %c0_16] : memref<128x128xf32, #tpu.memory_space<vmem>>, vector<128x128xf32>
      tpu.vector_store %arg6[%c0_15, %c0_16], %17 {strides = array<i32>} : memref<128x128xf32, #tpu.memory_space<vmem>>, vector<128x128xf32>,
    } else {
    }
    return
  }
  func.func @transform_0(%arg0: i32, %arg1: i32, %arg2: i32) -> (i32, i32) {
    %c0_i32 = arith.constant 0 : i32
    return %arg0, %arg2 : i32, i32
  }
  func.func @transform_1(%arg0: i32, %arg1: i32, %arg2: i32) -> (i32, i32) {
    %c0_i32 = arith.constant 0 : i32
    return %arg2, %arg1 : i32, i32
  }
  func.func @transform_2(%arg0: i32, %arg1: i32, %arg2: i32) -> (i32, i32) {
    %c0_i32 = arith.constant 0 : i32
    %c0_i32_0 = arith.constant 0 : i32
    return %c0_i32, %arg1 : i32, i32
  }
  func.func @transform_3(%arg0: i32, %arg1: i32, %arg2: i32) -> (i32, i32) {
    %c0_i32 = arith.constant 0 : i32
    return %arg0, %arg1 : i32, i32
  }
}

module attributes {stable_mosaic.version = 11 : i64} {
  func.func @_gemm_kernel(%arg0: i32, %arg1: i32, %arg2: i32, %arg3: memref<128x64xbf16, #tpu.memory_space<vmem>>, %arg4: memref<64x128xbf16, #tpu.memory_space<vmem>>, %arg5: memref<1x128xf32, #tpu.memory_space<vmem>>, %arg6: memref<128x128xf32, #tpu.memory_space<vmem>>, %arg7: memref<128x128xf32, #tpu.memory_space<vmem>>) attributes {dimension_semantics = [#tpu.dimension_semantics<parallel>, #tpu.dimension_semantics<parallel>, #tpu.dimension_semantics<arbitrary>], iteration_bounds = array<i64: 1, 1, 1>, scalar_prefetch = 0 : i64, scratch_operands = 1 : i64, tpu.core_type = #tpu.core_type<tc>, window_params = [{transform_indices = @transform_0, window_bounds = array<i64: 128, 64>}, {transform_indices = @transform_1, window_bounds = array<i64: 64, 128>}, {transform_indices = @transform_2, window_bounds = array<i64: 1, 128>}, {transform_indices = @transform_3, window_bounds = array<i64: 128, 128>}]} {
    %c0_i32 = arith.constant 0 : i32
    %0 = arith.cmpi eq, %arg2, %c0_i32 : i32
    %1 = arith.extui %0 : i1 to i32
    %c0_i32_0 = arith.constant 0 : i32
    %2 = arith.cmpi ne, %1, %c0_i32_0 : i32
    scf.if %2 {
      %cst_10 = arith.constant 0.000000e+00 : f32
      %12 = vector.broadcast %cst_10 : f32 to vector<128x128xf32>
      %c0_11 = arith.constant 0 : index
      %c0_12 = arith.constant 0 : index
      %13 = vector.load %arg7[%c0_11, %c0_12] : memref<128x128xf32, #tpu.memory_space<vmem>>, vector<128x128xf32>
      tpu.vector_store %arg7[%c0_11, %c0_12], %12 {strides = array<i32>} : memref<128x128xf32, #tpu.memory_space<vmem>>, vector<128x128xf32>,
    } else {
    }
    %c0 = arith.constant 0 : index
    %c0_1 = arith.constant 0 : index
    %3 = vector.load %arg7[%c0, %c0_1] : memref<128x128xf32, #tpu.memory_space<vmem>>, vector<128x128xf32>
    %c0_2 = arith.constant 0 : index
    %c0_3 = arith.constant 0 : index
    %4 = vector.load %arg3[%c0_2, %c0_3] : memref<128x64xbf16, #tpu.memory_space<vmem>>, vector<128x64xbf16>
    %c0_4 = arith.constant 0 : index
    %c0_5 = arith.constant 0 : index
    %5 = vector.load %arg4[%c0_4, %c0_5] : memref<64x128xbf16, #tpu.memory_space<vmem>>, vector<64x128xbf16>
    %cst = arith.constant dense<0.000000e+00> : vector<128x128xf32>
    %6 = tpu.matmul %4, %5, %cst {dimension_numbers = #tpu.dot_dimension_numbers<[1], [0], [0], [1], [0, 0, 1, 1], [], []>} : vector<128x64xbf16>, vector<64x128xbf16>, vector<128x128xf32> -> vector<128x128xf32>
    %7 = arith.addf %3, %6 : vector<128x128xf32>
    %c0_6 = arith.constant 0 : index
    %c0_7 = arith.constant 0 : index
    %8 = vector.load %arg7[%c0_6, %c0_7] : memref<128x128xf32, #tpu.memory_space<vmem>>, vector<128x128xf32>
    tpu.vector_store %arg7[%c0_6, %c0_7], %7 {strides = array<i32>} : memref<128x128xf32, #tpu.memory_space<vmem>>, vector<128x128xf32>,
    %c0_i32_8 = arith.constant 0 : i32
    %9 = arith.cmpi eq, %arg2, %c0_i32_8 : i32
    %10 = arith.extui %9 : i1 to i32
    %c0_i32_9 = arith.constant 0 : i32
    %11 = arith.cmpi ne, %10, %c0_i32_9 : i32
    scf.if %11 {
      %c0_10 = arith.constant 0 : index
      %c0_11 = arith.constant 0 : index
      %12 = vector.load %arg7[%c0_10, %c0_11] : memref<128x128xf32, #tpu.memory_space<vmem>>, vector<128x128xf32>
      %c0_12 = arith.constant 0 : index
      %c0_13 = arith.constant 0 : index
      %13 = vector.load %arg5[%c0_12, %c0_13] : memref<1x128xf32, #tpu.memory_space<vmem>>, vector<1x128xf32>
      %14 = vector.broadcast %13 : vector<1x128xf32> to vector<128x128xf32>
      %15 = arith.addf %12, %14 : vector<128x128xf32>
      %c0_14 = arith.constant 0 : index
      %c0_15 = arith.constant 0 : index
      %16 = vector.load %arg6[%c0_14, %c0_15] : memref<128x128xf32, #tpu.memory_space<vmem>>, vector<128x128xf32>
      tpu.vector_store %arg6[%c0_14, %c0_15], %15 {strides = array<i32>} : memref<128x128xf32, #tpu.memory_space<vmem>>, vector<128x128xf32>,
    } else {
    }
    return
  }
  func.func @transform_0(%arg0: i32, %arg1: i32, %arg2: i32) -> (i32, i32) {
    %c0_i32 = arith.constant 0 : i32
    return %arg0, %arg2 : i32, i32
  }
  func.func @transform_1(%arg0: i32, %arg1: i32, %arg2: i32) -> (i32, i32) {
    %c0_i32 = arith.constant 0 : i32
    return %arg2, %arg1 : i32, i32
  }
  func.func @transform_2(%arg0: i32, %arg1: i32, %arg2: i32) -> (i32, i32) {
    %c0_i32 = arith.constant 0 : i32
    %c0_i32_0 = arith.constant 0 : i32
    return %c0_i32, %arg1 : i32, i32
  }
  func.func @transform_3(%arg0: i32, %arg1: i32, %arg2: i32) -> (i32, i32) {
    %c0_i32 = arith.constant 0 : i32
    return %arg0, %arg1 : i32, i32
  }
}

module attributes {stable_mosaic.version = 11 : i64} {
  func.func @_gemm_res_kernel(%arg0: i32, %arg1: i32, %arg2: i32, %arg3: memref<128x1152xbf16, #tpu.memory_space<vmem>>, %arg4: memref<1152x128xbf16, #tpu.memory_space<vmem>>, %arg5: memref<1x128xf32, #tpu.memory_space<vmem>>, %arg6: memref<128x128xf32, #tpu.memory_space<vmem>>, %arg7: memref<128x128xf32, #tpu.memory_space<vmem>>, %arg8: memref<128x128xf32, #tpu.memory_space<vmem>>) attributes {dimension_semantics = [#tpu.dimension_semantics<parallel>, #tpu.dimension_semantics<parallel>, #tpu.dimension_semantics<arbitrary>], iteration_bounds = array<i64: 1, 1, 1>, scalar_prefetch = 0 : i64, scratch_operands = 1 : i64, tpu.core_type = #tpu.core_type<tc>, window_params = [{transform_indices = @transform_0, window_bounds = array<i64: 128, 1152>}, {transform_indices = @transform_1, window_bounds = array<i64: 1152, 128>}, {transform_indices = @transform_2, window_bounds = array<i64: 1, 128>}, {transform_indices = @transform_3, window_bounds = array<i64: 128, 128>}, {transform_indices = @transform_4, window_bounds = array<i64: 128, 128>}]} {
    %c0_i32 = arith.constant 0 : i32
    %0 = arith.cmpi eq, %arg2, %c0_i32 : i32
    %1 = arith.extui %0 : i1 to i32
    %c0_i32_0 = arith.constant 0 : i32
    %2 = arith.cmpi ne, %1, %c0_i32_0 : i32
    scf.if %2 {
      %cst_10 = arith.constant 0.000000e+00 : f32
      %12 = vector.broadcast %cst_10 : f32 to vector<128x128xf32>
      %c0_11 = arith.constant 0 : index
      %c0_12 = arith.constant 0 : index
      %13 = vector.load %arg8[%c0_11, %c0_12] : memref<128x128xf32, #tpu.memory_space<vmem>>, vector<128x128xf32>
      tpu.vector_store %arg8[%c0_11, %c0_12], %12 {strides = array<i32>} : memref<128x128xf32, #tpu.memory_space<vmem>>, vector<128x128xf32>,
    } else {
    }
    %c0 = arith.constant 0 : index
    %c0_1 = arith.constant 0 : index
    %3 = vector.load %arg8[%c0, %c0_1] : memref<128x128xf32, #tpu.memory_space<vmem>>, vector<128x128xf32>
    %c0_2 = arith.constant 0 : index
    %c0_3 = arith.constant 0 : index
    %4 = vector.load %arg3[%c0_2, %c0_3] : memref<128x1152xbf16, #tpu.memory_space<vmem>>, vector<128x1152xbf16>
    %c0_4 = arith.constant 0 : index
    %c0_5 = arith.constant 0 : index
    %5 = vector.load %arg4[%c0_4, %c0_5] : memref<1152x128xbf16, #tpu.memory_space<vmem>>, vector<1152x128xbf16>
    %cst = arith.constant dense<0.000000e+00> : vector<128x128xf32>
    %6 = tpu.matmul %4, %5, %cst {dimension_numbers = #tpu.dot_dimension_numbers<[1], [0], [0], [1], [0, 0, 1, 1], [], []>} : vector<128x1152xbf16>, vector<1152x128xbf16>, vector<128x128xf32> -> vector<128x128xf32>
    %7 = arith.addf %3, %6 : vector<128x128xf32>
    %c0_6 = arith.constant 0 : index
    %c0_7 = arith.constant 0 : index
    %8 = vector.load %arg8[%c0_6, %c0_7] : memref<128x128xf32, #tpu.memory_space<vmem>>, vector<128x128xf32>
    tpu.vector_store %arg8[%c0_6, %c0_7], %7 {strides = array<i32>} : memref<128x128xf32, #tpu.memory_space<vmem>>, vector<128x128xf32>,
    %c0_i32_8 = arith.constant 0 : i32
    %9 = arith.cmpi eq, %arg2, %c0_i32_8 : i32
    %10 = arith.extui %9 : i1 to i32
    %c0_i32_9 = arith.constant 0 : i32
    %11 = arith.cmpi ne, %10, %c0_i32_9 : i32
    scf.if %11 {
      %c0_10 = arith.constant 0 : index
      %c0_11 = arith.constant 0 : index
      %12 = vector.load %arg8[%c0_10, %c0_11] : memref<128x128xf32, #tpu.memory_space<vmem>>, vector<128x128xf32>
      %c0_12 = arith.constant 0 : index
      %c0_13 = arith.constant 0 : index
      %13 = vector.load %arg5[%c0_12, %c0_13] : memref<1x128xf32, #tpu.memory_space<vmem>>, vector<1x128xf32>
      %14 = vector.broadcast %13 : vector<1x128xf32> to vector<128x128xf32>
      %15 = arith.addf %12, %14 : vector<128x128xf32>
      %cst_14 = arith.constant 0.000000e+00 : f32
      %16 = vector.broadcast %cst_14 : f32 to vector<128x128xf32>
      %17 = arith.maximumf %15, %16 : vector<128x128xf32>
      %c0_15 = arith.constant 0 : index
      %c0_16 = arith.constant 0 : index
      %18 = vector.load %arg6[%c0_15, %c0_16] : memref<128x128xf32, #tpu.memory_space<vmem>>, vector<128x128xf32>
      %19 = arith.addf %17, %18 : vector<128x128xf32>
      %c0_17 = arith.constant 0 : index
      %c0_18 = arith.constant 0 : index
      %20 = vector.load %arg7[%c0_17, %c0_18] : memref<128x128xf32, #tpu.memory_space<vmem>>, vector<128x128xf32>
      tpu.vector_store %arg7[%c0_17, %c0_18], %19 {strides = array<i32>} : memref<128x128xf32, #tpu.memory_space<vmem>>, vector<128x128xf32>,
    } else {
    }
    return
  }
  func.func @transform_0(%arg0: i32, %arg1: i32, %arg2: i32) -> (i32, i32) {
    %c0_i32 = arith.constant 0 : i32
    return %arg0, %arg2 : i32, i32
  }
  func.func @transform_1(%arg0: i32, %arg1: i32, %arg2: i32) -> (i32, i32) {
    %c0_i32 = arith.constant 0 : i32
    return %arg2, %arg1 : i32, i32
  }
  func.func @transform_2(%arg0: i32, %arg1: i32, %arg2: i32) -> (i32, i32) {
    %c0_i32 = arith.constant 0 : i32
    %c0_i32_0 = arith.constant 0 : i32
    return %c0_i32, %arg1 : i32, i32
  }
  func.func @transform_3(%arg0: i32, %arg1: i32, %arg2: i32) -> (i32, i32) {
    %c0_i32 = arith.constant 0 : i32
    return %arg0, %arg1 : i32, i32
  }
  func.func @transform_4(%arg0: i32, %arg1: i32, %arg2: i32) -> (i32, i32) {
    %c0_i32 = arith.constant 0 : i32
    return %arg0, %arg1 : i32, i32
  }
}

module attributes {stable_mosaic.version = 11 : i64} {
  func.func @_roi_gather_kernel(%arg0: i32, %arg1: memref<8x64xi32, #tpu.memory_space<smem>>, %arg2: memref<128x128xf32, #tpu.memory_space<any>>, %arg3: memref<1x1x64xf32, #tpu.memory_space<vmem>>, %arg4: memref<1x1x128xf32, #tpu.memory_space<vmem>>, %arg5: memref<64x128xf32, #tpu.memory_space<vmem>>, %arg6: memref<8x!tpu.dma_semaphore, #tpu.memory_space<semaphore_mem>>) attributes {dimension_semantics = [#tpu.dimension_semantics<parallel>], iteration_bounds = array<i64: 8>, scalar_prefetch = 1 : i64, scratch_operands = 2 : i64, tpu.core_type = #tpu.core_type<tc>, window_params = [{}, {transform_indices = @transform_1, window_bounds = array<i64: 1, 1, 64>}, {transform_indices = @transform_2, window_bounds = array<i64: 1, 1, 128>}]} {
    %0 = arith.index_cast %arg0 : i32 to index
    %c0 = arith.constant 0 : index
    %1 = memref.load %arg1[%0, %c0] : memref<8x64xi32, #tpu.memory_space<smem>>
    %c0_i32 = arith.constant 0 : i32
    %c0_i32_0 = arith.constant 0 : i32
    %2 = tpu.memref_slice %arg2[%1, %c0_i32_0] : memref<128x128xf32, #tpu.memory_space<any>> -> memref<1x128xf32, #tpu.memory_space<any>>
    %c0_i32_1 = arith.constant 0 : i32
    %c0_i32_2 = arith.constant 0 : i32
    %3 = tpu.memref_slice %arg5[%c0_i32_1, %c0_i32_2] : memref<64x128xf32, #tpu.memory_space<vmem>> -> memref<1x128xf32, #tpu.memory_space<vmem>>
    %4 = tpu.memref_slice %arg6[%c0_i32] : memref<8x!tpu.dma_semaphore, #tpu.memory_space<semaphore_mem>> -> memref<1x!tpu.dma_semaphore, #tpu.memory_space<semaphore_mem>>
    %5 = tpu.memref_squeeze %4 : memref<1x!tpu.dma_semaphore, #tpu.memory_space<semaphore_mem>> -> memref<!tpu.dma_semaphore, #tpu.memory_space<semaphore_mem>>
    tpu.enqueue_dma source(%2 : memref<1x128xf32, #tpu.memory_space<any>>) target(%3 : memref<1x128xf32, #tpu.memory_space<vmem>>) target_semaphore(%5 : memref<!tpu.dma_semaphore, #tpu.memory_space<semaphore_mem>>)
    %6 = arith.index_cast %arg0 : i32 to index
    %c1 = arith.constant 1 : index
    %7 = memref.load %arg1[%6, %c1] : memref<8x64xi32, #tpu.memory_space<smem>>
    %c1_i32 = arith.constant 1 : i32
    %c0_i32_3 = arith.constant 0 : i32
    %8 = tpu.memref_slice %arg2[%7, %c0_i32_3] : memref<128x128xf32, #tpu.memory_space<any>> -> memref<1x128xf32, #tpu.memory_space<any>>
    %c1_i32_4 = arith.constant 1 : i32
    %c0_i32_5 = arith.constant 0 : i32
    %9 = tpu.memref_slice %arg5[%c1_i32_4, %c0_i32_5] : memref<64x128xf32, #tpu.memory_space<vmem>> -> memref<1x128xf32, #tpu.memory_space<vmem>>
    %10 = tpu.memref_slice %arg6[%c1_i32] : memref<8x!tpu.dma_semaphore, #tpu.memory_space<semaphore_mem>> -> memref<1x!tpu.dma_semaphore, #tpu.memory_space<semaphore_mem>>
    %11 = tpu.memref_squeeze %10 : memref<1x!tpu.dma_semaphore, #tpu.memory_space<semaphore_mem>> -> memref<!tpu.dma_semaphore, #tpu.memory_space<semaphore_mem>>
    tpu.enqueue_dma source(%8 : memref<1x128xf32, #tpu.memory_space<any>>) target(%9 : memref<1x128xf32, #tpu.memory_space<vmem>>) target_semaphore(%11 : memref<!tpu.dma_semaphore, #tpu.memory_space<semaphore_mem>>)
    %12 = arith.index_cast %arg0 : i32 to index
    %c2 = arith.constant 2 : index
    %13 = memref.load %arg1[%12, %c2] : memref<8x64xi32, #tpu.memory_space<smem>>
    %c2_i32 = arith.constant 2 : i32
    %c0_i32_6 = arith.constant 0 : i32
    %14 = tpu.memref_slice %arg2[%13, %c0_i32_6] : memref<128x128xf32, #tpu.memory_space<any>> -> memref<1x128xf32, #tpu.memory_space<any>>
    %c2_i32_7 = arith.constant 2 : i32
    %c0_i32_8 = arith.constant 0 : i32
    %15 = tpu.memref_slice %arg5[%c2_i32_7, %c0_i32_8] : memref<64x128xf32, #tpu.memory_space<vmem>> -> memref<1x128xf32, #tpu.memory_space<vmem>>
    %16 = tpu.memref_slice %arg6[%c2_i32] : memref<8x!tpu.dma_semaphore, #tpu.memory_space<semaphore_mem>> -> memref<1x!tpu.dma_semaphore, #tpu.memory_space<semaphore_mem>>
    %17 = tpu.memref_squeeze %16 : memref<1x!tpu.dma_semaphore, #tpu.memory_space<semaphore_mem>> -> memref<!tpu.dma_semaphore, #tpu.memory_space<semaphore_mem>>
    tpu.enqueue_dma source(%14 : memref<1x128xf32, #tpu.memory_space<any>>) target(%15 : memref<1x128xf32, #tpu.memory_space<vmem>>) target_semaphore(%17 : memref<!tpu.dma_semaphore, #tpu.memory_space<semaphore_mem>>)
    %18 = arith.index_cast %arg0 : i32 to index
    %c3 = arith.constant 3 : index
    %19 = memref.load %arg1[%18, %c3] : memref<8x64xi32, #tpu.memory_space<smem>>
    %c3_i32 = arith.constant 3 : i32
    %c0_i32_9 = arith.constant 0 : i32
    %20 = tpu.memref_slice %arg2[%19, %c0_i32_9] : memref<128x128xf32, #tpu.memory_space<any>> -> memref<1x128xf32, #tpu.memory_space<any>>
    %c3_i32_10 = arith.constant 3 : i32
    %c0_i32_11 = arith.constant 0 : i32
    %21 = tpu.memref_slice %arg5[%c3_i32_10, %c0_i32_11] : memref<64x128xf32, #tpu.memory_space<vmem>> -> memref<1x128xf32, #tpu.memory_space<vmem>>
    %22 = tpu.memref_slice %arg6[%c3_i32] : memref<8x!tpu.dma_semaphore, #tpu.memory_space<semaphore_mem>> -> memref<1x!tpu.dma_semaphore, #tpu.memory_space<semaphore_mem>>
    %23 = tpu.memref_squeeze %22 : memref<1x!tpu.dma_semaphore, #tpu.memory_space<semaphore_mem>> -> memref<!tpu.dma_semaphore, #tpu.memory_space<semaphore_mem>>
    tpu.enqueue_dma source(%20 : memref<1x128xf32, #tpu.memory_space<any>>) target(%21 : memref<1x128xf32, #tpu.memory_space<vmem>>) target_semaphore(%23 : memref<!tpu.dma_semaphore, #tpu.memory_space<semaphore_mem>>)
    %24 = arith.index_cast %arg0 : i32 to index
    %c4 = arith.constant 4 : index
    %25 = memref.load %arg1[%24, %c4] : memref<8x64xi32, #tpu.memory_space<smem>>
    %c4_i32 = arith.constant 4 : i32
    %c0_i32_12 = arith.constant 0 : i32
    %26 = tpu.memref_slice %arg2[%25, %c0_i32_12] : memref<128x128xf32, #tpu.memory_space<any>> -> memref<1x128xf32, #tpu.memory_space<any>>
    %c4_i32_13 = arith.constant 4 : i32
    %c0_i32_14 = arith.constant 0 : i32
    %27 = tpu.memref_slice %arg5[%c4_i32_13, %c0_i32_14] : memref<64x128xf32, #tpu.memory_space<vmem>> -> memref<1x128xf32, #tpu.memory_space<vmem>>
    %28 = tpu.memref_slice %arg6[%c4_i32] : memref<8x!tpu.dma_semaphore, #tpu.memory_space<semaphore_mem>> -> memref<1x!tpu.dma_semaphore, #tpu.memory_space<semaphore_mem>>
    %29 = tpu.memref_squeeze %28 : memref<1x!tpu.dma_semaphore, #tpu.memory_space<semaphore_mem>> -> memref<!tpu.dma_semaphore, #tpu.memory_space<semaphore_mem>>
    tpu.enqueue_dma source(%26 : memref<1x128xf32, #tpu.memory_space<any>>) target(%27 : memref<1x128xf32, #tpu.memory_space<vmem>>) target_semaphore(%29 : memref<!tpu.dma_semaphore, #tpu.memory_space<semaphore_mem>>)
    %30 = arith.index_cast %arg0 : i32 to index
    %c5 = arith.constant 5 : index
    %31 = memref.load %arg1[%30, %c5] : memref<8x64xi32, #tpu.memory_space<smem>>
    %c5_i32 = arith.constant 5 : i32
    %c0_i32_15 = arith.constant 0 : i32
    %32 = tpu.memref_slice %arg2[%31, %c0_i32_15] : memref<128x128xf32, #tpu.memory_space<any>> -> memref<1x128xf32, #tpu.memory_space<any>>
    %c5_i32_16 = arith.constant 5 : i32
    %c0_i32_17 = arith.constant 0 : i32
    %33 = tpu.memref_slice %arg5[%c5_i32_16, %c0_i32_17] : memref<64x128xf32, #tpu.memory_space<vmem>> -> memref<1x128xf32, #tpu.memory_space<vmem>>
    %34 = tpu.memref_slice %arg6[%c5_i32] : memref<8x!tpu.dma_semaphore, #tpu.memory_space<semaphore_mem>> -> memref<1x!tpu.dma_semaphore, #tpu.memory_space<semaphore_mem>>
    %35 = tpu.memref_squeeze %34 : memref<1x!tpu.dma_semaphore, #tpu.memory_space<semaphore_mem>> -> memref<!tpu.dma_semaphore, #tpu.memory_space<semaphore_mem>>
    tpu.enqueue_dma source(%32 : memref<1x128xf32, #tpu.memory_space<any>>) target(%33 : memref<1x128xf32, #tpu.memory_space<vmem>>) target_semaphore(%35 : memref<!tpu.dma_semaphore, #tpu.memory_space<semaphore_mem>>)
    %36 = arith.index_cast %arg0 : i32 to index
    %c6 = arith.constant 6 : index
    %37 = memref.load %arg1[%36, %c6] : memref<8x64xi32, #tpu.memory_space<smem>>
    %c6_i32 = arith.constant 6 : i32
    %c0_i32_18 = arith.constant 0 : i32
    %38 = tpu.memref_slice %arg2[%37, %c0_i32_18] : memref<128x128xf32, #tpu.memory_space<any>> -> memref<1x128xf32, #tpu.memory_space<any>>
    %c6_i32_19 = arith.constant 6 : i32
    %c0_i32_20 = arith.constant 0 : i32
    %39 = tpu.memref_slice %arg5[%c6_i32_19, %c0_i32_20] : memref<64x128xf32, #tpu.memory_space<vmem>> -> memref<1x128xf32, #tpu.memory_space<vmem>>
    %40 = tpu.memref_slice %arg6[%c6_i32] : memref<8x!tpu.dma_semaphore, #tpu.memory_space<semaphore_mem>> -> memref<1x!tpu.dma_semaphore, #tpu.memory_space<semaphore_mem>>
    %41 = tpu.memref_squeeze %40 : memref<1x!tpu.dma_semaphore, #tpu.memory_space<semaphore_mem>> -> memref<!tpu.dma_semaphore, #tpu.memory_space<semaphore_mem>>
    tpu.enqueue_dma source(%38 : memref<1x128xf32, #tpu.memory_space<any>>) target(%39 : memref<1x128xf32, #tpu.memory_space<vmem>>) target_semaphore(%41 : memref<!tpu.dma_semaphore, #tpu.memory_space<semaphore_mem>>)
    %42 = arith.index_cast %arg0 : i32 to index
    %c7 = arith.constant 7 : index
    %43 = memref.load %arg1[%42, %c7] : memref<8x64xi32, #tpu.memory_space<smem>>
    %c7_i32 = arith.constant 7 : i32
    %c0_i32_21 = arith.constant 0 : i32
    %44 = tpu.memref_slice %arg2[%43, %c0_i32_21] : memref<128x128xf32, #tpu.memory_space<any>> -> memref<1x128xf32, #tpu.memory_space<any>>
    %c7_i32_22 = arith.constant 7 : i32
    %c0_i32_23 = arith.constant 0 : i32
    %45 = tpu.memref_slice %arg5[%c7_i32_22, %c0_i32_23] : memref<64x128xf32, #tpu.memory_space<vmem>> -> memref<1x128xf32, #tpu.memory_space<vmem>>
    %46 = tpu.memref_slice %arg6[%c7_i32] : memref<8x!tpu.dma_semaphore, #tpu.memory_space<semaphore_mem>> -> memref<1x!tpu.dma_semaphore, #tpu.memory_space<semaphore_mem>>
    %47 = tpu.memref_squeeze %46 : memref<1x!tpu.dma_semaphore, #tpu.memory_space<semaphore_mem>> -> memref<!tpu.dma_semaphore, #tpu.memory_space<semaphore_mem>>
    tpu.enqueue_dma source(%44 : memref<1x128xf32, #tpu.memory_space<any>>) target(%45 : memref<1x128xf32, #tpu.memory_space<vmem>>) target_semaphore(%47 : memref<!tpu.dma_semaphore, #tpu.memory_space<semaphore_mem>>)
    %c0_i32_24 = arith.constant 0 : i32
    %c64_i32 = arith.constant 64 : i32
    %48 = arith.addi %c0_i32_24, %c64_i32 : i32
    %c1_i32_25 = arith.constant 1 : i32
    scf.for %arg7 = %c0_i32_24 to %48 step %c1_i32_25  : i32 {
      %c1_i32_35 = arith.constant 1 : i32
      %55 = arith.muli %arg7, %c1_i32_35 : i32
      %c0_i32_36 = arith.constant 0 : i32
      %56 = arith.addi %c0_i32_36, %55 : i32
      %c8_i32 = arith.constant 8 : i32
      %c0_i32_37 = arith.constant 0 : i32
      %57 = arith.cmpi eq, %c8_i32, %c0_i32_37 : i32
      %c1_i32_38 = arith.constant 1 : i32
      %58 = arith.select %57, %c1_i32_38, %c8_i32 : i32
      %59 = arith.remsi %56, %58 : i32
      %c0_i32_39 = arith.constant 0 : i32
      %60 = arith.cmpi ne, %59, %c0_i32_39 : i32
      %c0_i32_40 = arith.constant 0 : i32
      %61 = arith.cmpi slt, %59, %c0_i32_40 : i32
      %c0_i32_41 = arith.constant 0 : i32
      %62 = arith.cmpi slt, %58, %c0_i32_41 : i32
      %63 = arith.xori %61, %62 : i1
      %64 = arith.andi %63, %60 : i1
      %65 = arith.addi %59, %58 : i32
      %66 = arith.select %64, %65, %59 : i32
      %c0_i32_42 = arith.constant 0 : i32
      %c0_i32_43 = arith.constant 0 : i32
      %67 = tpu.memref_slice %arg2[%c0_i32_42, %c0_i32_43] : memref<128x128xf32, #tpu.memory_space<any>> -> memref<1x128xf32, #tpu.memory_space<any>>
      %c0_i32_44 = arith.constant 0 : i32
      %c0_i32_45 = arith.constant 0 : i32
      %68 = tpu.memref_slice %arg5[%c0_i32_44, %c0_i32_45] : memref<64x128xf32, #tpu.memory_space<vmem>> -> memref<1x128xf32, #tpu.memory_space<vmem>>
      %69 = tpu.memref_slice %arg6[%66] : memref<8x!tpu.dma_semaphore, #tpu.memory_space<semaphore_mem>> -> memref<1x!tpu.dma_semaphore, #tpu.memory_space<semaphore_mem>>
      %70 = tpu.memref_squeeze %69 : memref<1x!tpu.dma_semaphore, #tpu.memory_space<semaphore_mem>> -> memref<!tpu.dma_semaphore, #tpu.memory_space<semaphore_mem>>
      tpu.wait_dma2 semaphore(%70 : memref<!tpu.dma_semaphore, #tpu.memory_space<semaphore_mem>>) src(%67 : memref<1x128xf32, #tpu.memory_space<any>>) dst(%68 : memref<1x128xf32, #tpu.memory_space<vmem>>)
      %c8_i32_46 = arith.constant 8 : i32
      %71 = arith.addi %56, %c8_i32_46 : i32
      %c64_i32_47 = arith.constant 64 : i32
      %72 = arith.cmpi slt, %71, %c64_i32_47 : i32
      %73 = arith.extui %72 : i1 to i32
      %c0_i32_48 = arith.constant 0 : i32
      %74 = arith.cmpi ne, %73, %c0_i32_48 : i32
      scf.if %74 {
        %c8_i32_49 = arith.constant 8 : i32
        %75 = arith.addi %56, %c8_i32_49 : i32
        %76 = arith.index_cast %arg0 : i32 to index
        %77 = arith.index_cast %75 : i32 to index
        %78 = memref.load %arg1[%76, %77] : memref<8x64xi32, #tpu.memory_space<smem>>
        %c0_i32_50 = arith.constant 0 : i32
        %79 = tpu.memref_slice %arg2[%78, %c0_i32_50] : memref<128x128xf32, #tpu.memory_space<any>> -> memref<1x128xf32, #tpu.memory_space<any>>
        %c0_i32_51 = arith.constant 0 : i32
        %80 = tpu.memref_slice %arg5[%75, %c0_i32_51] : memref<64x128xf32, #tpu.memory_space<vmem>> -> memref<1x128xf32, #tpu.memory_space<vmem>>
        %81 = tpu.memref_slice %arg6[%66] : memref<8x!tpu.dma_semaphore, #tpu.memory_space<semaphore_mem>> -> memref<1x!tpu.dma_semaphore, #tpu.memory_space<semaphore_mem>>
        %82 = tpu.memref_squeeze %81 : memref<1x!tpu.dma_semaphore, #tpu.memory_space<semaphore_mem>> -> memref<!tpu.dma_semaphore, #tpu.memory_space<semaphore_mem>>
        tpu.enqueue_dma source(%79 : memref<1x128xf32, #tpu.memory_space<any>>) target(%80 : memref<1x128xf32, #tpu.memory_space<vmem>>) target_semaphore(%82 : memref<!tpu.dma_semaphore, #tpu.memory_space<semaphore_mem>>)
      } else {
      }
    }
    %c64_i32_26 = arith.constant 64 : i32
    %c0_27 = arith.constant 0 : index
    %c0_28 = arith.constant 0 : index
    %c0_29 = arith.constant 0 : index
    %49 = vector.load %arg3[%c0_27, %c0_28, %c0_29] : memref<1x1x64xf32, #tpu.memory_space<vmem>>, vector<1x1x64xf32>
    %50 = vector.shape_cast %49 : vector<1x1x64xf32> to vector<1x64xf32>
    %c0_30 = arith.constant 0 : index
    %c0_31 = arith.constant 0 : index
    %51 = vector.load %arg5[%c0_30, %c0_31] : memref<64x128xf32, #tpu.memory_space<vmem>>, vector<64x128xf32>
    %cst = arith.constant dense<0.000000e+00> : vector<1x128xf32>
    %52 = tpu.matmul %50, %51, %cst {dimension_numbers = #tpu.dot_dimension_numbers<[1], [0], [0], [1], [0, 0, 1, 1], [], []>} : vector<1x64xf32>, vector<64x128xf32>, vector<1x128xf32> -> vector<1x128xf32>
    %53 = vector.shape_cast %52 : vector<1x128xf32> to vector<1x1x128xf32>
    %c0_32 = arith.constant 0 : index
    %c0_33 = arith.constant 0 : index
    %c0_34 = arith.constant 0 : index
    %54 = vector.load %arg4[%c0_32, %c0_33, %c0_34] : memref<1x1x128xf32, #tpu.memory_space<vmem>>, vector<1x1x128xf32>
    tpu.vector_store %arg4[%c0_32, %c0_33, %c0_34], %53 {strides = array<i32>} : memref<1x1x128xf32, #tpu.memory_space<vmem>>, vector<1x1x128xf32>,
    return
  }
  func.func @transform_1(%arg0: i32, %arg1: memref<8x64xi32, #tpu.memory_space<smem>>) -> (i32, i32, i32) {
    %c0_i32 = arith.constant 0 : i32
    %c0_i32_0 = arith.constant 0 : i32
    %c0_i32_1 = arith.constant 0 : i32
    return %arg0, %c0_i32, %c0_i32_0 : i32, i32, i32
  }
  func.func @transform_2(%arg0: i32, %arg1: memref<8x64xi32, #tpu.memory_space<smem>>) -> (i32, i32, i32) {
    %c0_i32 = arith.constant 0 : i32
    %c0_i32_0 = arith.constant 0 : i32
    %c0_i32_1 = arith.constant 0 : i32
    return %arg0, %c0_i32, %c0_i32_0 : i32, i32, i32
  }
}

module attributes {stable_mosaic.version = 11 : i64} {
  func.func @_gemm_kernel(%arg0: i32, %arg1: i32, %arg2: i32, %arg3: memref<8x128xbf16, #tpu.memory_space<vmem>>, %arg4: memref<128x128xbf16, #tpu.memory_space<vmem>>, %arg5: memref<1x128xf32, #tpu.memory_space<vmem>>, %arg6: memref<8x128xf32, #tpu.memory_space<vmem>>, %arg7: memref<8x128xf32, #tpu.memory_space<vmem>>) attributes {dimension_semantics = [#tpu.dimension_semantics<parallel>, #tpu.dimension_semantics<parallel>, #tpu.dimension_semantics<arbitrary>], iteration_bounds = array<i64: 1, 1, 1>, scalar_prefetch = 0 : i64, scratch_operands = 1 : i64, tpu.core_type = #tpu.core_type<tc>, window_params = [{transform_indices = @transform_0, window_bounds = array<i64: 8, 128>}, {transform_indices = @transform_1, window_bounds = array<i64: 128, 128>}, {transform_indices = @transform_2, window_bounds = array<i64: 1, 128>}, {transform_indices = @transform_3, window_bounds = array<i64: 8, 128>}]} {
    %c0_i32 = arith.constant 0 : i32
    %0 = arith.cmpi eq, %arg2, %c0_i32 : i32
    %1 = arith.extui %0 : i1 to i32
    %c0_i32_0 = arith.constant 0 : i32
    %2 = arith.cmpi ne, %1, %c0_i32_0 : i32
    scf.if %2 {
      %cst_10 = arith.constant 0.000000e+00 : f32
      %12 = vector.broadcast %cst_10 : f32 to vector<8x128xf32>
      %c0_11 = arith.constant 0 : index
      %c0_12 = arith.constant 0 : index
      %13 = vector.load %arg7[%c0_11, %c0_12] : memref<8x128xf32, #tpu.memory_space<vmem>>, vector<8x128xf32>
      tpu.vector_store %arg7[%c0_11, %c0_12], %12 {strides = array<i32>} : memref<8x128xf32, #tpu.memory_space<vmem>>, vector<8x128xf32>,
    } else {
    }
    %c0 = arith.constant 0 : index
    %c0_1 = arith.constant 0 : index
    %3 = vector.load %arg7[%c0, %c0_1] : memref<8x128xf32, #tpu.memory_space<vmem>>, vector<8x128xf32>
    %c0_2 = arith.constant 0 : index
    %c0_3 = arith.constant 0 : index
    %4 = vector.load %arg3[%c0_2, %c0_3] : memref<8x128xbf16, #tpu.memory_space<vmem>>, vector<8x128xbf16>
    %c0_4 = arith.constant 0 : index
    %c0_5 = arith.constant 0 : index
    %5 = vector.load %arg4[%c0_4, %c0_5] : memref<128x128xbf16, #tpu.memory_space<vmem>>, vector<128x128xbf16>
    %cst = arith.constant dense<0.000000e+00> : vector<8x128xf32>
    %6 = tpu.matmul %4, %5, %cst {dimension_numbers = #tpu.dot_dimension_numbers<[1], [0], [0], [1], [0, 0, 1, 1], [], []>} : vector<8x128xbf16>, vector<128x128xbf16>, vector<8x128xf32> -> vector<8x128xf32>
    %7 = arith.addf %3, %6 : vector<8x128xf32>
    %c0_6 = arith.constant 0 : index
    %c0_7 = arith.constant 0 : index
    %8 = vector.load %arg7[%c0_6, %c0_7] : memref<8x128xf32, #tpu.memory_space<vmem>>, vector<8x128xf32>
    tpu.vector_store %arg7[%c0_6, %c0_7], %7 {strides = array<i32>} : memref<8x128xf32, #tpu.memory_space<vmem>>, vector<8x128xf32>,
    %c0_i32_8 = arith.constant 0 : i32
    %9 = arith.cmpi eq, %arg2, %c0_i32_8 : i32
    %10 = arith.extui %9 : i1 to i32
    %c0_i32_9 = arith.constant 0 : i32
    %11 = arith.cmpi ne, %10, %c0_i32_9 : i32
    scf.if %11 {
      %c0_10 = arith.constant 0 : index
      %c0_11 = arith.constant 0 : index
      %12 = vector.load %arg7[%c0_10, %c0_11] : memref<8x128xf32, #tpu.memory_space<vmem>>, vector<8x128xf32>
      %c0_12 = arith.constant 0 : index
      %c0_13 = arith.constant 0 : index
      %13 = vector.load %arg5[%c0_12, %c0_13] : memref<1x128xf32, #tpu.memory_space<vmem>>, vector<1x128xf32>
      %14 = vector.broadcast %13 : vector<1x128xf32> to vector<8x128xf32>
      %15 = arith.addf %12, %14 : vector<8x128xf32>
      %c0_14 = arith.constant 0 : index
      %c0_15 = arith.constant 0 : index
      %16 = vector.load %arg6[%c0_14, %c0_15] : memref<8x128xf32, #tpu.memory_space<vmem>>, vector<8x128xf32>
      tpu.vector_store %arg6[%c0_14, %c0_15], %15 {strides = array<i32>} : memref<8x128xf32, #tpu.memory_space<vmem>>, vector<8x128xf32>,
    } else {
    }
    return
  }
  func.func @transform_0(%arg0: i32, %arg1: i32, %arg2: i32) -> (i32, i32) {
    %c0_i32 = arith.constant 0 : i32
    return %arg0, %arg2 : i32, i32
  }
  func.func @transform_1(%arg0: i32, %arg1: i32, %arg2: i32) -> (i32, i32) {
    %c0_i32 = arith.constant 0 : i32
    return %arg2, %arg1 : i32, i32
  }
  func.func @transform_2(%arg0: i32, %arg1: i32, %arg2: i32) -> (i32, i32) {
    %c0_i32 = arith.constant 0 : i32
    %c0_i32_0 = arith.constant 0 : i32
    return %c0_i32, %arg1 : i32, i32
  }
  func.func @transform_3(%arg0: i32, %arg1: i32, %arg2: i32) -> (i32, i32) {
    %c0_i32 = arith.constant 0 : i32
    return %arg0, %arg1 : i32, i32
  }
}

</mosaic_0001>

<bundles_post_ra>
// kernel: _net_forward_padded.10
= control target key start
LH: loop header
LB: loop body
LE: loop exit
PB: predicated region body
PF: predicated region fallthrough
CT: control target
= control target key end

     0   :  { %s1587_s12 = smov 0   ;;  %s1589_s13 = smov 0   ;;  %s1968_s0 = inlined_call_operand.vmem [shape: bf16[512,32], index: 0, kind: input, shape index: {}]   ;;  %s1969_s1 = inlined_call_operand.vmem [shape: bf16[32,128], index: 1, kind: input, shape index: {}]   ;;  %s1970_s2 = inlined_call_operand.vmem [shape: f32[1,128], index: 2, kind: input, shape index: {}]   ;;  %s1971_s3 = inlined_call_operand.vmem [shape: f32[512,128], index: 3, kind: output, shape index: {}]  }
   0x1   :  { %s1591_s14 = smov 0  }
   0x2 LB: > { %s32_s15 = sadd.s32 1, %s1561_s13  ;;  %p1273_p0 = scmp.ge.s32.totalorder %s1565_s14, 1  ;;  %s1565_s14 = sphi %s1591_s14, %s13_s14   ;;  %s1561_s13 = sphi %s1589_s13, %s1973_s13   ;;  %s1557_s12 = sphi %s1587_s12, %s1972_s12  }
   0x3   : > { %p34_p1 = scmp.ge.s32.totalorder %s32_s15, 2  ;;  %p188_p2 = scmp.lt.s32.totalorder %s1565_s14, 3 }
   0x5   : > { %s1975_s15 = smov (%p34_p1, %s32_s15), 0  ;;  %p189_p3 = pnand %p1273_p0, %p188_p2 }
   0x6   : > { %v1397_v0 = vld [vmem:[%s1969_s1] sm:$0xff] (!%p189_p3)   ;;  %s1274_s18 = sshll.u32 (!%p189_p3), %s1557_s12, 5  ;;  %v1398_v1 = vld [vmem:[%s1969_s1 + $0x8] sm:$0xff] (!%p189_p3)   ;;  %vm456_vm0 = vcmask (!%p189_p3), 261120  }
   0x7   : > { %192 = sbr.rel (%p189_p3) target bundleno = 342 (0x156), region = 32  ;;  %p230_p4 = scmp.lt.s32.totalorder (!%p189_p3), %s1274_s18, 63  ;;  %1333 = vmatprep.subr.bf16.mxu0 (!%p189_p3), %v1397_v0  ;;  %1369 = vmatprep.subr.bf16.mxu1 (!%p189_p3), %v1397_v0  ;;  %v1654_v18 = vld [vmem:[%s1970_s2] ss:$0 sm:$0xff] (!%p189_p3) }
   0x8   : > { %1334 = vmatpush3.bf16.msra.mxu0 (!%p189_p3), %v1397_v0  ;;  %1371 = vmatpush3.bf16.msra.mxu1 (!%p189_p3), %v1397_v0 }
   0x9   : > { %1335 = vmatprep.subr.bf16.mxu0 (!%p189_p3), %v1398_v1  ;;  %1370 = vmatprep.subr.bf16.mxu1 (!%p189_p3), %v1398_v1 }
   0xc   : > { %1336 = vmatpush3.bf16.msra.mxu0 (!%p189_p3), %v1398_v1  ;;  %1372 = vmatpush3.bf16.msra.mxu1 (!%p189_p3), %v1398_v1 }
   0xe   : > { %s1977_s18 = smov (!%p230_p4, %s1274_s18), 63 }
   0xf   : > { %s1275_s21 = sshll.u32 %s1977_s18, 2  ;;  %s1277_s27 = sshll.u32 %s1977_s18, 3 }
  0x10   : > { %s1617_s24 = scalar_lea.vmem %s1968_s0, %s1275_s21  ;;  %s1778_s30 = scalar_lea.vmem %s1971_s3, %s1277_s27 }
  0x11   : > { %v1399_v2 = vld [vmem:[%s1617_s24] sm:$0xff]   ;;  %v1401_v4 = vld [vmem:[%s1617_s24 + $0x8] sm:$0xff]   ;;  %v1403_v6 = vld [vmem:[%s1617_s24 + $0x10] sm:$0xff]  }
  0x12   : > { %v1400_v3 = vld [vmem:[%s1617_s24 + $0x40] sm:$0xff]   ;;  %1337 = vmatprep.mubr.msk.bf16.mxu0 %vm456_vm0, %v1399_v2  ;;  %v1402_v5 = vld [vmem:[%s1617_s24 + $0x48] sm:$0xff]   ;;  %v1404_v7 = vld [vmem:[%s1617_s24 + $0x50] sm:$0xff]  }
  0x13   : > { %1353 = vmatprep.mubr.msk.bf16.mxu1 %vm456_vm0, %v1400_v3  ;;  %1338 = vmatmul.mubr.msk.bf16.vlgmr.msra.gmra.mrb[0].mxu0 %vm456_vm0, %v1401_v4  ;;  %v1405_v8 = vld [vmem:[%s1617_s24 + $0x18] sm:$0xff]   ;;  %v1407_v10 = vld [vmem:[%s1617_s24 + $0x20] sm:$0xff]   ;;  %v1409_v12 = vld [vmem:[%s1617_s24 + $0x28] sm:$0xff]  }
  0x14   : > { %1354 = vmatmul.mubr.msk.bf16.vlgmr.msra.gmra.mrb[0].mxu1 %vm456_vm0, %v1402_v5  ;;  %1341 = vmatprep.mubr.msk.bf16.mxu0 %vm456_vm0, %v1403_v6  ;;  %v1406_v9 = vld [vmem:[%s1617_s24 + $0x58] sm:$0xff]   ;;  %v1408_v11 = vld [vmem:[%s1617_s24 + $0x60] sm:$0xff]   ;;  %v1410_v13 = vld [vmem:[%s1617_s24 + $0x68] sm:$0xff]  }
  0x15   : > { %1357 = vmatprep.mubr.msk.bf16.mxu1 %vm456_vm0, %v1404_v7  ;;  %v1411_v14 = vld [vmem:[%s1617_s24 + $0x30] sm:$0xff]   ;;  %v1413_v16 = vld [vmem:[%s1617_s24 + $0x38] sm:$0xff]  }
  0x16   : > { %v1412_v15 = vld [vmem:[%s1617_s24 + $0x70] sm:$0xff]   ;;  %v1414_v17 = vld [vmem:[%s1617_s24 + $0x78] sm:$0xff]  }
  0x1b   : > { %1342 = vmatmul.mubr.msk.bf16.gmra.mrb[4].mxu0 %vm456_vm0, %v1405_v8 }
  0x1c   : > { %1358 = vmatmul.mubr.msk.bf16.gmra.mrb[4].mxu1 %vm456_vm0, %v1406_v9  ;;  %1345 = vmatprep.mubr.msk.bf16.mxu0 %vm456_vm0, %v1407_v10 }
  0x1d   : > { %1361 = vmatprep.mubr.msk.bf16.mxu1 %vm456_vm0, %v1408_v11 }
  0x23   : > { %1346 = vmatmul.mubr.msk.bf16.gmra.mrb[8].mxu0 %vm456_vm0, %v1409_v12 }
  0x24   : > { %1362 = vmatmul.mubr.msk.bf16.gmra.mrb[8].mxu1 %vm456_vm0, %v1410_v13  ;;  %1349 = vmatprep.mubr.msk.bf16.mxu0 %vm456_vm0, %v1411_v14 }
  0x25   : > { %1365 = vmatprep.mubr.msk.bf16.mxu1 %vm456_vm0, %v1412_v15 }
  0x2b   : > { %1350 = vmatmul.mubr.msk.bf16.gmra.mrb[12].mxu0 %vm456_vm0, %v1413_v16 }
  0x2c   : > { %1366 = vmatmul.mubr.msk.bf16.gmra.mrb[12].mxu1 %vm456_vm0, %v1414_v17 }
  0xe6   : > { %v1339_v19 = vpop.f32.mrb[0].mxu0 }
  0xe7   : > { %v1657_v20 = vadd.f32 %v1339_v19, %v1654_v18  ;;  %v1355_v21 = vpop.f32.mrb[0].mxu1  ;;  %v539_v22 = vpop.f32.mrb[1].mxu0 }
  0xe8   : > { %v1660_v23 = vadd.f32 %v1355_v21, %v1654_v18  ;;  %v1663_v24 = vadd.f32 %v1654_v18, %v539_v22  ;;  %v603_v25 = vpop.f32.mrb[1].mxu1  ;;  %v1340_v26 = vpop.f32.mrb[2].mxu0 }
  0xe9   : > { %v806_v27 = vand.u32 2147483647, %v1657_v20  ;;  %v1667_v28 = vadd.f32 %v1654_v18, %v603_v25  ;;  %v1670_v29 = vadd.f32 %v1340_v26, %v1654_v18  ;;  %v1356_v30 = vpop.f32.mrb[2].mxu1  ;;  %v542_v31 = vpop.f32.mrb[3].mxu0  ;;  %vm998_vm1 = vcmp.ge.f32.partialorder %v1657_v20, 0.0 }
  0xea   : > { %v822_v32 = vand.u32 2147483647, %v1660_v23  ;;  %v804_v33 = vand.u32 2147483647, %v1663_v24  ;;  %v1677_v39 = vadd.f32 %v1356_v30, %v1654_v18  ;;  %v606_v40 = vpop.f32.mrb[3].mxu1  ;;  %v1680_v44 = vadd.f32 %v1654_v18, %v542_v31 }
  0xeb   : > { %v838_v34 = vsub.f32 0.0, %v806_v27  ;;  %v820_v35 = vand.u32 2147483647, %v1667_v28  ;;  %v807_v36 = vand.u32 2147483647, %v1670_v29  ;;  %v1684_v48 = vadd.f32 %v1654_v18, %v606_v40 }
  0xec   : > { %v854_v37 = vsub.f32 0.0, %v822_v32  ;;  %v836_v38 = vsub.f32 0.0, %v804_v33  ;;  %v823_v47 = vand.u32 2147483647, %v1677_v39  ;;  %v805_v53 = vand.u32 2147483647, %v1680_v44 }
  0xed   : > { %v872_v41 = vmul.f32 1.442695, %v838_v34  ;;  %v852_v42 = vsub.f32 0.0, %v820_v35  ;;  %v839_v43 = vsub.f32 0.0, %v807_v36  ;;  %v821_v56 = vand.u32 2147483647, %v1684_v48 }
  0xee   : > { %v904_v45 = vmul.f32 1.442695, %v854_v37  ;;  %v868_v46 = vmul.f32 1.442695, %v836_v38  ;;  %v1343_v51 = vpop.f32.mrb[4].mxu0  ;;  %v855_v52 = vsub.f32 0.0, %v823_v47 }
  0xef   : > { %1415 = vpow2.f32 %v872_v41  ;;  %v900_v49 = vmul.f32 1.442695, %v852_v42  ;;  %v874_v50 = vmul.f32 1.442695, %v839_v43  ;;  %v1359_v54 = vpop.f32.mrb[4].mxu1  ;;  %v555_v55 = vpop.f32.mrb[5].mxu0  ;;  %v1689_v57 = vadd.f32 %v1343_v51, %v1654_v18 }
  0xf0   : > { %1417 = vpow2.f32 %v904_v45  ;;  %v619_v58 = vpop.f32.mrb[5].mxu1  ;;  %v1344_v59 = vpop.f32.mrb[6].mxu0  ;;  %v906_v60 = vmul.f32 1.442695, %v855_v52  ;;  %v837_v61 = vsub.f32 0.0, %v805_v53  ;;  %v1692_v62 = vadd.f32 %v1359_v54, %v1654_v18 }
  0xf1   : > { %1419 = vpow2.f32 %v868_v46  ;;  %v1360_v63 = vpop.f32.mrb[6].mxu1  ;;  %v558_v0 = vpop.f32.mrb[7].mxu0  ;;  %v853_v1 = vsub.f32 0.0, %v821_v56  ;;  %v810_v2 = vand.u32 2147483647, %v1689_v57  ;;  %v1697_v8 = vadd.f32 %v1654_v18, %v555_v55 }
  0xf2   : > { %1421 = vpow2.f32 %v900_v49  ;;  %v622_v3 = vpop.f32.mrb[7].mxu1  ;;  %v870_v4 = vmul.f32 1.442695, %v837_v61  ;;  %v826_v5 = vand.u32 2147483647, %v1692_v62  ;;  %v1700_v9 = vadd.f32 %v1654_v18, %v619_v58 }
  0xf3   : > { %1423 = vpow2.f32 %v874_v50  ;;  %v902_v6 = vmul.f32 1.442695, %v853_v1  ;;  %v842_v7 = vsub.f32 0.0, %v810_v2  ;;  %v1703_v11 = vadd.f32 %v1344_v59, %v1654_v18 }
  0xf4   : > { %1425 = vpow2.f32 %v906_v60  ;;  %v858_v10 = vsub.f32 0.0, %v826_v5  ;;  %v808_v14 = vand.u32 2147483647, %v1697_v8  ;;  %v1707_v15 = vadd.f32 %v1360_v63, %v1654_v18 }
  0xf5   : > { %1427 = vpow2.f32 %v870_v4  ;;  %v880_v13 = vmul.f32 1.442695, %v842_v7  ;;  %v824_v19 = vand.u32 2147483647, %v1700_v9  ;;  %v811_v30 = vand.u32 2147483647, %v1703_v11 }
  0xf6   : > { %v1347_v12 = vpop.f32.mrb[8].mxu0  ;;  %1429 = vpow2.f32 %v902_v6  ;;  %v912_v17 = vmul.f32 1.442695, %v858_v10  ;;  %v840_v22 = vsub.f32 0.0, %v808_v14  ;;  %v827_v35 = vand.u32 2147483647, %v1707_v15 }
  0xf7   : > { %v1363_v16 = vpop.f32.mrb[8].mxu1  ;;  %1431 = vpow2.f32 %v880_v13  ;;  %v571_v25 = vpop.f32.mrb[9].mxu0  ;;  %v856_v40 = vsub.f32 0.0, %v824_v19  ;;  %v1719_v41 = vadd.f32 %v1654_v18, %v558_v0  ;;  %v843_v51 = vsub.f32 0.0, %v811_v30 }
  0xf8   : > { %1433 = vpow2.f32 %v912_v17  ;;  %v1711_v31 = vpop.f32.mrb[9].mxu1  ;;  %v1713_v32 = vpop.f32.mrb[10].mxu0  ;;  %v876_v47 = vmul.f32 1.442695, %v840_v22  ;;  %v1729_v55 = vadd.f32 %v1654_v18, %v622_v3  ;;  %v1732_v56 = vadd.f32 %v1347_v12, %v1654_v18 }
  0xf9   : > { %v1416_v21 = vpop.eup %1415  ;;  %v1716_v36 = vpop.f32.mrb[10].mxu1  ;;  %v809_v52 = vand.u32 2147483647, %v1719_v41  ;;  %v908_v61 = vmul.f32 1.442695, %v856_v40  ;;  %v859_v63 = vsub.f32 0.0, %v827_v35  ;;  %v1740_v0 = vadd.f32 %v1363_v16, %v1654_v18 }
  0xfa   : > { %v1418_v26 = vpop.eup %1417  ;;  %v934_v27 = vadd.f32 1.0, %v1416_v21  ;;  %v1721_v42 = vpop.f32.mrb[11].mxu0  ;;  %vm1014_vm2 = vcmp.ge.f32.partialorder %v1660_v23, 0.0  ;;  %v825_v6 = vand.u32 2147483647, %v1729_v55  ;;  %vm996_vm3 = vcmp.ge.f32.partialorder %v1663_v24, 0.0 }
  0xfb   : > { %v1420_v33 = vpop.eup %1419  ;;  %v950_v34 = vadd.f32 1.0, %v1418_v26  ;;  %v1723_v43 = vpop.f32.mrb[11].mxu1  ;;  %v841_v5 = vsub.f32 0.0, %v809_v52  ;;  %v814_v13 = vand.u32 2147483647, %v1732_v56  ;;  %v1755_v14 = vadd.f32 %v1654_v18, %v571_v25 }
  0xfc   : > { %v1422_v37 = vpop.eup %1421  ;;  %1435 = vrcp.f32 %v934_v27  ;;  %v932_v38 = vadd.f32 1.0, %v1420_v33  ;;  %vm1012_vm4 = vcmp.ge.f32.partialorder %v1667_v28, 0.0  ;;  %v882_v19 = vmul.f32 1.442695, %v843_v51 }
  0xfd   : > { %v1424_v45 = vpop.eup %1423  ;;  %1437 = vrcp.f32 %v950_v34  ;;  %v948_v46 = vadd.f32 1.0, %v1422_v37  ;;  %v857_v21 = vsub.f32 0.0, %v825_v6  ;;  %v830_v22 = vand.u32 2147483647, %v1740_v0 }
  0xfe   : > { %v1426_v49 = vpop.eup %1425  ;;  %1439 = vrcp.f32 %v932_v38  ;;  %v935_v50 = vadd.f32 1.0, %v1424_v45  ;;  %v1726_v53 = vpop.f32.mrb[12].mxu0  ;;  %vm999_vm5 = vcmp.ge.f32.partialorder %v1670_v29, 0.0  ;;  %v914_v30 = vmul.f32 1.442695, %v859_v63 }
  0xff   : > { %1441 = vrcp.f32 %v948_v46  ;;  %v951_v54 = vadd.f32 1.0, %v1426_v49  ;;  %v1734_v58 = vpop.f32.mrb[12].mxu1  ;;  %v1736_v59 = vpop.f32.mrb[13].mxu0  ;;  %v846_v33 = vsub.f32 0.0, %v814_v13  ;;  %vm1015_vm6 = vcmp.ge.f32.partialorder %v1677_v39, 0.0 }
 0x100   : > { %v1428_v60 = vpop.eup %1427  ;;  %1443 = vrcp.f32 %v935_v50  ;;  %v1742_v1 = vpop.f32.mrb[13].mxu1  ;;  %v878_v34 = vmul.f32 1.442695, %v841_v5  ;;  %v862_v35 = vsub.f32 0.0, %v830_v22  ;;  %v910_v38 = vmul.f32 1.442695, %v857_v21 }
 0x101   : > { %v1744_v2 = vpop.f32.mrb[14].mxu0  ;;  %v1430_v3 = vpop.eup %1429  ;;  %1445 = vrcp.f32 %v951_v54  ;;  %v933_v4 = vadd.f32 1.0, %v1428_v60  ;;  %v888_v40 = vmul.f32 1.442695, %v846_v33  ;;  %v812_v45 = vand.u32 2147483647, %v1755_v14 }
 0x102   : > { %v1748_v7 = vpop.f32.mrb[14].mxu1  ;;  %v1750_v10 = vpop.f32.mrb[15].mxu0  ;;  %v949_v12 = vadd.f32 1.0, %v1430_v3  ;;  %1447 = vpow2.f32 %v876_v47  ;;  %vm997_vm7 = vcmp.ge.f32.partialorder %v1680_v44, 0.0  ;;  %v920_v49 = vmul.f32 1.442695, %v862_v35 }
 0x103   : > { %v1757_v16 = vpop.f32.mrb[15].mxu1  ;;  %v1432_v17 = vpop.eup %1431  ;;  %1449 = vrcp.f32 %v933_v4  ;;  %v1768_v50 = vadd.f32 %v1654_v18, %v1711_v31  ;;  %vm1013_vm8 = vcmp.ge.f32.partialorder %v1684_v48, 0.0  ;;  %v844_v54 = vsub.f32 0.0, %v812_v45 }
 0x104   : > { %v1434_v26 = vpop.eup %1433  ;;  %1451 = vrcp.f32 %v949_v12  ;;  %v938_v27 = vadd.f32 1.0, %v1432_v17  ;;  %v1773_v60 = vadd.f32 %v1713_v32, %v1654_v18  ;;  %vm1002_vm9 = vcmp.ge.f32.partialorder %v1689_v57, 0.0 }
 0x105   : > { %v954_v25 = vadd.f32 1.0, %v1434_v26  ;;  %1453 = vpow2.f32 %v908_v61  ;;  %v828_v3 = vand.u32 2147483647, %v1768_v50  ;;  %vm1018_vm10 = vcmp.ge.f32.partialorder %v1692_v62, 0.0 }
 0x106   : > { %v1436_v37 = vpop.eup %1435  ;;  %1455 = vrcp.f32 %v938_v27  ;;  %vm1000_vm11 = vcmp.ge.f32.partialorder %v1697_v8, 0.0  ;;  %vm1016_vm12 = vcmp.ge.f32.partialorder %v1700_v9, 0.0  ;;  %vm1003_vm13 = vcmp.ge.f32.partialorder %v1703_v11, 0.0 }
 0x107   : > { %v1438_v46 = vpop.eup %1437  ;;  %v1030_v47 = vsub.f32 1.0, %v1436_v37  ;;  %1457 = vrcp.f32 %v954_v25  ;;  %v860_v45 = vsub.f32 0.0, %v828_v3  ;;  %v815_v3 = vand.u32 2147483647, %v1773_v60 }
 0x108   : > { %v1440_v51 = vpop.eup %1439  ;;  %v1046_v52 = vsub.f32 1.0, %v1438_v46  ;;  %1459 = vpow2.f32 %v882_v19  ;;  %vm1019_vm14 = vcmp.ge.f32.partialorder %v1707_v15, 0.0  ;;  %vm1001_vm15 = vcmp.ge.f32.partialorder %v1719_v41, 0.0 }
 0x109   : > { %v1442_v61 = vpop.eup %1441  ;;  %v1062_v31 = vsel %vm998_vm1, %v1436_v37, %v1030_v47  ;;  %v1028_v63 = vsub.f32 1.0, %v1440_v51  ;;  %1461 = vpow2.f32 %v914_v30  ;;  %v884_v37 = vmul.f32 1.442695, %v844_v54 }
 0x10a   : > { %v1444_v4 = vpop.eup %1443  ;;  %v1094_v5 = vmul.f32 %v1062_v31, %v1657_v20  ;;  %v1078_v32 = vsel %vm1014_vm2, %v1438_v46, %v1046_v52  ;;  %v1044_v6 = vsub.f32 1.0, %v1442_v61  ;;  %1463 = vpow2.f32 %v878_v34 }
 0x10b   : > { %v1446_v12 = vpop.eup %1445  ;;  %v1110_v13 = vmul.f32 %v1078_v32, %v1660_v23  ;;  %v1060_v17 = vsel %vm996_vm3, %v1440_v51, %v1028_v63  ;;  %v1031_v19 = vsub.f32 1.0, %v1444_v4  ;;  %1465 = vpow2.f32 %v910_v38 }
 0x10c   : > { %v1448_v21 = vpop.eup %1447  ;;  %1126 = vst [vmem:[%s1778_s30 + $0x10] sm:$0xff] %v1094_v5  ;;  %v1092_v22 = vmul.f32 %v1060_v17, %v1663_v24  ;;  %v1076_v20 = vsel %vm1012_vm4, %v1442_v61, %v1044_v6  ;;  %v1047_v26 = vsub.f32 1.0, %v1446_v12  ;;  %1467 = vpow2.f32 %v888_v40 }
 0x10d   : > { %v1450_v27 = vpop.eup %1449  ;;  %1142 = vst [vmem:[%s1778_s30 + $0x90] sm:$0xff] %v1110_v13  ;;  %v1108_v23 = vmul.f32 %v1076_v20, %v1667_v28  ;;  %v1063_v30 = vsel %vm999_vm5, %v1444_v4, %v1031_v19  ;;  %v936_v33 = vadd.f32 1.0, %v1448_v21  ;;  %1469 = vpow2.f32 %v920_v49 }
 0x10e   : > { %v1452_v25 = vpop.eup %1451  ;;  %1124 = vst [vmem:[%s1778_s30] sm:$0xff] %v1092_v22  ;;  %v1095_v24 = vmul.f32 %v1063_v30, %v1670_v29  ;;  %v1079_v34 = vsel %vm1015_vm6, %v1446_v12, %v1047_v26  ;;  %v1029_v35 = vsub.f32 1.0, %v1450_v27  ;;  %v916_v54 = vmul.f32 1.442695, %v860_v45 }
 0x10f   : > { %v1454_v38 = vpop.eup %1453  ;;  %1140 = vst [vmem:[%s1778_s30 + $0x80] sm:$0xff] %v1108_v23  ;;  %v1111_v28 = vmul.f32 %v1079_v34, %v1677_v39  ;;  %v1045_v40 = vsub.f32 1.0, %v1452_v25  ;;  %1471 = vrcp.f32 %v936_v33  ;;  %v847_v13 = vsub.f32 0.0, %v815_v3 }
 0x110   : > { %v1456_v46 = vpop.eup %1455  ;;  %1127 = vst [vmem:[%s1778_s30 + $0x18] sm:$0xff] %v1095_v24  ;;  %v1061_v47 = vsel %vm997_vm7, %v1450_v27, %v1029_v35  ;;  %v952_v29 = vadd.f32 1.0, %v1454_v38  ;;  %1473 = vpow2.f32 %v884_v37  ;;  %v1822_v22 = vadd.f32 %v1716_v36, %v1654_v18 }
 0x111   : > { %v1458_v49 = vpop.eup %1457  ;;  %1143 = vst [vmem:[%s1778_s30 + $0x98] sm:$0xff] %v1111_v28  ;;  %v1093_v51 = vmul.f32 %v1061_v47, %v1680_v44  ;;  %v1077_v39 = vsel %vm1013_vm8, %v1452_v25, %v1045_v40  ;;  %v1034_v52 = vsub.f32 1.0, %v1456_v46  ;;  %v890_v23 = vmul.f32 1.442695, %v847_v13 }
 0x112   : > { %v1460_v61 = vpop.eup %1459  ;;  %v1109_v31 = vmul.f32 %v1077_v39, %v1684_v48  ;;  %v1050_v63 = vsub.f32 1.0, %v1458_v49  ;;  %1475 = vrcp.f32 %v952_v29  ;;  %v831_v30 = vand.u32 2147483647, %v1822_v22 }
 0x113   : > { %v1462_v4 = vpop.eup %1461  ;;  %1125 = vst [vmem:[%s1778_s30 + $0x8] sm:$0xff] %v1093_v51  ;;  %v1066_v5 = vsel %vm1002_vm9, %v1456_v46, %v1034_v52  ;;  %v939_v44 = vadd.f32 1.0, %v1460_v61  ;;  %1477 = vpow2.f32 %v916_v54  ;;  %v1841_v34 = vadd.f32 %v1726_v53, %v1654_v18 }
 0x114   : > { %v1464_v32 = vpop.eup %1463  ;;  %1141 = vst [vmem:[%s1778_s30 + $0x88] sm:$0xff] %v1109_v31  ;;  %v1098_v6 = vmul.f32 %v1066_v5, %v1689_v57  ;;  %v1082_v48 = vsel %vm1018_vm10, %v1458_v49, %v1050_v63  ;;  %v955_v12 = vadd.f32 1.0, %v1462_v4  ;;  %v1828_v57 = vadd.f32 %v1654_v18, %v1721_v42 }
 0x115   : > { %v1466_v17 = vpop.eup %1465  ;;  %v1114_v19 = vmul.f32 %v1082_v48, %v1692_v62  ;;  %1479 = vrcp.f32 %v939_v44  ;;  %v937_v21 = vadd.f32 1.0, %v1464_v32  ;;  %v863_v24 = vsub.f32 0.0, %v831_v30 }
 0x116   : > { %v1468_v20 = vpop.eup %1467  ;;  %1130 = vst [vmem:[%s1778_s30 + $0x30] sm:$0xff] %v1098_v6  ;;  %1481 = vrcp.f32 %v955_v12  ;;  %v953_v26 = vadd.f32 1.0, %v1466_v17  ;;  %v813_v33 = vand.u32 2147483647, %v1828_v57  ;;  %v1837_v42 = vadd.f32 %v1654_v18, %v1723_v43 }
 0x117   : > { %v1470_v27 = vpop.eup %1469  ;;  %1146 = vst [vmem:[%s1778_s30 + $0xb0] sm:$0xff] %v1114_v19  ;;  %1483 = vrcp.f32 %v937_v21  ;;  %v942_v62 = vadd.f32 1.0, %v1468_v20  ;;  %v1846_v28 = vadd.f32 %v1734_v58, %v1654_v18  ;;  %v922_v43 = vmul.f32 1.442695, %v863_v24 }
 0x118   : > { %1485 = vrcp.f32 %v953_v26  ;;  %v958_v36 = vadd.f32 1.0, %v1470_v27  ;;  %v845_v38 = vsub.f32 0.0, %v813_v33  ;;  %v829_v45 = vand.u32 2147483647, %v1837_v42 }
 0x119   : > { %v1472_v25 = vpop.eup %1471  ;;  %1487 = vrcp.f32 %v942_v62  ;;  %vm1017_vm0 = vcmp.ge.f32.partialorder %v1729_v55, 0.0  ;;  %v818_v29 = vand.u32 2147483647, %v1841_v34  ;;  %vm1006_vm1 = vcmp.ge.f32.partialorder %v1732_v56, 0.0 }
 0x11a   : > { %v1474_v35 = vpop.eup %1473  ;;  %v1032_v37 = vsub.f32 1.0, %v1472_v25  ;;  %1489 = vrcp.f32 %v958_v36  ;;  %v886_v47 = vmul.f32 1.442695, %v845_v38  ;;  %v861_v39 = vsub.f32 0.0, %v829_v45 }
 0x11b   : > { %v940_v40 = vadd.f32 1.0, %v1474_v35  ;;  %1491 = vpow2.f32 %v890_v23  ;;  %v850_v54 = vsub.f32 0.0, %v818_v29  ;;  %v834_v3 = vand.u32 2147483647, %v1846_v28 }
 0x11c   : > { %v1476_v53 = vpop.eup %1475  ;;  %v1064_v46 = vsel %vm1000_vm11, %v1472_v25, %v1032_v37  ;;  %v918_v63 = vmul.f32 1.442695, %v861_v39  ;;  %vm1022_vm2 = vcmp.ge.f32.partialorder %v1740_v0, 0.0  ;;  %v1890_v45 = vadd.f32 %v1654_v18, %v1742_v1 }
 0x11d   : > { %v1478_v49 = vpop.eup %1477  ;;  %v1096_v58 = vmul.f32 %v1064_v46, %v1697_v8  ;;  %v1048_v51 = vsub.f32 1.0, %v1476_v53  ;;  %1493 = vrcp.f32 %v940_v40  ;;  %v896_v44 = vmul.f32 1.442695, %v850_v54 }
 0x11e   : > { %v956_v52 = vadd.f32 1.0, %v1478_v49  ;;  %1495 = vpow2.f32 %v922_v43  ;;  %v866_v48 = vsub.f32 0.0, %v834_v3  ;;  %vm1004_vm3 = vcmp.ge.f32.partialorder %v1755_v14, 0.0 }
 0x11f   : > { %v1480_v61 = vpop.eup %1479  ;;  %1128 = vst [vmem:[%s1778_s30 + $0x20] sm:$0xff] %v1096_v58  ;;  %v1080_v31 = vsel %vm1016_vm12, %v1476_v53, %v1048_v51  ;;  %1497 = vpow2.f32 %v886_v47  ;;  %v832_v49 = vand.u32 2147483647, %v1890_v45  ;;  %v1899_v58 = vadd.f32 %v1744_v2, %v1654_v18 }
 0x120   : > { %v1482_v4 = vpop.eup %1481  ;;  %v1112_v8 = vmul.f32 %v1080_v31, %v1700_v9  ;;  %v1035_v5 = vsub.f32 1.0, %v1480_v61  ;;  %1499 = vrcp.f32 %v956_v52  ;;  %v1867_v9 = vadd.f32 %v1654_v18, %v1736_v59 }
 0x121   : > { %v1484_v32 = vpop.eup %1483  ;;  %v1051_v6 = vsub.f32 1.0, %v1482_v4  ;;  %1501 = vpow2.f32 %v918_v63  ;;  %v928_v27 = vmul.f32 1.442695, %v866_v48  ;;  %v864_v31 = vsub.f32 0.0, %v832_v49 }
 0x122   : > { %v1486_v12 = vpop.eup %1485  ;;  %1144 = vst [vmem:[%s1778_s30 + $0xa0] sm:$0xff] %v1112_v8  ;;  %v1067_v13 = vsel %vm1003_vm13, %v1480_v61, %v1035_v5  ;;  %v1033_v17 = vsub.f32 1.0, %v1484_v32  ;;  %1503 = vpow2.f32 %v896_v44  ;;  %v816_v59 = vand.u32 2147483647, %v1867_v9 }
 0x123   : > { %v1488_v19 = vpop.eup %1487  ;;  %v1099_v21 = vmul.f32 %v1067_v13, %v1703_v11  ;;  %v1083_v20 = vsel %vm1019_vm14, %v1482_v4, %v1051_v6  ;;  %v1049_v26 = vsub.f32 1.0, %v1486_v12  ;;  %1505 = vpow2.f32 %v928_v27 }
 0x124   : > { %v1490_v62 = vpop.eup %1489  ;;  %v1115_v23 = vmul.f32 %v1083_v20, %v1707_v15  ;;  %v1065_v30 = vsel %vm1001_vm15, %v1484_v32, %v1033_v17  ;;  %v1038_v36 = vsub.f32 1.0, %v1488_v19  ;;  %v848_v38 = vsub.f32 0.0, %v816_v59 }
 0x125   : > { %v1492_v33 = vpop.eup %1491  ;;  %1131 = vst [vmem:[%s1778_s30 + $0x38] sm:$0xff] %v1099_v21  ;;  %v1097_v11 = vmul.f32 %v1065_v30, %v1719_v41  ;;  %v1081_v25 = vsel %vm1017_vm0, %v1486_v12, %v1049_v26  ;;  %v1054_v24 = vsub.f32 1.0, %v1490_v62  ;;  %vm1020_vm4 = vcmp.ge.f32.partialorder %v1768_v50, 0.0 }
 0x126   : > { %1147 = vst [vmem:[%s1778_s30 + $0xb8] sm:$0xff] %v1115_v23  ;;  %v1113_v15 = vmul.f32 %v1081_v25, %v1729_v55  ;;  %v1070_v35 = vsel %vm1006_vm1, %v1488_v19, %v1038_v36  ;;  %v943_v37 = vadd.f32 1.0, %v1492_v33  ;;  %v892_v47 = vmul.f32 1.442695, %v848_v38 }
 0x127   : > { %v1494_v40 = vpop.eup %1493  ;;  %1129 = vst [vmem:[%s1778_s30 + $0x28] sm:$0xff] %v1097_v11  ;;  %v1102_v43 = vmul.f32 %v1070_v35, %v1732_v56  ;;  %v1086_v41 = vsel %vm1022_vm2, %v1490_v62, %v1054_v24  ;;  %v819_v3 = vand.u32 2147483647, %v1899_v58  ;;  %v924_v5 = vmul.f32 1.442695, %v864_v31 }
 0x128   : > { %v1496_v53 = vpop.eup %1495  ;;  %1145 = vst [vmem:[%s1778_s30 + $0xa8] sm:$0xff] %v1113_v15  ;;  %v1118_v55 = vmul.f32 %v1086_v41, %v1740_v0  ;;  %v1036_v46 = vsub.f32 1.0, %v1494_v40  ;;  %1507 = vrcp.f32 %v943_v37  ;;  %v1904_v0 = vadd.f32 %v1748_v7, %v1654_v18 }
 0x129   : > { %v1498_v29 = vpop.eup %1497  ;;  %1134 = vst [vmem:[%s1778_s30 + $0x50] sm:$0xff] %v1102_v43  ;;  %v959_v56 = vadd.f32 1.0, %v1496_v53  ;;  %1509 = vpow2.f32 %v892_v47  ;;  %v1914_v48 = vadd.f32 %v1654_v18, %v1750_v10  ;;  %v1918_v12 = vadd.f32 %v1654_v18, %v1757_v16 }
 0x12a   : > { %v1500_v1 = vpop.eup %1499  ;;  %1150 = vst [vmem:[%s1778_s30 + $0xd0] sm:$0xff] %v1118_v55  ;;  %v1068_v51 = vsel %vm1004_vm3, %v1494_v40, %v1036_v46  ;;  %v941_v39 = vadd.f32 1.0, %v1498_v29  ;;  %v835_v7 = vand.u32 2147483647, %v1904_v0  ;;  %vm1007_vm5 = vcmp.ge.f32.partialorder %v1773_v60, 0.0 }
 0x12b   : > { %v1502_v52 = vpop.eup %1501  ;;  %v1100_v54 = vmul.f32 %v1068_v51, %v1755_v14  ;;  %v1052_v61 = vsub.f32 1.0, %v1500_v1  ;;  %1511 = vrcp.f32 %v959_v56  ;;  %v851_v14 = vsub.f32 0.0, %v819_v3 }
 0x12c   : > { %v1504_v63 = vpop.eup %1503  ;;  %1513 = vrcp.f32 %v941_v39  ;;  %v957_v2 = vadd.f32 1.0, %v1502_v52  ;;  %v867_v6 = vsub.f32 0.0, %v835_v7  ;;  %v833_v20 = vand.u32 2147483647, %v1918_v12 }
 0x12d   : > { %1132 = vst [vmem:[%s1778_s30 + $0x40] sm:$0xff] %v1100_v54  ;;  %v1084_v4 = vsel %vm1020_vm4, %v1500_v1, %v1052_v61  ;;  %v946_v8 = vadd.f32 1.0, %v1504_v63  ;;  %v1506_v32 = vpop.eup %1505  ;;  %v898_v17 = vmul.f32 1.442695, %v851_v14  ;;  %vm1023_vm6 = vcmp.ge.f32.partialorder %v1822_v22, 0.0 }
 0x12e   : > { %v1116_v44 = vmul.f32 %v1084_v4, %v1768_v50  ;;  %1515 = vrcp.f32 %v957_v2  ;;  %v962_v13 = vadd.f32 1.0, %v1506_v32  ;;  %v930_v19 = vmul.f32 1.442695, %v867_v6 }
 0x12f   : > { %1517 = vrcp.f32 %v946_v8  ;;  %v817_v50 = vand.u32 2147483647, %v1914_v48  ;;  %v865_v18 = vsub.f32 0.0, %v833_v20  ;;  %vm1005_vm7 = vcmp.ge.f32.partialorder %v1828_v57, 0.0 }
 0x130   : > { %1148 = vst [vmem:[%s1778_s30 + $0xc0] sm:$0xff] %v1116_v44  ;;  %1519 = vpow2.f32 %v924_v5  ;;  %vm1021_vm8 = vcmp.ge.f32.partialorder %v1837_v42, 0.0  ;;  %vm1010_vm9 = vcmp.ge.f32.partialorder %v1841_v34, 0.0  ;;  %vm1026_vm10 = vcmp.ge.f32.partialorder %v1846_v28, 0.0 }
 0x131   : > { %1521 = vrcp.f32 %v962_v13  ;;  %v849_v27 = vsub.f32 0.0, %v817_v50  ;;  %v926_v11 = vmul.f32 1.442695, %v865_v18  ;;  %vm1008_vm11 = vcmp.ge.f32.partialorder %v1867_v9, 0.0 }
 0x132   : > { %v1508_v21 = vpop.eup %1507  ;;  %1523 = vpow2.f32 %v898_v17  ;;  %vm1024_vm12 = vcmp.ge.f32.partialorder %v1890_v45, 0.0  ;;  %vm1011_vm13 = vcmp.ge.f32.partialorder %v1899_v58, 0.0  ;;  %vm1027_vm14 = vcmp.ge.f32.partialorder %v1904_v0, 0.0 }
 0x133   : > { %v1039_v26 = vsub.f32 1.0, %v1508_v21  ;;  %v1510_v10 = vpop.eup %1509  ;;  %1525 = vpow2.f32 %v930_v19  ;;  %v894_v30 = vmul.f32 1.442695, %v849_v27  ;;  %vm1009_vm15 = vcmp.ge.f32.partialorder %v1914_v48, 0.0 }
 0x134   : > { %v944_v23 = vadd.f32 1.0, %v1510_v10  ;;  %vm1025_vm0 = vcmp.ge.f32.partialorder %v1918_v12, 0.0 }
 0x135   : > { %v1512_v16 = vpop.eup %1511  ;;  %v1071_v62 = vsel %vm1007_vm5, %v1508_v21, %v1039_v26 }
 0x136   : > { %v1514_v36 = vpop.eup %1513  ;;  %v1103_v59 = vmul.f32 %v1071_v62, %v1773_v60  ;;  %v1055_v33 = vsub.f32 1.0, %v1512_v16  ;;  %1527 = vrcp.f32 %v944_v23 }
 0x137   : > { %v1037_v25 = vsub.f32 1.0, %v1514_v36  ;;  %1529 = vpow2.f32 %v894_v30 }
 0x138   : > { %v1516_v24 = vpop.eup %1515  ;;  %1135 = vst [vmem:[%s1778_s30 + $0x58] sm:$0xff] %v1103_v59  ;;  %v1087_v15 = vsel %vm1023_vm6, %v1512_v16, %v1055_v33  ;;  %1531 = vpow2.f32 %v926_v11 }
 0x139   : > { %v1518_v35 = vpop.eup %1517  ;;  %v1119_v37 = vmul.f32 %v1087_v15, %v1822_v22  ;;  %v1069_v38 = vsel %vm1005_vm7, %v1514_v36, %v1037_v25  ;;  %v1053_v40 = vsub.f32 1.0, %v1516_v24 }
 0x13a   : > { %v1520_v60 = vpop.eup %1519  ;;  %v1101_v43 = vmul.f32 %v1069_v38, %v1828_v57  ;;  %v1042_v41 = vsub.f32 1.0, %v1518_v35 }
 0x13b   : > { %1151 = vst [vmem:[%s1778_s30 + $0xd8] sm:$0xff] %v1119_v37  ;;  %v1085_v53 = vsel %vm1021_vm8, %v1516_v24, %v1053_v40  ;;  %v960_v55 = vadd.f32 1.0, %v1520_v60  ;;  %v1522_v46 = vpop.eup %1521 }
 0x13c   : > { %1133 = vst [vmem:[%s1778_s30 + $0x48] sm:$0xff] %v1101_v43  ;;  %v1117_v22 = vmul.f32 %v1085_v53, %v1837_v42  ;;  %v1074_v47 = vsel %vm1010_vm9, %v1518_v35, %v1042_v41  ;;  %v1524_v29 = vpop.eup %1523  ;;  %v1058_v57 = vsub.f32 1.0, %v1522_v46 }
 0x13d   : > { %v1106_v56 = vmul.f32 %v1074_v47, %v1841_v34  ;;  %1533 = vrcp.f32 %v960_v55  ;;  %v1526_v49 = vpop.eup %1525  ;;  %v947_v1 = vadd.f32 1.0, %v1524_v29 }
 0x13e   : > { %1149 = vst [vmem:[%s1778_s30 + $0xc8] sm:$0xff] %v1117_v22  ;;  %v1090_v51 = vsel %vm1026_vm10, %v1522_v46, %v1058_v57  ;;  %v963_v39 = vadd.f32 1.0, %v1526_v49 }
 0x13f   : > { %1138 = vst [vmem:[%s1778_s30 + $0x70] sm:$0xff] %v1106_v56  ;;  %v1122_v52 = vmul.f32 %v1090_v51, %v1846_v28  ;;  %1535 = vrcp.f32 %v947_v1 }
 0x140   : > { %v1528_v42 = vpop.eup %1527  ;;  %1537 = vrcp.f32 %v963_v39 }
 0x141   : > { %v1530_v54 = vpop.eup %1529  ;;  %1154 = vst [vmem:[%s1778_s30 + $0xf0] sm:$0xff] %v1122_v52  ;;  %v1040_v61 = vsub.f32 1.0, %v1528_v42 }
 0x142   : > { %v1532_v34 = vpop.eup %1531  ;;  %v945_v31 = vadd.f32 1.0, %v1530_v54 }
 0x143   : > { %v1072_v63 = vsel %vm1008_vm11, %v1528_v42, %v1040_v61  ;;  %v961_v2 = vadd.f32 1.0, %v1532_v34 }
 0x144   : > { %v1104_v3 = vmul.f32 %v1072_v63, %v1867_v9  ;;  %1539 = vrcp.f32 %v945_v31 }
 0x145   : > { %1541 = vrcp.f32 %v961_v2 }
 0x146   : > { %1136 = vst [vmem:[%s1778_s30 + $0x60] sm:$0xff] %v1104_v3 }
 0x147   : > { %v1534_v4 = vpop.eup %1533 }
 0x148   : > { %v1056_v28 = vsub.f32 1.0, %v1534_v4 }
 0x149   : > { %v1536_v8 = vpop.eup %1535 }
 0x14a   : > { %v1088_v5 = vsel %vm1024_vm12, %v1534_v4, %v1056_v28  ;;  %v1538_v7 = vpop.eup %1537  ;;  %v1043_v14 = vsub.f32 1.0, %v1536_v8 }
 0x14b   : > { %v1120_v44 = vmul.f32 %v1088_v5, %v1890_v45  ;;  %v1059_v32 = vsub.f32 1.0, %v1538_v7 }
 0x14c   : > { %v1075_v9 = vsel %vm1011_vm13, %v1536_v8, %v1043_v14 }
 0x14d   : > { %1152 = vst [vmem:[%s1778_s30 + $0xe0] sm:$0xff] %v1120_v44  ;;  %v1107_v6 = vmul.f32 %v1075_v9, %v1899_v58  ;;  %v1091_v13 = vsel %vm1027_vm14, %v1538_v7, %v1059_v32 }
 0x14e   : > { %v1540_v17 = vpop.eup %1539  ;;  %v1123_v19 = vmul.f32 %v1091_v13, %v1904_v0 }
 0x14f   : > { %v1542_v50 = vpop.eup %1541  ;;  %1139 = vst [vmem:[%s1778_s30 + $0x78] sm:$0xff] %v1107_v6  ;;  %v1041_v21 = vsub.f32 1.0, %v1540_v17 }
 0x150   : > { %1155 = vst [vmem:[%s1778_s30 + $0xf8] sm:$0xff] %v1123_v19  ;;  %v1057_v45 = vsub.f32 1.0, %v1542_v50 }
 0x151   : > { %v1073_v20 = vsel %vm1009_vm15, %v1540_v17, %v1041_v21 }
 0x152   : > { %v1105_v26 = vmul.f32 %v1073_v20, %v1914_v48  ;;  %v1089_v27 = vsel %vm1025_vm0, %v1542_v50, %v1057_v45 }
 0x153   : > { %v1121_v58 = vmul.f32 %v1089_v27, %v1918_v12 }
 0x154   : > { %1137 = vst [vmem:[%s1778_s30 + $0x68] sm:$0xff] %v1105_v26 }
 0x155   : > { %1153 = vst [vmem:[%s1778_s30 + $0xe8] sm:$0xff] %v1121_v58 }
 0x156 PF: > { %s13_s14 = sadd.s32 1, %s1565_s14   ;;  %s1972_s12 = smov %s1561_s13 }
 0x157   : > { %p10_p5 = scmp.ge.s32.totalorder %s13_s14, 4   ;;  %s1973_s13 = smov %s1975_s15 }
 0x159   :  { %12 = sbr.rel (!%p10_p5) target bundleno = 2 (0x2), region = 76 }

// kernel: _net_forward_padded.11
= control target key start
LH: loop header
LB: loop body
LE: loop exit
PB: predicated region body
PF: predicated region fallthrough
CT: control target
= control target key end

     0   :  { %vm347_vm0 = vcmask 261120   ;;  %s1424_s1 = inlined_call_operand.vmem [shape: bf16[288,128], index: 1, kind: input, shape index: {}]   ;;  %s1425_s0 = inlined_call_operand.vmem [shape: bf16[128,288], index: 0, kind: input, shape index: {}]   ;;  %s1426_s2 = inlined_call_operand.vmem [shape: f32[1,128], index: 2, kind: input, shape index: {}]   ;;  %s1427_s3 = inlined_call_operand.vmem [shape: f32[128,128], index: 3, kind: output, shape index: {}]  }
   0x1   :  { %v981_v0 = vld [vmem:[%s1424_s1 + $0x40] sm:$0xff]   ;;  %v983_v2 = vld [vmem:[%s1424_s1 + $0x48] sm:$0xff]   ;;  %v985_v4 = vld [vmem:[%s1424_s1 + $0x50] sm:$0xff]  }
   0x2   :  { %v982_v1 = vld [vmem:[%s1424_s1] sm:$0xff]   ;;  %871 = vmatprep.subr.bf16.mxu0 %v981_v0  ;;  %965 = vmatprep.subr.bf16.mxu1 %v981_v0  ;;  %v984_v3 = vld [vmem:[%s1424_s1 + $0x8] sm:$0xff]   ;;  %v986_v5 = vld [vmem:[%s1424_s1 + $0x10] sm:$0xff]  }
   0x3   :  { %872 = vmatpush3.bf16.msra.mxu0 %v982_v1  ;;  %973 = vmatpush3.bf16.msra.mxu1 %v982_v1  ;;  %v987_v6 = vld [vmem:[%s1424_s1 + $0x58] sm:$0xff]   ;;  %v989_v8 = vld [vmem:[%s1424_s1 + $0x60] sm:$0xff]   ;;  %v991_v10 = vld [vmem:[%s1424_s1 + $0x68] sm:$0xff]  }
   0x4   :  { %873 = vmatprep.subr.bf16.mxu0 %v983_v2  ;;  %966 = vmatprep.subr.bf16.mxu1 %v983_v2  ;;  %v988_v7 = vld [vmem:[%s1424_s1 + $0x18] sm:$0xff]   ;;  %v990_v9 = vld [vmem:[%s1424_s1 + $0x20] sm:$0xff]   ;;  %v992_v13 = vld [vmem:[%s1424_s1 + $0x28] sm:$0xff]  }
   0x5   :  { %v999_v11 = vld [vmem:[%s1425_s0 + $0x4] ss:$12 sps:$4 sm:$0xff]   ;;  %v1002_v12 = vld [vmem:[%s1425_s0 + $0x94] ss:$12 sps:$4 sm:$0xff]   ;;  %v995_v16 = vld [vmem:[%s1424_s1 + $0x78] sm:$0xff]  }
   0x6   :  { %v993_v14 = vld [vmem:[%s1424_s1 + $0x70] sm:$0xff]   ;;  %404 = vmatprep.mubr.bf16.mxu0 %v999_v11  ;;  %452 = vmatprep.mubr.bf16.mxu1 %v1002_v12  ;;  %v996_v17 = vld [vmem:[%s1424_s1 + $0x38] sm:$0xff]   ;;  %v997_v18 = vld [vmem:[%s1425_s0] ss:$12 sps:$4 sm:$0xff]  }
   0x7   :  { %874 = vmatpush3.bf16.msra.mxu0 %v984_v3  ;;  %974 = vmatpush3.bf16.msra.mxu1 %v984_v3  ;;  %v994_v15 = vld [vmem:[%s1424_s1 + $0x30] sm:$0xff]   ;;  %v1003_v19 = vld [vmem:[%s1424_s1 + $0x80] sm:$0xff]   ;;  %v1004_v21 = vld [vmem:[%s1425_s0 + $0x1c] ss:$12 sps:$4 sm:$0xff]  }
   0x8   :  { %875 = vmatprep.subr.bf16.mxu0 %v985_v4  ;;  %967 = vmatprep.subr.bf16.mxu1 %v985_v4  ;;  %v1000_v20 = vld [vmem:[%s1425_s0 + $0x90] ss:$12 sps:$4 sm:$0xff]   ;;  %v1006_v22 = vld [vmem:[%s1425_s0 + $0xac] ss:$12 sps:$4 sm:$0xff]   ;;  %v1009_v25 = vld [vmem:[%s1425_s0 + $0xa8] ss:$12 sps:$4 sm:$0xff]  }
   0x9   :  { %v1010_v23 = vld [vmem:[%s1424_s1 + $0x88] sm:$0xff]   ;;  %v1008_v24 = vld [vmem:[%s1425_s0 + $0x18] ss:$12 sps:$4 sm:$0xff]   ;;  %v1011_v26 = vld [vmem:[%s1425_s0 + $0x34] ss:$12 sps:$4 sm:$0xff]  }
   0xa   :  { %v1013_v27 = vld [vmem:[%s1425_s0 + $0x8] ss:$12 sps:$4 sm:$0xff]   ;;  %v1014_v28 = vld [vmem:[%s1425_s0 + $0x30] ss:$12 sps:$4 sm:$0xff]   ;;  %v1015_v29 = vld [vmem:[%s1425_s0 + $0x20] ss:$12 sps:$4 sm:$0xff]  }
   0xb   :  { %876 = vmatpush3.bf16.msra.mxu0 %v986_v5  ;;  %975 = vmatpush3.bf16.msra.mxu1 %v986_v5  ;;  %v1016_v30 = vld [vmem:[%s1425_s0 + $0x4c] ss:$12 sps:$4 sm:$0xff]   ;;  %v1019_v32 = vld [vmem:[%s1425_s0 + $0x48] ss:$12 sps:$4 sm:$0xff]   ;;  %v1020_v33 = vld [vmem:[%s1425_s0 + $0x50] ss:$12 sps:$4 sm:$0xff]  }
   0xc   :  { %877 = vmatprep.subr.bf16.mxu0 %v987_v6  ;;  %968 = vmatprep.subr.bf16.mxu1 %v987_v6  ;;  %v1018_v31 = vld [vmem:[%s1425_s0 + $0x38] ss:$12 sps:$4 sm:$0xff]   ;;  %v1023_v35 = vld [vmem:[%s1425_s0 + $0x68] ss:$12 sps:$4 sm:$0xff]   ;;  %v1024_v36 = vld [vmem:[%s1425_s0 + $0x60] ss:$12 sps:$4 sm:$0xff]  }
   0xd   :  { %v1021_v34 = vld [vmem:[%s1425_s0 + $0x64] ss:$12 sps:$4 sm:$0xff]   ;;  %v1025_v37 = vld [vmem:[%s1425_s0 + $0x80] ss:$12 sps:$4 sm:$0xff]   ;;  %v1026_v38 = vld [vmem:[%s1425_s0 + $0x7c] ss:$12 sps:$4 sm:$0xff]  }
   0xe   :  { %v1028_v39 = vld [vmem:[%s1425_s0 + $0x98] ss:$12 sps:$4 sm:$0xff]   ;;  %v1030_v41 = vld [vmem:[%s1425_s0 + $0xb0] ss:$12 sps:$4 sm:$0xff]   ;;  %v1260_v4 = vld [vmem:[%s1426_s2] ss:$0 sm:$0xff] }
   0xf   :  { %878 = vmatpush3.bf16.msra.mxu0 %v988_v7  ;;  %976 = vmatpush3.bf16.msra.mxu1 %v988_v7  ;;  %v1029_v40 = vld [vmem:[%s1425_s0 + $0x78] ss:$12 sps:$4 sm:$0xff]  }
  0x10   :  { %879 = vmatprep.subr.bf16.mxu0 %v989_v8  ;;  %969 = vmatprep.subr.bf16.mxu1 %v989_v8 }
  0x13   :  { %880 = vmatpush3.bf16.msra.mxu0 %v990_v9  ;;  %977 = vmatpush3.bf16.msra.mxu1 %v990_v9 }
  0x14   :  { %881 = vmatprep.subr.bf16.mxu0 %v991_v10  ;;  %970 = vmatprep.subr.bf16.mxu1 %v991_v10 }
  0x17   :  { %882 = vmatpush3.bf16.msra.mxu0 %v992_v13  ;;  %978 = vmatpush3.bf16.msra.mxu1 %v992_v13 }
  0x18   :  { %883 = vmatprep.subr.bf16.mxu0 %v993_v14  ;;  %971 = vmatprep.subr.bf16.mxu1 %v993_v14 }
  0x1b   :  { %884 = vmatpush3.bf16.msra.mxu0 %v994_v15  ;;  %979 = vmatpush3.bf16.msra.mxu1 %v994_v15 }
  0x1c   :  { %885 = vmatprep.subr.bf16.mxu0 %v995_v16  ;;  %972 = vmatprep.subr.bf16.mxu1 %v995_v16 }
  0x1f   :  { %886 = vmatpush3.bf16.msra.mxu0 %v996_v17  ;;  %980 = vmatpush3.bf16.msra.mxu1 %v996_v17 }
  0x20   :  { %945 = vmatprep.subr.bf16.mxu1 %v1003_v19 }
  0x22   :  { %405 = vmatmul.mubr.bf16.vlgmr.msra.gmra.mrb[0].mxu0 %v997_v18  ;;  %453 = vmatmul.mubr.bf16.vlgmr.msra.gmra.mrb[0].mxu1 %v1000_v20 }
  0x23   :  { %946 = vmatpush3.bf16.msra.mxu1 %v1003_v19  ;;  %412 = vmatprep.mubr.bf16.mxu0 %v1004_v21 }
  0x24   :  { %460 = vmatprep.mubr.bf16.mxu1 %v1006_v22  ;;  %947 = vmatprep.subr.bf16.mxu1 %v1010_v23 }
  0x27   :  { %948 = vmatpush3.bf16.msra.mxu1 %v1010_v23 }
  0x2a   :  { %413 = vmatmul.mubr.bf16.gmra.mrb[4].mxu0 %v1008_v24  ;;  %461 = vmatmul.mubr.bf16.gmra.mrb[4].mxu1 %v1009_v25 }
  0x2b   :  { %420 = vmatprep.mubr.bf16.mxu0 %v1011_v26  ;;  %949 = vmatprep.mubr.msk.bf16.mxu1 %vm347_vm0, %v1013_v27 }
  0x32   :  { %421 = vmatmul.mubr.bf16.gmra.mrb[8].mxu0 %v1014_v28  ;;  %950 = vmatmul.mubr.msk.bf16.vlgmr.msra.gmra.mrb[8].mxu1 %vm347_vm0, %v1015_v29 }
  0x33   :  { %428 = vmatprep.mubr.bf16.mxu0 %v1016_v30  ;;  %953 = vmatprep.mubr.msk.bf16.mxu1 %vm347_vm0, %v1018_v31 }
  0x3a   :  { %429 = vmatmul.mubr.bf16.gmra.mrb[12].mxu0 %v1019_v32  ;;  %954 = vmatmul.mubr.msk.bf16.gmra.mrb[12].mxu1 %vm347_vm0, %v1020_v33 }
  0x3b   :  { %436 = vmatprep.mubr.bf16.mxu0 %v1021_v34  ;;  %957 = vmatprep.mubr.msk.bf16.mxu1 %vm347_vm0, %v1023_v35 }
  0x42   :  { %437 = vmatmul.mubr.bf16.gmra.mrb[16].mxu0 %v1024_v36  ;;  %958 = vmatmul.mubr.msk.bf16.gmra.mrb[16].mxu1 %vm347_vm0, %v1025_v37 }
  0x43   :  { %444 = vmatprep.mubr.bf16.mxu0 %v1026_v38  ;;  %961 = vmatprep.mubr.msk.bf16.mxu1 %vm347_vm0, %v1028_v39 }
  0x4a   :  { %445 = vmatmul.mubr.bf16.gmra.mrb[20].mxu0 %v1029_v40  ;;  %962 = vmatmul.mubr.msk.bf16.gmra.mrb[20].mxu1 %vm347_vm0, %v1030_v41 }
  0xf5   :  { %v887_v42 = vpop.f32.mrb[0].mxu0  ;;  %v923_v43 = vpop.f32.mrb[0].mxu1 }
  0xf6   :  { %v888_v44 = vpop.f32.mrb[1].mxu0  ;;  %v924_v45 = vpop.f32.mrb[1].mxu1 }
  0xf7   :  { %v889_v46 = vadd.f32 %v888_v44, %v887_v42  ;;  %v1249_v47 = vadd.f32 %v924_v45, %v923_v43  ;;  %v890_v48 = vpop.f32.mrb[2].mxu0  ;;  %v926_v49 = vpop.f32.mrb[2].mxu1 }
  0xf8   :  { %v891_v50 = vpop.f32.mrb[3].mxu0  ;;  %v927_v51 = vpop.f32.mrb[3].mxu1 }
  0xf9   :  { %v892_v52 = vadd.f32 %v891_v50, %v890_v48  ;;  %v1251_v53 = vadd.f32 %v927_v51, %v926_v49 }
  0xfd   :  { %v893_v54 = vpop.f32.mrb[4].mxu0  ;;  %v929_v55 = vpop.f32.mrb[4].mxu1 }
  0xfe   :  { %v894_v56 = vpop.f32.mrb[5].mxu0  ;;  %v930_v57 = vpop.f32.mrb[5].mxu1 }
  0xff   :  { %v895_v58 = vadd.f32 %v894_v56, %v893_v54  ;;  %v1253_v59 = vadd.f32 %v930_v57, %v929_v55  ;;  %v896_v60 = vpop.f32.mrb[6].mxu0  ;;  %v932_v61 = vpop.f32.mrb[6].mxu1 }
 0x100   :  { %v897_v62 = vpop.f32.mrb[7].mxu0  ;;  %v933_v63 = vpop.f32.mrb[7].mxu1 }
 0x101   :  { %v898_v0 = vadd.f32 %v897_v62, %v896_v60  ;;  %v1255_v1 = vadd.f32 %v933_v63, %v932_v61 }
 0x105   :  { %v899_v2 = vpop.f32.mrb[8].mxu0  ;;  %v951_v3 = vpop.f32.mrb[8].mxu1 }
 0x106   :  { %v512_v5 = vadd.f32 %v951_v3, %v895_v58  ;;  %v900_v6 = vpop.f32.mrb[9].mxu0  ;;  %v503_v7 = vpop.f32.mrb[9].mxu1 }
 0x107   :  { %v901_v8 = vadd.f32 %v900_v6, %v899_v2  ;;  %v504_v9 = vadd.f32 %v889_v46, %v503_v7  ;;  %v902_v10 = vpop.f32.mrb[10].mxu0  ;;  %v952_v11 = vpop.f32.mrb[10].mxu1 }
 0x108   :  { %v1263_v12 = vadd.f32 %v1260_v4, %v512_v5  ;;  %v515_v13 = vadd.f32 %v952_v11, %v898_v0  ;;  %v903_v14 = vpop.f32.mrb[11].mxu0  ;;  %v506_v15 = vpop.f32.mrb[11].mxu1 }
 0x109   :  { %v1266_v16 = vadd.f32 %v1260_v4, %v504_v9  ;;  %v904_v17 = vadd.f32 %v903_v14, %v902_v10  ;;  %v507_v18 = vadd.f32 %v892_v52, %v506_v15 }
 0x10a   :  { %v642_v19 = vand.u32 2147483647, %v1263_v12  ;;  %v1270_v20 = vadd.f32 %v1260_v4, %v515_v13  ;;  %vm738_vm1 = vcmp.ge.f32.partialorder %v1263_v12, 0.0 }
 0x10b   :  { %v640_v21 = vand.u32 2147483647, %v1266_v16  ;;  %v1274_v22 = vadd.f32 %v1260_v4, %v507_v18  ;;  %vm736_vm2 = vcmp.ge.f32.partialorder %v1266_v16, 0.0 }
 0x10c   :  { %v658_v23 = vsub.f32 0.0, %v642_v19  ;;  %v643_v24 = vand.u32 2147483647, %v1270_v20  ;;  %vm739_vm3 = vcmp.ge.f32.partialorder %v1270_v20, 0.0 }
 0x10d   :  { %v656_v25 = vsub.f32 0.0, %v640_v21  ;;  %v641_v26 = vand.u32 2147483647, %v1274_v22  ;;  %v905_v27 = vpop.f32.mrb[12].mxu0  ;;  %v955_v28 = vpop.f32.mrb[12].mxu1  ;;  %vm737_vm4 = vcmp.ge.f32.partialorder %v1274_v22, 0.0 }
 0x10e   :  { %v676_v29 = vmul.f32 1.442695, %v658_v23  ;;  %v659_v30 = vsub.f32 0.0, %v643_v24  ;;  %v906_v31 = vpop.f32.mrb[13].mxu0  ;;  %v519_v32 = vpop.f32.mrb[13].mxu1 }
 0x10f   :  { %v672_v33 = vmul.f32 1.442695, %v656_v25  ;;  %v657_v34 = vsub.f32 0.0, %v641_v26  ;;  %v907_v35 = vadd.f32 %v906_v31, %v905_v27  ;;  %v520_v36 = vadd.f32 %v901_v8, %v519_v32  ;;  %v908_v37 = vpop.f32.mrb[14].mxu0  ;;  %v956_v38 = vpop.f32.mrb[14].mxu1 }
 0x110   :  { %1031 = vpow2.f32 %v676_v29  ;;  %v678_v39 = vmul.f32 1.442695, %v659_v30  ;;  %v909_v40 = vpop.f32.mrb[15].mxu0  ;;  %v522_v41 = vpop.f32.mrb[15].mxu1 }
 0x111   :  { %1033 = vpow2.f32 %v672_v33  ;;  %v674_v42 = vmul.f32 1.442695, %v657_v34  ;;  %v528_v43 = vadd.f32 %v955_v28, %v907_v35  ;;  %v1279_v44 = vadd.f32 %v1260_v4, %v520_v36 }
 0x112   :  { %1035 = vpow2.f32 %v678_v39  ;;  %v910_v45 = vadd.f32 %v909_v40, %v908_v37  ;;  %v523_v46 = vadd.f32 %v904_v17, %v522_v41 }
 0x113   :  { %1037 = vpow2.f32 %v674_v42  ;;  %v1282_v48 = vadd.f32 %v1260_v4, %v528_v43  ;;  %v644_v49 = vand.u32 2147483647, %v1279_v44  ;;  %vm740_vm5 = vcmp.ge.f32.partialorder %v1279_v44, 0.0 }
 0x114   :  { %v531_v50 = vadd.f32 %v956_v38, %v910_v45  ;;  %v1286_v51 = vadd.f32 %v1260_v4, %v523_v46 }
 0x115   :  { %v646_v52 = vand.u32 2147483647, %v1282_v48  ;;  %v660_v54 = vsub.f32 0.0, %v644_v49  ;;  %v911_v55 = vpop.f32.mrb[16].mxu0  ;;  %v959_v56 = vpop.f32.mrb[16].mxu1  ;;  %vm742_vm6 = vcmp.ge.f32.partialorder %v1282_v48, 0.0 }
 0x116   :  { %v1290_v57 = vadd.f32 %v1260_v4, %v531_v50  ;;  %v645_v58 = vand.u32 2147483647, %v1286_v51  ;;  %v912_v60 = vpop.f32.mrb[17].mxu0  ;;  %v535_v61 = vpop.f32.mrb[17].mxu1  ;;  %vm741_vm7 = vcmp.ge.f32.partialorder %v1286_v51, 0.0 }
 0x117   :  { %v662_v62 = vsub.f32 0.0, %v646_v52  ;;  %v680_v63 = vmul.f32 1.442695, %v660_v54  ;;  %v913_v0 = vadd.f32 %v912_v60, %v911_v55  ;;  %v914_v2 = vpop.f32.mrb[18].mxu0  ;;  %v1293_v3 = vpop.f32.mrb[18].mxu1 }
 0x118   :  { %v647_v5 = vand.u32 2147483647, %v1290_v57  ;;  %v661_v6 = vsub.f32 0.0, %v645_v58  ;;  %v915_v7 = vpop.f32.mrb[19].mxu0  ;;  %v538_v8 = vpop.f32.mrb[19].mxu1  ;;  %vm743_vm8 = vcmp.ge.f32.partialorder %v1290_v57, 0.0 }
 0x119   :  { %v684_v9 = vmul.f32 1.442695, %v662_v62  ;;  %1039 = vpow2.f32 %v680_v63  ;;  %v536_v10 = vadd.f32 %v913_v0, %v535_v61  ;;  %v916_v11 = vadd.f32 %v915_v7, %v914_v2 }
 0x11a   :  { %v1032_v13 = vpop.eup %1031  ;;  %v663_v14 = vsub.f32 0.0, %v647_v5  ;;  %v682_v15 = vmul.f32 1.442695, %v661_v6 }
 0x11b   :  { %v1034_v17 = vpop.eup %1033  ;;  %v706_v18 = vadd.f32 1.0, %v1032_v13  ;;  %1041 = vpow2.f32 %v684_v9  ;;  %v1297_v19 = vadd.f32 %v1260_v4, %v536_v10  ;;  %v539_v21 = vadd.f32 %v916_v11, %v538_v8 }
 0x11c   :  { %v1036_v23 = vpop.eup %1035  ;;  %v704_v24 = vadd.f32 1.0, %v1034_v17  ;;  %v686_v25 = vmul.f32 1.442695, %v663_v14  ;;  %1043 = vpow2.f32 %v682_v15 }
 0x11d   :  { %v1038_v26 = vpop.eup %1037  ;;  %1045 = vrcp.f32 %v706_v18  ;;  %v707_v27 = vadd.f32 1.0, %v1036_v23  ;;  %v648_v28 = vand.u32 2147483647, %v1297_v19  ;;  %v917_v29 = vpop.f32.mrb[20].mxu0  ;;  %v1301_v32 = vadd.f32 %v1260_v4, %v539_v21 }
 0x11e   :  { %v963_v30 = vpop.f32.mrb[20].mxu1  ;;  %1047 = vrcp.f32 %v704_v24  ;;  %v705_v31 = vadd.f32 1.0, %v1038_v26  ;;  %v918_v34 = vpop.f32.mrb[21].mxu0  ;;  %vm744_vm9 = vcmp.ge.f32.partialorder %v1297_v19, 0.0 }
 0x11f   :  { %v560_v33 = vadd.f32 %v963_v30, %v1253_v59  ;;  %v551_v35 = vpop.f32.mrb[21].mxu1  ;;  %1049 = vrcp.f32 %v707_v27  ;;  %v664_v36 = vsub.f32 0.0, %v648_v28  ;;  %v919_v37 = vadd.f32 %v918_v34, %v917_v29  ;;  %v920_v39 = vpop.f32.mrb[22].mxu0 }
 0x120   :  { %v552_v38 = vadd.f32 %v1249_v47, %v551_v35  ;;  %v964_v40 = vpop.f32.mrb[22].mxu1  ;;  %1051 = vrcp.f32 %v705_v31  ;;  %v649_v41 = vand.u32 2147483647, %v1301_v32  ;;  %v921_v43 = vpop.f32.mrb[23].mxu0  ;;  %vm745_vm10 = vcmp.ge.f32.partialorder %v1301_v32, 0.0 }
 0x121   :  { %v1307_v42 = vadd.f32 %v1260_v4, %v560_v33  ;;  %v1309_v45 = vpop.f32.mrb[23].mxu1  ;;  %1053 = vpow2.f32 %v686_v25  ;;  %v688_v59 = vmul.f32 1.442695, %v664_v36  ;;  %v544_v46 = vadd.f32 %v959_v56, %v919_v37 }
 0x122   :  { %v1312_v49 = vadd.f32 %v1260_v4, %v552_v38  ;;  %v665_v47 = vsub.f32 0.0, %v649_v41  ;;  %v563_v52 = vadd.f32 %v964_v40, %v1255_v1  ;;  %v922_v2 = vadd.f32 %v921_v43, %v920_v39 }
 0x123   :  { %v654_v50 = vand.u32 2147483647, %v1307_v42  ;;  %v1040_v54 = vpop.eup %1039  ;;  %1055 = vpow2.f32 %v688_v59  ;;  %v1319_v55 = vadd.f32 %v1260_v4, %v544_v46  ;;  %v555_v40 = vadd.f32 %v1251_v53, %v1309_v45 }
 0x124   :  { %v652_v58 = vand.u32 2147483647, %v1312_v49  ;;  %v708_v56 = vadd.f32 1.0, %v1040_v54  ;;  %v690_v60 = vmul.f32 1.442695, %v665_v47  ;;  %v1323_v62 = vadd.f32 %v1260_v4, %v563_v52 }
 0x125   :  { %v670_v61 = vsub.f32 0.0, %v654_v50  ;;  %v1042_v63 = vpop.eup %1041  ;;  %v650_v1 = vand.u32 2147483647, %v1319_v55  ;;  %v547_v24 = vadd.f32 %v1293_v3, %v922_v2  ;;  %v1361_v43 = vadd.f32 %v1260_v4, %v555_v40 }
 0x126   :  { %v668_v0 = vsub.f32 0.0, %v652_v58  ;;  %v1044_v5 = vpop.eup %1043  ;;  %v710_v6 = vadd.f32 1.0, %v1042_v63  ;;  %1057 = vrcp.f32 %v708_v56  ;;  %v655_v8 = vand.u32 2147483647, %v1323_v62 }
 0x127   :  { %v700_v7 = vmul.f32 1.442695, %v670_v61  ;;  %v1046_v9 = vpop.eup %1045  ;;  %v709_v10 = vadd.f32 1.0, %v1044_v5  ;;  %1059 = vpow2.f32 %v690_v60  ;;  %v666_v11 = vsub.f32 0.0, %v650_v1 }
 0x128   :  { %v1048_v13 = vpop.eup %1047  ;;  %v754_v14 = vsub.f32 1.0, %v1046_v9  ;;  %1061 = vrcp.f32 %v710_v6  ;;  %v696_v15 = vmul.f32 1.442695, %v668_v0  ;;  %v671_v17 = vsub.f32 0.0, %v655_v8 }
 0x129   :  { %v1050_v18 = vpop.eup %1049  ;;  %v752_v21 = vsub.f32 1.0, %v1048_v13  ;;  %1063 = vrcp.f32 %v709_v10  ;;  %v692_v23 = vmul.f32 1.442695, %v666_v11  ;;  %v1345_v38 = vadd.f32 %v1260_v4, %v547_v24 }
 0x12a   :  { %v1052_v25 = vpop.eup %1051  ;;  %v770_v26 = vsel %vm738_vm1, %v1046_v9, %v754_v14  ;;  %v755_v27 = vsub.f32 1.0, %v1050_v18  ;;  %1065 = vpow2.f32 %v700_v7  ;;  %v702_v28 = vmul.f32 1.442695, %v671_v17 }
 0x12b   :  { %v1054_v29 = vpop.eup %1053  ;;  %v786_v30 = vmul.f32 %v770_v26, %v1263_v12  ;;  %v768_v31 = vsel %vm736_vm2, %v1048_v13, %v752_v21  ;;  %v753_v33 = vsub.f32 1.0, %v1052_v25  ;;  %1067 = vpow2.f32 %v692_v23 }
 0x12c   :  { %v784_v34 = vmul.f32 %v768_v31, %v1266_v16  ;;  %v771_v3 = vsel %vm739_vm3, %v1050_v18, %v755_v27  ;;  %v711_v35 = vadd.f32 1.0, %v1054_v29  ;;  %1069 = vpow2.f32 %v696_v15 }
 0x12d   :  { %v1056_v36 = vpop.eup %1055  ;;  %802 = vst [vmem:[%s1427_s3 + $0x10] sm:$0xff] %v786_v30  ;;  %v787_v37 = vmul.f32 %v771_v3, %v1270_v20  ;;  %v769_v12 = vsel %vm737_vm4, %v1052_v25, %v753_v33  ;;  %1071 = vpow2.f32 %v702_v28  ;;  %v651_v20 = vand.u32 2147483647, %v1345_v38 }
 0x12e   :  { %800 = vst [vmem:[%s1427_s3] sm:$0xff] %v784_v34  ;;  %v785_v16 = vmul.f32 %v769_v12, %v1274_v22  ;;  %1073 = vrcp.f32 %v711_v35  ;;  %v712_v39 = vadd.f32 1.0, %v1056_v36  ;;  %v653_v45 = vand.u32 2147483647, %v1361_v43 }
 0x12f   :  { %803 = vst [vmem:[%s1427_s3 + $0x18] sm:$0xff] %v787_v37  ;;  %v667_v46 = vsub.f32 0.0, %v651_v20  ;;  %vm750_vm11 = vcmp.ge.f32.partialorder %v1307_v42, 0.0  ;;  %vm746_vm12 = vcmp.ge.f32.partialorder %v1319_v55, 0.0  ;;  %vm748_vm13 = vcmp.ge.f32.partialorder %v1312_v49, 0.0 }
 0x130   :  { %v1058_v41 = vpop.eup %1057  ;;  %801 = vst [vmem:[%s1427_s3 + $0x8] sm:$0xff] %v785_v16  ;;  %1075 = vrcp.f32 %v712_v39  ;;  %v669_v61 = vsub.f32 0.0, %v653_v45  ;;  %vm751_vm14 = vcmp.ge.f32.partialorder %v1323_v62, 0.0  ;;  %vm747_vm15 = vcmp.ge.f32.partialorder %v1345_v38, 0.0 }
 0x131   :  { %v1060_v22 = vpop.eup %1059  ;;  %v756_v59 = vsub.f32 1.0, %v1058_v41  ;;  %v694_v58 = vmul.f32 1.442695, %v667_v46  ;;  %vm749_vm0 = vcmp.ge.f32.partialorder %v1361_v43, 0.0 }
 0x132   :  { %v1062_v47 = vpop.eup %1061  ;;  %v713_v53 = vadd.f32 1.0, %v1060_v22  ;;  %v698_v10 = vmul.f32 1.442695, %v669_v61 }
 0x133   :  { %v1064_v50 = vpop.eup %1063  ;;  %v758_v52 = vsub.f32 1.0, %v1062_v47  ;;  %v772_v54 = vsel %vm740_vm5, %v1058_v41, %v756_v59 }
 0x134   :  { %v1066_v56 = vpop.eup %1065  ;;  %v788_v60 = vmul.f32 %v772_v54, %v1279_v44  ;;  %v757_v4 = vsub.f32 1.0, %v1064_v50  ;;  %1077 = vrcp.f32 %v713_v53 }
 0x135   :  { %v1068_v63 = vpop.eup %1067  ;;  %v774_v1 = vsel %vm742_vm6, %v1062_v47, %v758_v52  ;;  %v718_v0 = vadd.f32 1.0, %v1066_v56  ;;  %1079 = vpow2.f32 %v694_v58 }
 0x136   :  { %v1070_v2 = vpop.eup %1069  ;;  %v790_v5 = vmul.f32 %v774_v1, %v1282_v48  ;;  %804 = vst [vmem:[%s1427_s3 + $0x20] sm:$0xff] %v788_v60  ;;  %v773_v6 = vsel %vm741_vm7, %v1064_v50, %v757_v4  ;;  %v714_v7 = vadd.f32 1.0, %v1068_v63 }
 0x137   :  { %v1072_v8 = vpop.eup %1071  ;;  %v789_v44 = vmul.f32 %v773_v6, %v1286_v51  ;;  %1081 = vrcp.f32 %v718_v0  ;;  %v716_v9 = vadd.f32 1.0, %v1070_v2 }
 0x138   :  { %v1074_v11 = vpop.eup %1073  ;;  %806 = vst [vmem:[%s1427_s3 + $0x30] sm:$0xff] %v790_v5  ;;  %1083 = vrcp.f32 %v714_v7  ;;  %v719_v13 = vadd.f32 1.0, %v1072_v8 }
 0x139   :  { %v759_v48 = vsub.f32 1.0, %v1074_v11  ;;  %805 = vst [vmem:[%s1427_s3 + $0x28] sm:$0xff] %v789_v44  ;;  %1085 = vrcp.f32 %v716_v9 }
 0x13a   :  { %v1076_v14 = vpop.eup %1075  ;;  %1087 = vrcp.f32 %v719_v13 }
 0x13b   :  { %v775_v51 = vsel %vm743_vm8, %v1074_v11, %v759_v48  ;;  %v760_v15 = vsub.f32 1.0, %v1076_v14  ;;  %1089 = vpow2.f32 %v698_v10 }
 0x13c   :  { %v791_v17 = vmul.f32 %v775_v51, %v1290_v57 }
 0x13d   :  { %v776_v18 = vsel %vm744_vm9, %v1076_v14, %v760_v15 }
 0x13e   :  { %v1078_v21 = vpop.eup %1077  ;;  %807 = vst [vmem:[%s1427_s3 + $0x38] sm:$0xff] %v791_v17  ;;  %v792_v23 = vmul.f32 %v776_v18, %v1297_v19 }
 0x13f   :  { %v1080_v24 = vpop.eup %1079  ;;  %v761_v25 = vsub.f32 1.0, %v1078_v21 }
 0x140   :  { %808 = vst [vmem:[%s1427_s3 + $0x40] sm:$0xff] %v792_v23  ;;  %v715_v26 = vadd.f32 1.0, %v1080_v24 }
 0x141   :  { %v1082_v57 = vpop.eup %1081  ;;  %v777_v27 = vsel %vm745_vm10, %v1078_v21, %v761_v25 }
 0x142   :  { %v1084_v28 = vpop.eup %1083  ;;  %v793_v29 = vmul.f32 %v777_v27, %v1301_v32  ;;  %v766_v30 = vsub.f32 1.0, %v1082_v57  ;;  %1091 = vrcp.f32 %v715_v26 }
 0x143   :  { %v1086_v31 = vpop.eup %1085  ;;  %v762_v19 = vsub.f32 1.0, %v1084_v28 }
 0x144   :  { %v1088_v33 = vpop.eup %1087  ;;  %809 = vst [vmem:[%s1427_s3 + $0x48] sm:$0xff] %v793_v29  ;;  %v782_v34 = vsel %vm750_vm11, %v1082_v57, %v766_v30  ;;  %v764_v3 = vsub.f32 1.0, %v1086_v31 }
 0x145   :  { %v1090_v35 = vpop.eup %1089  ;;  %v798_v36 = vmul.f32 %v782_v34, %v1307_v42  ;;  %v778_v37 = vsel %vm746_vm12, %v1084_v28, %v762_v19  ;;  %v767_v32 = vsub.f32 1.0, %v1088_v33 }
 0x146   :  { %v794_v12 = vmul.f32 %v778_v37, %v1319_v55  ;;  %v780_v16 = vsel %vm748_vm13, %v1086_v31, %v764_v3  ;;  %v717_v39 = vadd.f32 1.0, %v1090_v35 }
 0x147   :  { %814 = vst [vmem:[%s1427_s3 + $0x70] sm:$0xff] %v798_v36  ;;  %v796_v40 = vmul.f32 %v780_v16, %v1312_v49  ;;  %v783_v20 = vsel %vm751_vm14, %v1088_v33, %v767_v32 }
 0x148   :  { %810 = vst [vmem:[%s1427_s3 + $0x50] sm:$0xff] %v794_v12  ;;  %v799_v42 = vmul.f32 %v783_v20, %v1323_v62  ;;  %1093 = vrcp.f32 %v717_v39 }
 0x149   :  { %812 = vst [vmem:[%s1427_s3 + $0x60] sm:$0xff] %v796_v40 }
 0x14a   :  { %815 = vst [vmem:[%s1427_s3 + $0x78] sm:$0xff] %v799_v42 }
 0x14c   :  { %v1092_v55 = vpop.eup %1091 }
 0x14d   :  { %v763_v41 = vsub.f32 1.0, %v1092_v55 }
 0x14f   :  { %v779_v49 = vsel %vm747_vm15, %v1092_v55, %v763_v41 }
 0x150   :  { %v795_v22 = vmul.f32 %v779_v49, %v1345_v38 }
 0x152   :  { %v1094_v59 = vpop.eup %1093  ;;  %811 = vst [vmem:[%s1427_s3 + $0x58] sm:$0xff] %v795_v22 }
 0x153   :  { %v765_v62 = vsub.f32 1.0, %v1094_v59 }
 0x155   :  { %v781_v46 = vsel %vm749_vm0, %v1094_v59, %v765_v62 }
 0x156   :  { %v797_v47 = vmul.f32 %v781_v46, %v1361_v43 }
 0x158   :  { %813 = vst [vmem:[%s1427_s3 + $0x68] sm:$0xff] %v797_v47 }

// kernel: _net_forward_padded.12
= control target key start
LH: loop header
LB: loop body
LE: loop exit
PB: predicated region body
PF: predicated region fallthrough
CT: control target
= control target key end

     0   :  { %vm347_vm0 = vcmask 261120   ;;  %s1122_s1 = inlined_call_operand.vmem [shape: bf16[288,128], index: 1, kind: input, shape index: {}]   ;;  %s1123_s0 = inlined_call_operand.vmem [shape: bf16[128,288], index: 0, kind: input, shape index: {}]   ;;  %s1124_s2 = inlined_call_operand.vmem [shape: f32[1,128], index: 2, kind: input, shape index: {}]   ;;  %s1125_s3 = inlined_call_operand.vmem [shape: f32[128,128], index: 3, kind: output, shape index: {}]  }
   0x1   :  { %v837_v0 = vld [vmem:[%s1122_s1 + $0x40] sm:$0xff]   ;;  %v839_v2 = vld [vmem:[%s1122_s1 + $0x48] sm:$0xff]   ;;  %v841_v4 = vld [vmem:[%s1122_s1 + $0x50] sm:$0xff]  }
   0x2   :  { %v838_v1 = vld [vmem:[%s1122_s1] sm:$0xff]   ;;  %727 = vmatprep.subr.bf16.mxu0 %v837_v0  ;;  %821 = vmatprep.subr.bf16.mxu1 %v837_v0  ;;  %v840_v3 = vld [vmem:[%s1122_s1 + $0x8] sm:$0xff]   ;;  %v842_v5 = vld [vmem:[%s1122_s1 + $0x10] sm:$0xff]  }
   0x3   :  { %728 = vmatpush3.bf16.msra.mxu0 %v838_v1  ;;  %829 = vmatpush3.bf16.msra.mxu1 %v838_v1  ;;  %v843_v6 = vld [vmem:[%s1122_s1 + $0x58] sm:$0xff]   ;;  %v845_v8 = vld [vmem:[%s1122_s1 + $0x60] sm:$0xff]   ;;  %v847_v10 = vld [vmem:[%s1122_s1 + $0x68] sm:$0xff]  }
   0x4   :  { %729 = vmatprep.subr.bf16.mxu0 %v839_v2  ;;  %822 = vmatprep.subr.bf16.mxu1 %v839_v2  ;;  %v844_v7 = vld [vmem:[%s1122_s1 + $0x18] sm:$0xff]   ;;  %v846_v9 = vld [vmem:[%s1122_s1 + $0x20] sm:$0xff]   ;;  %v848_v13 = vld [vmem:[%s1122_s1 + $0x28] sm:$0xff]  }
   0x5   :  { %v855_v11 = vld [vmem:[%s1123_s0 + $0x4] ss:$12 sps:$4 sm:$0xff]   ;;  %v858_v12 = vld [vmem:[%s1123_s0 + $0x94] ss:$12 sps:$4 sm:$0xff]   ;;  %v851_v16 = vld [vmem:[%s1122_s1 + $0x78] sm:$0xff]  }
   0x6   :  { %v849_v14 = vld [vmem:[%s1122_s1 + $0x70] sm:$0xff]   ;;  %404 = vmatprep.mubr.bf16.mxu0 %v855_v11  ;;  %452 = vmatprep.mubr.bf16.mxu1 %v858_v12  ;;  %v852_v17 = vld [vmem:[%s1122_s1 + $0x38] sm:$0xff]   ;;  %v853_v18 = vld [vmem:[%s1123_s0] ss:$12 sps:$4 sm:$0xff]  }
   0x7   :  { %730 = vmatpush3.bf16.msra.mxu0 %v840_v3  ;;  %830 = vmatpush3.bf16.msra.mxu1 %v840_v3  ;;  %v850_v15 = vld [vmem:[%s1122_s1 + $0x30] sm:$0xff]   ;;  %v859_v19 = vld [vmem:[%s1122_s1 + $0x80] sm:$0xff]   ;;  %v860_v21 = vld [vmem:[%s1123_s0 + $0x1c] ss:$12 sps:$4 sm:$0xff]  }
   0x8   :  { %731 = vmatprep.subr.bf16.mxu0 %v841_v4  ;;  %823 = vmatprep.subr.bf16.mxu1 %v841_v4  ;;  %v856_v20 = vld [vmem:[%s1123_s0 + $0x90] ss:$12 sps:$4 sm:$0xff]   ;;  %v862_v22 = vld [vmem:[%s1123_s0 + $0xac] ss:$12 sps:$4 sm:$0xff]   ;;  %v865_v25 = vld [vmem:[%s1123_s0 + $0xa8] ss:$12 sps:$4 sm:$0xff]  }
   0x9   :  { %v866_v23 = vld [vmem:[%s1122_s1 + $0x88] sm:$0xff]   ;;  %v864_v24 = vld [vmem:[%s1123_s0 + $0x18] ss:$12 sps:$4 sm:$0xff]   ;;  %v867_v26 = vld [vmem:[%s1123_s0 + $0x34] ss:$12 sps:$4 sm:$0xff]  }
   0xa   :  { %v869_v27 = vld [vmem:[%s1123_s0 + $0x8] ss:$12 sps:$4 sm:$0xff]   ;;  %v870_v28 = vld [vmem:[%s1123_s0 + $0x30] ss:$12 sps:$4 sm:$0xff]   ;;  %v871_v29 = vld [vmem:[%s1123_s0 + $0x20] ss:$12 sps:$4 sm:$0xff]  }
   0xb   :  { %732 = vmatpush3.bf16.msra.mxu0 %v842_v5  ;;  %831 = vmatpush3.bf16.msra.mxu1 %v842_v5  ;;  %v872_v30 = vld [vmem:[%s1123_s0 + $0x4c] ss:$12 sps:$4 sm:$0xff]   ;;  %v875_v32 = vld [vmem:[%s1123_s0 + $0x48] ss:$12 sps:$4 sm:$0xff]   ;;  %v876_v33 = vld [vmem:[%s1123_s0 + $0x50] ss:$12 sps:$4 sm:$0xff]  }
   0xc   :  { %733 = vmatprep.subr.bf16.mxu0 %v843_v6  ;;  %824 = vmatprep.subr.bf16.mxu1 %v843_v6  ;;  %v874_v31 = vld [vmem:[%s1123_s0 + $0x38] ss:$12 sps:$4 sm:$0xff]   ;;  %v879_v35 = vld [vmem:[%s1123_s0 + $0x68] ss:$12 sps:$4 sm:$0xff]   ;;  %v880_v36 = vld [vmem:[%s1123_s0 + $0x60] ss:$12 sps:$4 sm:$0xff]  }
   0xd   :  { %v877_v34 = vld [vmem:[%s1123_s0 + $0x64] ss:$12 sps:$4 sm:$0xff]   ;;  %v881_v37 = vld [vmem:[%s1123_s0 + $0x80] ss:$12 sps:$4 sm:$0xff]   ;;  %v882_v38 = vld [vmem:[%s1123_s0 + $0x7c] ss:$12 sps:$4 sm:$0xff]  }
   0xe   :  { %v884_v39 = vld [vmem:[%s1123_s0 + $0x98] ss:$12 sps:$4 sm:$0xff]   ;;  %v886_v41 = vld [vmem:[%s1123_s0 + $0xb0] ss:$12 sps:$4 sm:$0xff]   ;;  %v1052_v4 = vld [vmem:[%s1124_s2] ss:$0 sm:$0xff] }
   0xf   :  { %734 = vmatpush3.bf16.msra.mxu0 %v844_v7  ;;  %832 = vmatpush3.bf16.msra.mxu1 %v844_v7  ;;  %v885_v40 = vld [vmem:[%s1123_s0 + $0x78] ss:$12 sps:$4 sm:$0xff]  }
  0x10   :  { %735 = vmatprep.subr.bf16.mxu0 %v845_v8  ;;  %825 = vmatprep.subr.bf16.mxu1 %v845_v8 }
  0x13   :  { %736 = vmatpush3.bf16.msra.mxu0 %v846_v9  ;;  %833 = vmatpush3.bf16.msra.mxu1 %v846_v9 }
  0x14   :  { %737 = vmatprep.subr.bf16.mxu0 %v847_v10  ;;  %826 = vmatprep.subr.bf16.mxu1 %v847_v10 }
  0x17   :  { %738 = vmatpush3.bf16.msra.mxu0 %v848_v13  ;;  %834 = vmatpush3.bf16.msra.mxu1 %v848_v13 }
  0x18   :  { %739 = vmatprep.subr.bf16.mxu0 %v849_v14  ;;  %827 = vmatprep.subr.bf16.mxu1 %v849_v14 }
  0x1b   :  { %740 = vmatpush3.bf16.msra.mxu0 %v850_v15  ;;  %835 = vmatpush3.bf16.msra.mxu1 %v850_v15 }
  0x1c   :  { %741 = vmatprep.subr.bf16.mxu0 %v851_v16  ;;  %828 = vmatprep.subr.bf16.mxu1 %v851_v16 }
  0x1f   :  { %742 = vmatpush3.bf16.msra.mxu0 %v852_v17  ;;  %836 = vmatpush3.bf16.msra.mxu1 %v852_v17 }
  0x20   :  { %801 = vmatprep.subr.bf16.mxu1 %v859_v19 }
  0x22   :  { %405 = vmatmul.mubr.bf16.vlgmr.msra.gmra.mrb[0].mxu0 %v853_v18  ;;  %453 = vmatmul.mubr.bf16.vlgmr.msra.gmra.mrb[0].mxu1 %v856_v20 }
  0x23   :  { %802 = vmatpush3.bf16.msra.mxu1 %v859_v19  ;;  %412 = vmatprep.mubr.bf16.mxu0 %v860_v21 }
  0x24   :  { %460 = vmatprep.mubr.bf16.mxu1 %v862_v22  ;;  %803 = vmatprep.subr.bf16.mxu1 %v866_v23 }
  0x27   :  { %804 = vmatpush3.bf16.msra.mxu1 %v866_v23 }
  0x2a   :  { %413 = vmatmul.mubr.bf16.gmra.mrb[4].mxu0 %v864_v24  ;;  %461 = vmatmul.mubr.bf16.gmra.mrb[4].mxu1 %v865_v25 }
  0x2b   :  { %420 = vmatprep.mubr.bf16.mxu0 %v867_v26  ;;  %805 = vmatprep.mubr.msk.bf16.mxu1 %vm347_vm0, %v869_v27 }
  0x32   :  { %421 = vmatmul.mubr.bf16.gmra.mrb[8].mxu0 %v870_v28  ;;  %806 = vmatmul.mubr.msk.bf16.vlgmr.msra.gmra.mrb[8].mxu1 %vm347_vm0, %v871_v29 }
  0x33   :  { %428 = vmatprep.mubr.bf16.mxu0 %v872_v30  ;;  %809 = vmatprep.mubr.msk.bf16.mxu1 %vm347_vm0, %v874_v31 }
  0x3a   :  { %429 = vmatmul.mubr.bf16.gmra.mrb[12].mxu0 %v875_v32  ;;  %810 = vmatmul.mubr.msk.bf16.gmra.mrb[12].mxu1 %vm347_vm0, %v876_v33 }
  0x3b   :  { %436 = vmatprep.mubr.bf16.mxu0 %v877_v34  ;;  %813 = vmatprep.mubr.msk.bf16.mxu1 %vm347_vm0, %v879_v35 }
  0x42   :  { %437 = vmatmul.mubr.bf16.gmra.mrb[16].mxu0 %v880_v36  ;;  %814 = vmatmul.mubr.msk.bf16.gmra.mrb[16].mxu1 %vm347_vm0, %v881_v37 }
  0x43   :  { %444 = vmatprep.mubr.bf16.mxu0 %v882_v38  ;;  %817 = vmatprep.mubr.msk.bf16.mxu1 %vm347_vm0, %v884_v39 }
  0x4a   :  { %445 = vmatmul.mubr.bf16.gmra.mrb[20].mxu0 %v885_v40  ;;  %818 = vmatmul.mubr.msk.bf16.gmra.mrb[20].mxu1 %vm347_vm0, %v886_v41 }
  0xf5   :  { %v743_v42 = vpop.f32.mrb[0].mxu0  ;;  %v779_v43 = vpop.f32.mrb[0].mxu1 }
  0xf6   :  { %v744_v44 = vpop.f32.mrb[1].mxu0  ;;  %v780_v45 = vpop.f32.mrb[1].mxu1 }
  0xf7   :  { %v745_v46 = vadd.f32 %v744_v44, %v743_v42  ;;  %v1041_v47 = vadd.f32 %v780_v45, %v779_v43  ;;  %v746_v48 = vpop.f32.mrb[2].mxu0  ;;  %v782_v49 = vpop.f32.mrb[2].mxu1 }
  0xf8   :  { %v747_v50 = vpop.f32.mrb[3].mxu0  ;;  %v783_v51 = vpop.f32.mrb[3].mxu1 }
  0xf9   :  { %v748_v52 = vadd.f32 %v747_v50, %v746_v48  ;;  %v1043_v53 = vadd.f32 %v783_v51, %v782_v49 }
  0xfd   :  { %v749_v54 = vpop.f32.mrb[4].mxu0  ;;  %v785_v55 = vpop.f32.mrb[4].mxu1 }
  0xfe   :  { %v750_v56 = vpop.f32.mrb[5].mxu0  ;;  %v786_v57 = vpop.f32.mrb[5].mxu1 }
  0xff   :  { %v751_v58 = vadd.f32 %v750_v56, %v749_v54  ;;  %v1045_v59 = vadd.f32 %v786_v57, %v785_v55  ;;  %v752_v60 = vpop.f32.mrb[6].mxu0  ;;  %v788_v61 = vpop.f32.mrb[6].mxu1 }
 0x100   :  { %v753_v62 = vpop.f32.mrb[7].mxu0  ;;  %v789_v63 = vpop.f32.mrb[7].mxu1 }
 0x101   :  { %v754_v0 = vadd.f32 %v753_v62, %v752_v60  ;;  %v1047_v1 = vadd.f32 %v789_v63, %v788_v61 }
 0x105   :  { %v755_v2 = vpop.f32.mrb[8].mxu0  ;;  %v807_v3 = vpop.f32.mrb[8].mxu1 }
 0x106   :  { %v512_v5 = vadd.f32 %v807_v3, %v751_v58  ;;  %v756_v6 = vpop.f32.mrb[9].mxu0  ;;  %v503_v7 = vpop.f32.mrb[9].mxu1 }
 0x107   :  { %v757_v8 = vadd.f32 %v756_v6, %v755_v2  ;;  %v504_v9 = vadd.f32 %v745_v46, %v503_v7  ;;  %v758_v10 = vpop.f32.mrb[10].mxu0  ;;  %v808_v11 = vpop.f32.mrb[10].mxu1 }
 0x108   :  { %v626_v12 = vadd.f32 %v1052_v4, %v512_v5  ;;  %v515_v13 = vadd.f32 %v808_v11, %v754_v0  ;;  %v759_v14 = vpop.f32.mrb[11].mxu0  ;;  %v506_v15 = vpop.f32.mrb[11].mxu1 }
 0x109   :  { %v624_v16 = vadd.f32 %v1052_v4, %v504_v9  ;;  %v760_v17 = vadd.f32 %v759_v14, %v758_v10  ;;  %v507_v18 = vadd.f32 %v748_v52, %v506_v15 }
 0x10a   :  { %v642_v19 = vmax.f32 %v626_v12, 0.0  ;;  %v627_v20 = vadd.f32 %v1052_v4, %v515_v13 }
 0x10b   :  { %v640_v21 = vmax.f32 %v624_v16, 0.0  ;;  %v625_v22 = vadd.f32 %v1052_v4, %v507_v18 }
 0x10c   :  { %658 = vst [vmem:[%s1125_s3 + $0x10] sm:$0xff] %v642_v19  ;;  %v643_v23 = vmax.f32 %v627_v20, 0.0 }
 0x10d   :  { %656 = vst [vmem:[%s1125_s3] sm:$0xff] %v640_v21  ;;  %v641_v24 = vmax.f32 %v625_v22, 0.0  ;;  %v761_v25 = vpop.f32.mrb[12].mxu0  ;;  %v811_v26 = vpop.f32.mrb[12].mxu1 }
 0x10e   :  { %659 = vst [vmem:[%s1125_s3 + $0x18] sm:$0xff] %v643_v23  ;;  %v762_v27 = vpop.f32.mrb[13].mxu0  ;;  %v519_v28 = vpop.f32.mrb[13].mxu1 }
 0x10f   :  { %657 = vst [vmem:[%s1125_s3 + $0x8] sm:$0xff] %v641_v24  ;;  %v763_v29 = vadd.f32 %v762_v27, %v761_v25  ;;  %v520_v30 = vadd.f32 %v757_v8, %v519_v28  ;;  %v764_v31 = vpop.f32.mrb[14].mxu0  ;;  %v812_v32 = vpop.f32.mrb[14].mxu1 }
 0x110   :  { %v765_v33 = vpop.f32.mrb[15].mxu0  ;;  %v522_v34 = vpop.f32.mrb[15].mxu1 }
 0x111   :  { %v528_v35 = vadd.f32 %v811_v26, %v763_v29  ;;  %v628_v36 = vadd.f32 %v1052_v4, %v520_v30  ;;  %v766_v37 = vadd.f32 %v765_v33, %v764_v31  ;;  %v523_v38 = vadd.f32 %v760_v17, %v522_v34 }
 0x113   :  { %v630_v39 = vadd.f32 %v1052_v4, %v528_v35  ;;  %v644_v40 = vmax.f32 %v628_v36, 0.0  ;;  %v531_v41 = vadd.f32 %v812_v32, %v766_v37  ;;  %v629_v42 = vadd.f32 %v1052_v4, %v523_v38 }
 0x115   :  { %v646_v43 = vmax.f32 %v630_v39, 0.0  ;;  %660 = vst [vmem:[%s1125_s3 + $0x20] sm:$0xff] %v644_v40  ;;  %v631_v44 = vadd.f32 %v1052_v4, %v531_v41  ;;  %v645_v45 = vmax.f32 %v629_v42, 0.0  ;;  %v767_v46 = vpop.f32.mrb[16].mxu0  ;;  %v815_v48 = vpop.f32.mrb[16].mxu1 }
 0x116   :  { %v768_v49 = vpop.f32.mrb[17].mxu0  ;;  %v535_v50 = vpop.f32.mrb[17].mxu1 }
 0x117   :  { %662 = vst [vmem:[%s1125_s3 + $0x30] sm:$0xff] %v646_v43  ;;  %v647_v51 = vmax.f32 %v631_v44, 0.0  ;;  %661 = vst [vmem:[%s1125_s3 + $0x28] sm:$0xff] %v645_v45  ;;  %v769_v52 = vadd.f32 %v768_v49, %v767_v46  ;;  %v770_v54 = vpop.f32.mrb[18].mxu0  ;;  %v816_v55 = vpop.f32.mrb[18].mxu1 }
 0x118   :  { %v771_v56 = vpop.f32.mrb[19].mxu0  ;;  %v538_v57 = vpop.f32.mrb[19].mxu1 }
 0x119   :  { %663 = vst [vmem:[%s1125_s3 + $0x38] sm:$0xff] %v647_v51  ;;  %v536_v58 = vadd.f32 %v769_v52, %v535_v50  ;;  %v772_v60 = vadd.f32 %v771_v56, %v770_v54 }
 0x11b   :  { %v632_v61 = vadd.f32 %v1052_v4, %v536_v58  ;;  %v539_v62 = vadd.f32 %v772_v60, %v538_v57 }
 0x11d   :  { %v648_v63 = vmax.f32 %v632_v61, 0.0  ;;  %v633_v0 = vadd.f32 %v1052_v4, %v539_v62  ;;  %v773_v2 = vpop.f32.mrb[20].mxu0  ;;  %v819_v3 = vpop.f32.mrb[20].mxu1 }
 0x11e   :  { %v560_v5 = vadd.f32 %v819_v3, %v1045_v59  ;;  %v774_v6 = vpop.f32.mrb[21].mxu0  ;;  %v551_v7 = vpop.f32.mrb[21].mxu1 }
 0x11f   :  { %664 = vst [vmem:[%s1125_s3 + $0x40] sm:$0xff] %v648_v63  ;;  %v649_v8 = vmax.f32 %v633_v0, 0.0  ;;  %v775_v9 = vadd.f32 %v774_v6, %v773_v2  ;;  %v552_v10 = vadd.f32 %v1041_v47, %v551_v7  ;;  %v776_v11 = vpop.f32.mrb[22].mxu0  ;;  %v820_v12 = vpop.f32.mrb[22].mxu1 }
 0x120   :  { %v638_v13 = vadd.f32 %v1052_v4, %v560_v5  ;;  %v563_v14 = vadd.f32 %v820_v12, %v1047_v1  ;;  %v777_v15 = vpop.f32.mrb[23].mxu0  ;;  %v554_v16 = vpop.f32.mrb[23].mxu1 }
 0x121   :  { %665 = vst [vmem:[%s1125_s3 + $0x48] sm:$0xff] %v649_v8  ;;  %v544_v59 = vadd.f32 %v815_v48, %v775_v9  ;;  %v636_v17 = vadd.f32 %v1052_v4, %v552_v10  ;;  %v778_v18 = vadd.f32 %v777_v15, %v776_v11  ;;  %v555_v19 = vadd.f32 %v1043_v53, %v554_v16 }
 0x122   :  { %v654_v20 = vmax.f32 %v638_v13, 0.0  ;;  %v639_v47 = vadd.f32 %v1052_v4, %v563_v14 }
 0x123   :  { %v634_v21 = vadd.f32 %v1052_v4, %v544_v59  ;;  %v652_v22 = vmax.f32 %v636_v17, 0.0  ;;  %v547_v23 = vadd.f32 %v816_v55, %v778_v18  ;;  %v637_v1 = vadd.f32 %v1052_v4, %v555_v19 }
 0x124   :  { %670 = vst [vmem:[%s1125_s3 + $0x70] sm:$0xff] %v654_v20  ;;  %v655_v24 = vmax.f32 %v639_v47, 0.0 }
 0x125   :  { %v650_v25 = vmax.f32 %v634_v21, 0.0  ;;  %668 = vst [vmem:[%s1125_s3 + $0x60] sm:$0xff] %v652_v22  ;;  %v635_v53 = vadd.f32 %v1052_v4, %v547_v23  ;;  %v653_v26 = vmax.f32 %v637_v1, 0.0 }
 0x126   :  { %671 = vst [vmem:[%s1125_s3 + $0x78] sm:$0xff] %v655_v24 }
 0x127   :  { %666 = vst [vmem:[%s1125_s3 + $0x50] sm:$0xff] %v650_v25  ;;  %v651_v27 = vmax.f32 %v635_v53, 0.0  ;;  %669 = vst [vmem:[%s1125_s3 + $0x68] sm:$0xff] %v653_v26 }
 0x129   :  { %667 = vst [vmem:[%s1125_s3 + $0x58] sm:$0xff] %v651_v27 }

// kernel: _net_forward_padded.13
= control target key start
LH: loop header
LB: loop body
LE: loop exit
PB: predicated region body
PF: predicated region fallthrough
CT: control target
= control target key end

     0   :  { %vm123_vm0 = vcmask 261120   ;;  %s511_s1 = inlined_call_operand.vmem [shape: bf16[32,128], index: 1, kind: input, shape index: {}]   ;;  %s512_s0 = inlined_call_operand.vmem [shape: bf16[128,32], index: 0, kind: input, shape index: {}]   ;;  %s513_s2 = inlined_call_operand.vmem [shape: f32[1,128], index: 2, kind: input, shape index: {}]   ;;  %s514_s3 = inlined_call_operand.vmem [shape: f32[128,128], index: 3, kind: output, shape index: {}]  }
   0x1   :  { %v392_v0 = vld [vmem:[%s511_s1] sm:$0xff]   ;;  %v393_v1 = vld [vmem:[%s511_s1 + $0x8] sm:$0xff]   ;;  %v398_v6 = vld [vmem:[%s512_s0 + $0x10] sm:$0xff]  }
   0x2   :  { %368 = vmatprep.subr.bf16.mxu0 %v392_v0  ;;  %388 = vmatprep.subr.bf16.mxu1 %v392_v0  ;;  %v394_v2 = vld [vmem:[%s512_s0] sm:$0xff]   ;;  %v396_v4 = vld [vmem:[%s512_s0 + $0x8] sm:$0xff]   ;;  %v399_v7 = vld [vmem:[%s512_s0 + $0x30] sm:$0xff]  }
   0x3   :  { %369 = vmatpush3.bf16.msra.mxu0 %v392_v0  ;;  %390 = vmatpush3.bf16.msra.mxu1 %v392_v0  ;;  %v395_v3 = vld [vmem:[%s512_s0 + $0x20] sm:$0xff]   ;;  %v397_v5 = vld [vmem:[%s512_s0 + $0x28] sm:$0xff]   ;;  %v400_v8 = vld [vmem:[%s512_s0 + $0x18] sm:$0xff]  }
   0x4   :  { %370 = vmatprep.subr.bf16.mxu0 %v393_v1  ;;  %389 = vmatprep.subr.bf16.mxu1 %v393_v1  ;;  %v401_v9 = vld [vmem:[%s512_s0 + $0x38] sm:$0xff]   ;;  %v357_v10 = vld [vmem:[%s513_s2] ss:$0 sm:$0xff] }
   0x5   :  { %372 = vmatprep.mubr.msk.bf16.mxu0 %vm123_vm0, %v394_v2  ;;  %380 = vmatprep.mubr.msk.bf16.mxu1 %vm123_vm0, %v395_v3 }
   0x7   :  { %371 = vmatpush3.bf16.msra.mxu0 %v393_v1  ;;  %391 = vmatpush3.bf16.msra.mxu1 %v393_v1 }
   0xa   :  { %373 = vmatmul.mubr.msk.bf16.vlgmr.msra.gmra.mrb[0].mxu0 %vm123_vm0, %v396_v4  ;;  %381 = vmatmul.mubr.msk.bf16.vlgmr.msra.gmra.mrb[0].mxu1 %vm123_vm0, %v397_v5 }
   0xb   :  { %376 = vmatprep.mubr.msk.bf16.mxu0 %vm123_vm0, %v398_v6  ;;  %384 = vmatprep.mubr.msk.bf16.mxu1 %vm123_vm0, %v399_v7 }
  0x12   :  { %377 = vmatmul.mubr.msk.bf16.gmra.mrb[4].mxu0 %vm123_vm0, %v400_v8  ;;  %385 = vmatmul.mubr.msk.bf16.gmra.mrb[4].mxu1 %vm123_vm0, %v401_v9 }
  0xdd   :  { %v374_v11 = vpop.f32.mrb[0].mxu0  ;;  %v382_v12 = vpop.f32.mrb[0].mxu1 }
  0xde   :  { %v305_v13 = vadd.f32 %v374_v11, %v357_v10  ;;  %v313_v14 = vadd.f32 %v382_v12, %v357_v10  ;;  %v182_v15 = vpop.f32.mrb[1].mxu0  ;;  %v214_v16 = vpop.f32.mrb[1].mxu1 }
  0xdf   :  { %v303_v17 = vadd.f32 %v357_v10, %v182_v15  ;;  %v311_v18 = vadd.f32 %v357_v10, %v214_v16  ;;  %v375_v19 = vpop.f32.mrb[2].mxu0  ;;  %v383_v20 = vpop.f32.mrb[2].mxu1 }
  0xe0   :  { %321 = vst [vmem:[%s514_s3 + $0x10] sm:$0xff] %v305_v13  ;;  %329 = vst [vmem:[%s514_s3 + $0x50] sm:$0xff] %v313_v14  ;;  %v306_v21 = vadd.f32 %v375_v19, %v357_v10  ;;  %v314_v22 = vadd.f32 %v383_v20, %v357_v10  ;;  %v185_v23 = vpop.f32.mrb[3].mxu0  ;;  %v217_v24 = vpop.f32.mrb[3].mxu1 }
  0xe1   :  { %319 = vst [vmem:[%s514_s3] sm:$0xff] %v303_v17  ;;  %327 = vst [vmem:[%s514_s3 + $0x40] sm:$0xff] %v311_v18  ;;  %v304_v25 = vadd.f32 %v357_v10, %v185_v23  ;;  %v312_v26 = vadd.f32 %v357_v10, %v217_v24 }
  0xe2   :  { %322 = vst [vmem:[%s514_s3 + $0x18] sm:$0xff] %v306_v21  ;;  %330 = vst [vmem:[%s514_s3 + $0x58] sm:$0xff] %v314_v22 }
  0xe3   :  { %320 = vst [vmem:[%s514_s3 + $0x8] sm:$0xff] %v304_v25  ;;  %328 = vst [vmem:[%s514_s3 + $0x48] sm:$0xff] %v312_v26 }
  0xe5   :  { %v378_v27 = vpop.f32.mrb[4].mxu0  ;;  %v386_v28 = vpop.f32.mrb[4].mxu1 }
  0xe6   :  { %v309_v29 = vadd.f32 %v378_v27, %v357_v10  ;;  %v317_v30 = vadd.f32 %v386_v28, %v357_v10  ;;  %v198_v31 = vpop.f32.mrb[5].mxu0  ;;  %v230_v32 = vpop.f32.mrb[5].mxu1 }
  0xe7   :  { %v307_v33 = vadd.f32 %v357_v10, %v198_v31  ;;  %v315_v34 = vadd.f32 %v357_v10, %v230_v32  ;;  %v379_v35 = vpop.f32.mrb[6].mxu0  ;;  %v387_v36 = vpop.f32.mrb[6].mxu1 }
  0xe8   :  { %325 = vst [vmem:[%s514_s3 + $0x30] sm:$0xff] %v309_v29  ;;  %333 = vst [vmem:[%s514_s3 + $0x70] sm:$0xff] %v317_v30  ;;  %v310_v37 = vadd.f32 %v379_v35, %v357_v10  ;;  %v318_v38 = vadd.f32 %v387_v36, %v357_v10  ;;  %v201_v39 = vpop.f32.mrb[7].mxu0  ;;  %v233_v40 = vpop.f32.mrb[7].mxu1 }
  0xe9   :  { %323 = vst [vmem:[%s514_s3 + $0x20] sm:$0xff] %v307_v33  ;;  %331 = vst [vmem:[%s514_s3 + $0x60] sm:$0xff] %v315_v34  ;;  %v308_v41 = vadd.f32 %v357_v10, %v201_v39  ;;  %v316_v42 = vadd.f32 %v357_v10, %v233_v40 }
  0xea   :  { %326 = vst [vmem:[%s514_s3 + $0x38] sm:$0xff] %v310_v37  ;;  %334 = vst [vmem:[%s514_s3 + $0x78] sm:$0xff] %v318_v38 }
  0xeb   :  { %324 = vst [vmem:[%s514_s3 + $0x28] sm:$0xff] %v308_v41  ;;  %332 = vst [vmem:[%s514_s3 + $0x68] sm:$0xff] %v316_v42 }

// kernel: _net_forward_padded.14
= control target key start
LH: loop header
LB: loop body
LE: loop exit
PB: predicated region body
PF: predicated region fallthrough
CT: control target
= control target key end

     0   :  { %vm590_vm0 = vcmask 523264   ;;  %s1811_s1 = inlined_call_operand.vmem [shape: bf16[576,128], index: 1, kind: input, shape index: {}]   ;;  %s1812_s0 = inlined_call_operand.vmem [shape: bf16[128,576], index: 0, kind: input, shape index: {}]   ;;  %s1813_s2 = inlined_call_operand.vmem [shape: f32[1,128], index: 2, kind: input, shape index: {}]   ;;  %s1814_s3 = inlined_call_operand.vmem [shape: f32[128,128], index: 3, kind: input, shape index: {}]   ;;  %s1815_s4 = inlined_call_operand.vmem [shape: f32[128,128], index: 4, kind: output, shape index: {}]  }
   0x1   :  { %v1305_v0 = vld [vmem:[%s1811_s1 + $0x40] sm:$0xff]   ;;  %v1309_v4 = vld [vmem:[%s1811_s1 + $0x48] sm:$0xff]   ;;  %v1313_v8 = vld [vmem:[%s1811_s1 + $0x50] sm:$0xff]  }
   0x2   :  { %v1306_v1 = vld [vmem:[%s1811_s1 + $0xc0] sm:$0xff]   ;;  %1133 = vmatprep.subr.bf16.mxu0 %v1305_v0  ;;  %v1310_v5 = vld [vmem:[%s1811_s1 + $0xc8] sm:$0xff]   ;;  %v1314_v9 = vld [vmem:[%s1811_s1 + $0xd0] sm:$0xff]  }
   0x3   :  { %v1307_v2 = vld [vmem:[%s1811_s1] sm:$0xff]   ;;  %1197 = vmatprep.subr.bf16.mxu1 %v1306_v1  ;;  %v1311_v6 = vld [vmem:[%s1811_s1 + $0x8] sm:$0xff]   ;;  %v1315_v10 = vld [vmem:[%s1811_s1 + $0x10] sm:$0xff]  }
   0x4   :  { %v1308_v3 = vld [vmem:[%s1811_s1 + $0x80] sm:$0xff]   ;;  %1134 = vmatpush3.bf16.msra.mxu0 %v1307_v2  ;;  %v1312_v7 = vld [vmem:[%s1811_s1 + $0x88] sm:$0xff]   ;;  %v1316_v11 = vld [vmem:[%s1811_s1 + $0x90] sm:$0xff]  }
   0x5   :  { %1198 = vmatpush3.bf16.msra.mxu1 %v1308_v3  ;;  %1135 = vmatprep.subr.bf16.mxu0 %v1309_v4  ;;  %v1317_v12 = vld [vmem:[%s1811_s1 + $0x58] sm:$0xff]   ;;  %v1321_v16 = vld [vmem:[%s1811_s1 + $0x60] sm:$0xff]   ;;  %v1325_v20 = vld [vmem:[%s1811_s1 + $0x68] sm:$0xff]  }
   0x6   :  { %1199 = vmatprep.subr.bf16.mxu1 %v1310_v5  ;;  %v1318_v13 = vld [vmem:[%s1811_s1 + $0xd8] sm:$0xff]   ;;  %v1322_v17 = vld [vmem:[%s1811_s1 + $0xe0] sm:$0xff]   ;;  %v1326_v21 = vld [vmem:[%s1811_s1 + $0xe8] sm:$0xff]  }
   0x7   :  { %v1319_v14 = vld [vmem:[%s1811_s1 + $0x18] sm:$0xff]   ;;  %v1323_v18 = vld [vmem:[%s1811_s1 + $0x20] sm:$0xff]   ;;  %v1327_v22 = vld [vmem:[%s1811_s1 + $0x28] sm:$0xff]  }
   0x8   :  { %1136 = vmatpush3.bf16.msra.mxu0 %v1311_v6  ;;  %v1320_v15 = vld [vmem:[%s1811_s1 + $0x98] sm:$0xff]   ;;  %v1324_v19 = vld [vmem:[%s1811_s1 + $0xa0] sm:$0xff]   ;;  %v1328_v23 = vld [vmem:[%s1811_s1 + $0xa8] sm:$0xff]  }
   0x9   :  { %1200 = vmatpush3.bf16.msra.mxu1 %v1312_v7  ;;  %1137 = vmatprep.subr.bf16.mxu0 %v1313_v8  ;;  %v1329_v24 = vld [vmem:[%s1811_s1 + $0x70] sm:$0xff]   ;;  %v1333_v28 = vld [vmem:[%s1811_s1 + $0x78] sm:$0xff]   ;;  %v1342_v35 = vld [vmem:[%s1812_s0 + $0xc] ss:$20 sps:$4 sm:$0xff]  }
   0xa   :  { %1201 = vmatprep.subr.bf16.mxu1 %v1314_v9  ;;  %v1330_v25 = vld [vmem:[%s1811_s1 + $0xf0] sm:$0xff]   ;;  %v1334_v29 = vld [vmem:[%s1811_s1 + $0xf8] sm:$0xff]   ;;  %v1343_v36 = vld [vmem:[%s1811_s1 + $0x100] sm:$0xff]   ;;  %744 = vmatprep.mubr.bf16.mxu1 %v1342_v35 }
   0xb   :  { %v1331_v26 = vld [vmem:[%s1811_s1 + $0x30] sm:$0xff]   ;;  %v1335_v30 = vld [vmem:[%s1811_s1 + $0x38] sm:$0xff]   ;;  %v1344_v37 = vld [vmem:[%s1812_s0 + $0x2c] ss:$20 sps:$4 sm:$0xff]  }
   0xc   :  { %1138 = vmatpush3.bf16.msra.mxu0 %v1315_v10  ;;  %v1332_v27 = vld [vmem:[%s1811_s1 + $0xb0] sm:$0xff]   ;;  %v1336_v31 = vld [vmem:[%s1811_s1 + $0xb8] sm:$0xff]   ;;  %v1356_v42 = vld [vmem:[%s1811_s1 + $0x108] sm:$0xff]  }
   0xd   :  { %1202 = vmatpush3.bf16.msra.mxu1 %v1316_v11  ;;  %1139 = vmatprep.subr.bf16.mxu0 %v1317_v12  ;;  %v1337_v32 = vld [vmem:[%s1812_s0] ss:$20 sps:$4 sm:$0xff]   ;;  %v1339_v33 = vld [vmem:[%s1812_s0 + $0x4] ss:$20 sps:$4 sm:$0xff]   ;;  %v1340_v34 = vld [vmem:[%s1812_s0 + $0x8] ss:$20 sps:$4 sm:$0xff]  }
   0xe   :  { %1203 = vmatprep.subr.bf16.mxu1 %v1318_v13  ;;  %647 = vmatprep.mubr.bf16.mxu0 %v1339_v33  ;;  %v1346_v38 = vld [vmem:[%s1812_s0 + $0x34] ss:$20 sps:$4 sm:$0xff]   ;;  %v1349_v40 = vld [vmem:[%s1812_s0 + $0x30] ss:$20 sps:$4 sm:$0xff]   ;;  %v1355_v45 = vld [vmem:[%s1812_s0 + $0x58] ss:$20 sps:$4 sm:$0xff]  }
   0xf   :  { %v1348_v39 = vld [vmem:[%s1812_s0 + $0x28] ss:$20 sps:$4 sm:$0xff]   ;;  %v1354_v44 = vld [vmem:[%s1812_s0 + $0x50] ss:$20 sps:$4 sm:$0xff]   ;;  %v1361_v50 = vld [vmem:[%s1812_s0 + $0x78] ss:$20 sps:$4 sm:$0xff]  }
  0x10   :  { %1140 = vmatpush3.bf16.msra.mxu0 %v1319_v14  ;;  %v1350_v41 = vld [vmem:[%s1812_s0 + $0x54] ss:$20 sps:$4 sm:$0xff]   ;;  %v1352_v43 = vld [vmem:[%s1812_s0 + $0x5c] ss:$20 sps:$4 sm:$0xff]   ;;  %v1359_v48 = vld [vmem:[%s1812_s0 + $0x84] ss:$20 sps:$4 sm:$0xff]  }
  0x11   :  { %1204 = vmatpush3.bf16.msra.mxu1 %v1320_v15  ;;  %1141 = vmatprep.subr.bf16.mxu0 %v1321_v16  ;;  %v1369_v46 = vld [vmem:[%s1811_s1 + $0x110] sm:$0xff]   ;;  %v1382_v49 = vld [vmem:[%s1811_s1 + $0x118] sm:$0xff]   ;;  %v1365_v53 = vld [vmem:[%s1812_s0 + $0xac] ss:$20 sps:$4 sm:$0xff]  }
  0x12   :  { %1205 = vmatprep.subr.bf16.mxu1 %v1322_v17  ;;  %v1357_v47 = vld [vmem:[%s1812_s0 + $0x7c] ss:$20 sps:$4 sm:$0xff]   ;;  %v1362_v51 = vld [vmem:[%s1812_s0 + $0x80] ss:$20 sps:$4 sm:$0xff]   ;;  %v1363_v52 = vld [vmem:[%s1812_s0 + $0xa4] ss:$20 sps:$4 sm:$0xff]  }
  0x13   :  { %v1367_v54 = vld [vmem:[%s1812_s0 + $0xa0] ss:$20 sps:$4 sm:$0xff]   ;;  %v1368_v55 = vld [vmem:[%s1812_s0 + $0xa8] ss:$20 sps:$4 sm:$0xff]   ;;  %v1375_v59 = vld [vmem:[%s1812_s0 + $0xd0] ss:$20 sps:$4 sm:$0xff]  }
  0x14   :  { %1142 = vmatpush3.bf16.msra.mxu0 %v1323_v18  ;;  %v1370_v56 = vld [vmem:[%s1812_s0 + $0xcc] ss:$20 sps:$4 sm:$0xff]   ;;  %v1372_v57 = vld [vmem:[%s1812_s0 + $0xd4] ss:$20 sps:$4 sm:$0xff]   ;;  %v1378_v61 = vld [vmem:[%s1812_s0 + $0xfc] ss:$20 sps:$4 sm:$0xff]  }
  0x15   :  { %1206 = vmatpush3.bf16.msra.mxu1 %v1324_v19  ;;  %1143 = vmatprep.subr.bf16.mxu0 %v1325_v20  ;;  %v1374_v58 = vld [vmem:[%s1812_s0 + $0xc8] ss:$20 sps:$4 sm:$0xff]   ;;  %v1380_v62 = vld [vmem:[%s1812_s0 + $0xf0] ss:$20 sps:$4 sm:$0xff]   ;;  %v1381_v63 = vld [vmem:[%s1812_s0 + $0xf8] ss:$20 sps:$4 sm:$0xff]  }
  0x16   :  { %1207 = vmatprep.subr.bf16.mxu1 %v1326_v21  ;;  %v1376_v60 = vld [vmem:[%s1812_s0 + $0xf4] ss:$20 sps:$4 sm:$0xff]   ;;  %v1383_v0 = vld [vmem:[%s1812_s0 + $0x11c] ss:$20 sps:$4 sm:$0xff]   ;;  %v1385_v1 = vld [vmem:[%s1812_s0 + $0x124] ss:$20 sps:$4 sm:$0xff]  }
  0x17   :  { %v1387_v2 = vld [vmem:[%s1812_s0 + $0x118] ss:$20 sps:$4 sm:$0xff]   ;;  %v1388_v3 = vld [vmem:[%s1812_s0 + $0x120] ss:$20 sps:$4 sm:$0xff]   ;;  %v1389_v4 = vld [vmem:[%s1812_s0 + $0x10] ss:$20 sps:$4 sm:$0xff]  }
  0x18   :  { %1144 = vmatpush3.bf16.msra.mxu0 %v1327_v22  ;;  %v1390_v5 = vld [vmem:[%s1812_s0 + $0xb0] ss:$20 sps:$4 sm:$0xff]   ;;  %v1391_v6 = vld [vmem:[%s1812_s0 + $0x38] ss:$20 sps:$4 sm:$0xff]   ;;  %v1393_v8 = vld [vmem:[%s1812_s0 + $0x60] ss:$20 sps:$4 sm:$0xff]  }
  0x19   :  { %1208 = vmatpush3.bf16.msra.mxu1 %v1328_v23  ;;  %1145 = vmatprep.subr.bf16.mxu0 %v1329_v24  ;;  %v1392_v7 = vld [vmem:[%s1812_s0 + $0xd8] ss:$20 sps:$4 sm:$0xff]   ;;  %v1394_v9 = vld [vmem:[%s1812_s0 + $0x100] ss:$20 sps:$4 sm:$0xff]   ;;  %v1395_v10 = vld [vmem:[%s1812_s0 + $0x88] ss:$20 sps:$4 sm:$0xff]  }
  0x1a   :  { %1209 = vmatprep.subr.bf16.mxu1 %v1330_v25  ;;  %v1396_v11 = vld [vmem:[%s1812_s0 + $0x128] ss:$20 sps:$4 sm:$0xff]  }
  0x1c   :  { %1146 = vmatpush3.bf16.msra.mxu0 %v1331_v26 }
  0x1d   :  { %1210 = vmatpush3.bf16.msra.mxu1 %v1332_v27  ;;  %1147 = vmatprep.subr.bf16.mxu0 %v1333_v28 }
  0x1e   :  { %1211 = vmatprep.subr.bf16.mxu1 %v1334_v29 }
  0x20   :  { %1148 = vmatpush3.bf16.msra.mxu0 %v1335_v30 }
  0x21   :  { %1212 = vmatpush3.bf16.msra.mxu1 %v1336_v31  ;;  %1273 = vmatprep.subr.bf16.mxu0 %v1343_v36 }
  0x22   :  { %1297 = vmatprep.subr.bf16.mxu1 %v1343_v36 }
  0x23   :  { %648 = vmatmul.mubr.bf16.vlgmr.msra.gmra.mrb[0].mxu0 %v1337_v32 }
  0x24   :  { %745 = vmatmul.mubr.bf16.vlgmr.msra.gmra.mrb[0].mxu1 %v1340_v34  ;;  %1274 = vmatpush3.bf16.msra.mxu0 %v1343_v36 }
  0x25   :  { %1301 = vmatpush3.bf16.msra.mxu1 %v1343_v36  ;;  %655 = vmatprep.mubr.bf16.mxu0 %v1344_v37 }
  0x26   :  { %752 = vmatprep.mubr.bf16.mxu1 %v1346_v38  ;;  %1275 = vmatprep.subr.bf16.mxu0 %v1356_v42 }
  0x27   :  { %1298 = vmatprep.subr.bf16.mxu1 %v1356_v42 }
  0x28   :  { %1276 = vmatpush3.bf16.msra.mxu0 %v1356_v42 }
  0x29   :  { %1302 = vmatpush3.bf16.msra.mxu1 %v1356_v42  ;;  %1277 = vmatprep.subr.bf16.mxu0 %v1369_v46 }
  0x2a   :  { %1299 = vmatprep.subr.bf16.mxu1 %v1369_v46 }
  0x2b   :  { %656 = vmatmul.mubr.bf16.gmra.mrb[4].mxu0 %v1348_v39 }
  0x2c   :  { %753 = vmatmul.mubr.bf16.gmra.mrb[4].mxu1 %v1349_v40  ;;  %663 = vmatprep.mubr.bf16.mxu0 %v1350_v41 }
  0x2d   :  { %760 = vmatprep.mubr.bf16.mxu1 %v1352_v43  ;;  %1278 = vmatpush3.bf16.msra.mxu0 %v1369_v46 }
  0x2e   :  { %1303 = vmatpush3.bf16.msra.mxu1 %v1369_v46  ;;  %1279 = vmatprep.subr.bf16.mxu0 %v1382_v49 }
  0x2f   :  { %1300 = vmatprep.subr.bf16.mxu1 %v1382_v49 }
  0x31   :  { %1280 = vmatpush3.bf16.msra.mxu0 %v1382_v49 }
  0x32   :  { %1304 = vmatpush3.bf16.msra.mxu1 %v1382_v49 }
  0x33   :  { %664 = vmatmul.mubr.bf16.gmra.mrb[8].mxu0 %v1354_v44 }
  0x34   :  { %761 = vmatmul.mubr.bf16.gmra.mrb[8].mxu1 %v1355_v45  ;;  %671 = vmatprep.mubr.bf16.mxu0 %v1357_v47 }
  0x35   :  { %768 = vmatprep.mubr.bf16.mxu1 %v1359_v48 }
  0x3b   :  { %672 = vmatmul.mubr.bf16.gmra.mrb[12].mxu0 %v1361_v50 }
  0x3c   :  { %769 = vmatmul.mubr.bf16.gmra.mrb[12].mxu1 %v1362_v51  ;;  %679 = vmatprep.mubr.bf16.mxu0 %v1363_v52 }
  0x3d   :  { %776 = vmatprep.mubr.bf16.mxu1 %v1365_v53 }
  0x43   :  { %680 = vmatmul.mubr.bf16.gmra.mrb[16].mxu0 %v1367_v54 }
  0x44   :  { %777 = vmatmul.mubr.bf16.gmra.mrb[16].mxu1 %v1368_v55  ;;  %687 = vmatprep.mubr.bf16.mxu0 %v1370_v56 }
  0x45   :  { %784 = vmatprep.mubr.bf16.mxu1 %v1372_v57 }
  0x4b   :  { %688 = vmatmul.mubr.bf16.gmra.mrb[20].mxu0 %v1374_v58 }
  0x4c   :  { %785 = vmatmul.mubr.bf16.gmra.mrb[20].mxu1 %v1375_v59  ;;  %695 = vmatprep.mubr.bf16.mxu0 %v1376_v60 }
  0x4d   :  { %792 = vmatprep.mubr.bf16.mxu1 %v1378_v61 }
  0x53   :  { %696 = vmatmul.mubr.bf16.gmra.mrb[24].mxu0 %v1380_v62 }
  0x54   :  { %793 = vmatmul.mubr.bf16.gmra.mrb[24].mxu1 %v1381_v63  ;;  %703 = vmatprep.mubr.bf16.mxu0 %v1383_v0 }
  0x55   :  { %800 = vmatprep.mubr.bf16.mxu1 %v1385_v1 }
  0x5b   :  { %704 = vmatmul.mubr.bf16.gmra.mrb[28].mxu0 %v1387_v2 }
  0x5c   :  { %801 = vmatmul.mubr.bf16.gmra.mrb[28].mxu1 %v1388_v3  ;;  %1281 = vmatprep.mubr.msk.bf16.mxu0 %vm590_vm0, %v1389_v4 }
  0x5d   :  { %1289 = vmatprep.mubr.msk.bf16.mxu1 %vm590_vm0, %v1390_v5 }
  0x63   :  { %1282 = vmatmul.mubr.msk.bf16.vlgmr.msra.gmra.mrb[32].mxu0 %vm590_vm0, %v1391_v6 }
  0x64   :  { %1290 = vmatmul.mubr.msk.bf16.vlgmr.msra.gmra.mrb[32].mxu1 %vm590_vm0, %v1392_v7  ;;  %1285 = vmatprep.mubr.msk.bf16.mxu0 %vm590_vm0, %v1393_v8 }
  0x65   :  { %1293 = vmatprep.mubr.msk.bf16.mxu1 %vm590_vm0, %v1394_v9 }
  0x6b   :  { %1286 = vmatmul.mubr.msk.bf16.gmra.mrb[36].mxu0 %vm590_vm0, %v1395_v10 }
  0x6c   :  { %1294 = vmatmul.mubr.msk.bf16.gmra.mrb[36].mxu1 %vm590_vm0, %v1396_v11 }
  0xf6   :  { %v1149_v12 = vpop.f32.mrb[0].mxu0 }
  0xf7   :  { %v1213_v13 = vpop.f32.mrb[0].mxu1  ;;  %v1150_v14 = vpop.f32.mrb[1].mxu0 }
  0xf8   :  { %v1151_v15 = vadd.f32 %v1150_v14, %v1149_v12  ;;  %v1214_v16 = vpop.f32.mrb[1].mxu1  ;;  %v1152_v17 = vpop.f32.mrb[2].mxu0 }
  0xf9   :  { %v1215_v18 = vadd.f32 %v1214_v16, %v1213_v13  ;;  %v1216_v19 = vpop.f32.mrb[2].mxu1  ;;  %v1153_v20 = vpop.f32.mrb[3].mxu0 }
  0xfa   :  { %v1154_v21 = vadd.f32 %v1153_v20, %v1152_v17  ;;  %v1217_v22 = vpop.f32.mrb[3].mxu1 }
  0xfb   :  { %v1218_v23 = vadd.f32 %v1217_v22, %v1216_v19  ;;  %v1658_v24 = vadd.f32 %v1215_v18, %v1151_v15 }
  0xfd   :  { %v1660_v25 = vadd.f32 %v1218_v23, %v1154_v21 }
  0xfe   :  { %v1155_v26 = vpop.f32.mrb[4].mxu0 }
  0xff   :  { %v1219_v27 = vpop.f32.mrb[4].mxu1  ;;  %v1156_v28 = vpop.f32.mrb[5].mxu0 }
 0x100   :  { %v1157_v29 = vadd.f32 %v1156_v28, %v1155_v26  ;;  %v1220_v30 = vpop.f32.mrb[5].mxu1  ;;  %v1158_v31 = vpop.f32.mrb[6].mxu0 }
 0x101   :  { %v1221_v32 = vadd.f32 %v1220_v30, %v1219_v27  ;;  %v1222_v33 = vpop.f32.mrb[6].mxu1  ;;  %v1159_v34 = vpop.f32.mrb[7].mxu0 }
 0x102   :  { %v1160_v35 = vadd.f32 %v1159_v34, %v1158_v31  ;;  %v1223_v36 = vpop.f32.mrb[7].mxu1 }
 0x103   :  { %v1224_v37 = vadd.f32 %v1223_v36, %v1222_v33  ;;  %v1662_v38 = vadd.f32 %v1221_v32, %v1157_v29 }
 0x105   :  { %v1664_v39 = vadd.f32 %v1224_v37, %v1160_v35 }
 0x106   :  { %v1161_v40 = vpop.f32.mrb[8].mxu0 }
 0x107   :  { %v1225_v41 = vpop.f32.mrb[8].mxu1  ;;  %v1162_v42 = vpop.f32.mrb[9].mxu0 }
 0x108   :  { %v1163_v43 = vadd.f32 %v1162_v42, %v1161_v40  ;;  %v1226_v44 = vpop.f32.mrb[9].mxu1  ;;  %v1164_v45 = vpop.f32.mrb[10].mxu0 }
 0x109   :  { %v1227_v46 = vadd.f32 %v1226_v44, %v1225_v41  ;;  %v1228_v47 = vpop.f32.mrb[10].mxu1  ;;  %v1165_v48 = vpop.f32.mrb[11].mxu0 }
 0x10a   :  { %v1166_v49 = vadd.f32 %v1165_v48, %v1164_v45  ;;  %v1229_v50 = vpop.f32.mrb[11].mxu1 }
 0x10b   :  { %v1230_v51 = vadd.f32 %v1229_v50, %v1228_v47  ;;  %v1666_v52 = vadd.f32 %v1227_v46, %v1163_v43 }
 0x10d   :  { %v1668_v53 = vadd.f32 %v1230_v51, %v1166_v49 }
 0x10e   :  { %v1167_v54 = vpop.f32.mrb[12].mxu0 }
 0x10f   :  { %v1231_v55 = vpop.f32.mrb[12].mxu1  ;;  %v1168_v56 = vpop.f32.mrb[13].mxu0 }
 0x110   :  { %v1169_v57 = vadd.f32 %v1168_v56, %v1167_v54  ;;  %v1232_v58 = vpop.f32.mrb[13].mxu1  ;;  %v1170_v59 = vpop.f32.mrb[14].mxu0 }
 0x111   :  { %v1233_v60 = vadd.f32 %v1232_v58, %v1231_v55  ;;  %v1234_v61 = vpop.f32.mrb[14].mxu1  ;;  %v1171_v62 = vpop.f32.mrb[15].mxu0 }
 0x112   :  { %v1172_v63 = vadd.f32 %v1171_v62, %v1170_v59  ;;  %v1235_v0 = vpop.f32.mrb[15].mxu1 }
 0x113   :  { %v1236_v1 = vadd.f32 %v1235_v0, %v1234_v61  ;;  %v1670_v2 = vadd.f32 %v1233_v60, %v1169_v57 }
 0x115   :  { %v1672_v3 = vadd.f32 %v1236_v1, %v1172_v63 }
 0x116   :  { %v1173_v4 = vpop.f32.mrb[16].mxu0 }
 0x117   :  { %v1237_v5 = vpop.f32.mrb[16].mxu1  ;;  %v1174_v6 = vpop.f32.mrb[17].mxu0 }
 0x118   :  { %v1175_v7 = vadd.f32 %v1174_v6, %v1173_v4  ;;  %v1238_v8 = vpop.f32.mrb[17].mxu1  ;;  %v1176_v9 = vpop.f32.mrb[18].mxu0 }
 0x119   :  { %v1239_v10 = vadd.f32 %v1238_v8, %v1237_v5  ;;  %v1240_v11 = vpop.f32.mrb[18].mxu1  ;;  %v1177_v12 = vpop.f32.mrb[19].mxu0  ;;  %v1685_v5 = vld [vmem:[%s1813_s2] ss:$0 sm:$0xff] }
 0x11a   :  { %v1178_v13 = vadd.f32 %v1177_v12, %v1176_v9  ;;  %v1241_v14 = vpop.f32.mrb[19].mxu1 }
 0x11b   :  { %v1242_v15 = vadd.f32 %v1241_v14, %v1240_v11  ;;  %v779_v16 = vadd.f32 %v1239_v10, %v1175_v7 }
 0x11d   :  { %v1674_v17 = vadd.f32 %v1242_v15, %v1178_v13 }
 0x11e   :  { %v1179_v18 = vpop.f32.mrb[20].mxu0 }
 0x11f   :  { %v1243_v19 = vpop.f32.mrb[20].mxu1  ;;  %v1180_v20 = vpop.f32.mrb[21].mxu0 }
 0x120   :  { %v1181_v21 = vadd.f32 %v1180_v20, %v1179_v18  ;;  %v1244_v22 = vpop.f32.mrb[21].mxu1  ;;  %v1182_v23 = vpop.f32.mrb[22].mxu0  ;;  %v998_v20 = vld [vmem:[%s1814_s3 + $0x10] sm:$0xff] }
 0x121   :  { %v1245_v26 = vadd.f32 %v1244_v22, %v1243_v19  ;;  %v1246_v27 = vpop.f32.mrb[22].mxu1  ;;  %v1183_v28 = vpop.f32.mrb[23].mxu0 }
 0x122   :  { %v1184_v29 = vadd.f32 %v1183_v28, %v1182_v23  ;;  %v1247_v30 = vpop.f32.mrb[23].mxu1 }
 0x123   :  { %v1248_v31 = vadd.f32 %v1247_v30, %v1246_v27  ;;  %v787_v32 = vadd.f32 %v1245_v26, %v1181_v21 }
 0x125   :  { %v790_v33 = vadd.f32 %v1248_v31, %v1184_v29 }
 0x126   :  { %v1185_v34 = vpop.f32.mrb[24].mxu0 }
 0x127   :  { %v1249_v35 = vpop.f32.mrb[24].mxu1  ;;  %v1186_v36 = vpop.f32.mrb[25].mxu0 }
 0x128   :  { %v1187_v37 = vadd.f32 %v1186_v36, %v1185_v34  ;;  %v1250_v40 = vpop.f32.mrb[25].mxu1  ;;  %v1188_v41 = vpop.f32.mrb[26].mxu0 }
 0x129   :  { %v1251_v42 = vadd.f32 %v1250_v40, %v1249_v35  ;;  %v1252_v43 = vpop.f32.mrb[26].mxu1  ;;  %v1189_v44 = vpop.f32.mrb[27].mxu0  ;;  %v997_v40 = vld [vmem:[%s1814_s3 + $0x8] sm:$0xff] }
 0x12a   :  { %v1190_v45 = vadd.f32 %v1189_v44, %v1188_v41  ;;  %v1253_v46 = vpop.f32.mrb[27].mxu1 }
 0x12b   :  { %v1254_v47 = vadd.f32 %v1253_v46, %v1252_v43  ;;  %v1676_v48 = vadd.f32 %v1251_v42, %v1187_v37  ;;  %v1005_v46 = vld [vmem:[%s1814_s3 + $0x48] sm:$0xff] }
 0x12d   :  { %v1678_v49 = vadd.f32 %v1254_v47, %v1190_v45 }
 0x12e   :  { %v1191_v50 = vpop.f32.mrb[28].mxu0 }
 0x12f   :  { %v1255_v51 = vpop.f32.mrb[28].mxu1  ;;  %v1192_v54 = vpop.f32.mrb[29].mxu0 }
 0x130   :  { %v1193_v55 = vadd.f32 %v1192_v54, %v1191_v50  ;;  %v1256_v56 = vpop.f32.mrb[29].mxu1  ;;  %v1194_v57 = vpop.f32.mrb[30].mxu0 }
 0x131   :  { %v1257_v58 = vadd.f32 %v1256_v56, %v1255_v51  ;;  %v1258_v59 = vpop.f32.mrb[30].mxu1  ;;  %v1195_v60 = vpop.f32.mrb[31].mxu0 }
 0x132   :  { %v1196_v61 = vadd.f32 %v1195_v60, %v1194_v57  ;;  %v1259_v62 = vpop.f32.mrb[31].mxu1 }
 0x133   :  { %v1260_v63 = vadd.f32 %v1259_v62, %v1258_v59  ;;  %v803_v0 = vadd.f32 %v1257_v58, %v1193_v55 }
 0x135   :  { %v1680_v1 = vadd.f32 %v1260_v63, %v1196_v61 }
 0x136   :  { %v1283_v4 = vpop.f32.mrb[32].mxu0 }
 0x137   :  { %v852_v6 = vadd.f32 %v1283_v4, %v1662_v38  ;;  %v1291_v7 = vpop.f32.mrb[32].mxu1  ;;  %v843_v8 = vpop.f32.mrb[33].mxu0 }
 0x138   :  { %v884_v9 = vadd.f32 %v1291_v7, %v787_v32  ;;  %v844_v10 = vadd.f32 %v843_v8, %v1658_v24  ;;  %v875_v11 = vpop.f32.mrb[33].mxu1  ;;  %v1284_v12 = vpop.f32.mrb[34].mxu0  ;;  %v999_v32 = vld [vmem:[%s1814_s3 + $0x18] sm:$0xff] }
 0x139   :  { %v966_v13 = vadd.f32 %v1685_v5, %v852_v6  ;;  %v876_v14 = vadd.f32 %v875_v11, %v779_v16  ;;  %v855_v15 = vadd.f32 %v1284_v12, %v1664_v39  ;;  %v1292_v18 = vpop.f32.mrb[34].mxu1  ;;  %v846_v19 = vpop.f32.mrb[35].mxu0  ;;  %v1006_v16 = vld [vmem:[%s1814_s3 + $0x50] sm:$0xff]  ;;  %v996_v39 = vld [vmem:[%s1814_s3] sm:$0xff] }
 0x13a   :  { %v974_v38 = vadd.f32 %v1685_v5, %v884_v9  ;;  %v964_v21 = vadd.f32 %v1685_v5, %v844_v10  ;;  %v887_v22 = vadd.f32 %v1292_v18, %v790_v33  ;;  %v847_v24 = vadd.f32 %v846_v19, %v1660_v25  ;;  %v878_v23 = vpop.f32.mrb[35].mxu1  ;;  %v1004_v25 = vld [vmem:[%s1814_s3 + $0x40] sm:$0xff] }
 0x13b   :  { %v982_v26 = vmax.f32 %v966_v13, 0.0  ;;  %v972_v27 = vadd.f32 %v1685_v5, %v876_v14  ;;  %v967_v28 = vadd.f32 %v1685_v5, %v855_v15  ;;  %v879_v29 = vadd.f32 %v878_v23, %v1674_v17  ;;  %v1007_v17 = vld [vmem:[%s1814_s3 + $0x58] sm:$0xff]  ;;  %v1010_v13 = vld [vmem:[%s1814_s3 + $0x70] sm:$0xff]  ;;  %v1000_v14 = vld [vmem:[%s1814_s3 + $0x20] sm:$0xff] }
 0x13c   :  { %v990_v30 = vmax.f32 %v974_v38, 0.0  ;;  %v980_v31 = vmax.f32 %v964_v21, 0.0  ;;  %v975_v33 = vadd.f32 %v1685_v5, %v887_v22  ;;  %v965_v34 = vadd.f32 %v1685_v5, %v847_v24  ;;  %v1003_v38 = vld [vmem:[%s1814_s3 + $0x38] sm:$0xff] }
 0x13d   :  { %v1014_v35 = vadd.f32 %v998_v20, %v982_v26  ;;  %v988_v36 = vmax.f32 %v972_v27, 0.0  ;;  %v983_v37 = vmax.f32 %v967_v28, 0.0  ;;  %v973_v41 = vadd.f32 %v1685_v5, %v879_v29  ;;  %v1008_v20 = vld [vmem:[%s1814_s3 + $0x60] sm:$0xff] }
 0x13e   :  { %v1022_v42 = vadd.f32 %v1006_v16, %v990_v30  ;;  %v1012_v43 = vadd.f32 %v996_v39, %v980_v31  ;;  %v991_v44 = vmax.f32 %v975_v33, 0.0  ;;  %v981_v45 = vmax.f32 %v965_v34, 0.0  ;;  %v1287_v47 = vpop.f32.mrb[36].mxu0  ;;  %v1001_v16 = vld [vmem:[%s1814_s3 + $0x28] sm:$0xff] }
 0x13f   :  { %1030 = vst [vmem:[%s1815_s4 + $0x10] sm:$0xff] %v1014_v35  ;;  %v1020_v50 = vadd.f32 %v1004_v25, %v988_v36  ;;  %v1015_v51 = vadd.f32 %v999_v32, %v983_v37  ;;  %v989_v54 = vmax.f32 %v973_v41, 0.0  ;;  %v868_v55 = vadd.f32 %v1287_v47, %v1670_v2  ;;  %v1295_v56 = vpop.f32.mrb[36].mxu1  ;;  %v859_v57 = vpop.f32.mrb[37].mxu0  ;;  %v1009_v31 = vld [vmem:[%s1814_s3 + $0x68] sm:$0xff] }
 0x140   :  { %1038 = vst [vmem:[%s1815_s4 + $0x50] sm:$0xff] %v1022_v42  ;;  %1028 = vst [vmem:[%s1815_s4] sm:$0xff] %v1012_v43  ;;  %v1023_v58 = vadd.f32 %v1007_v17, %v991_v44  ;;  %v1013_v59 = vadd.f32 %v997_v40, %v981_v45  ;;  %v900_v60 = vadd.f32 %v1295_v56, %v803_v0  ;;  %v891_v62 = vpop.f32.mrb[37].mxu1  ;;  %v1288_v63 = vpop.f32.mrb[38].mxu0 }
 0x141   :  { %v860_v61 = vadd.f32 %v859_v57, %v1666_v52  ;;  %1036 = vst [vmem:[%s1815_s4 + $0x40] sm:$0xff] %v1020_v50  ;;  %1031 = vst [vmem:[%s1815_s4 + $0x18] sm:$0xff] %v1015_v51  ;;  %v1021_v2 = vadd.f32 %v1005_v46, %v989_v54  ;;  %v970_v4 = vadd.f32 %v1685_v5, %v868_v55  ;;  %v1296_v0 = vpop.f32.mrb[38].mxu1  ;;  %v862_v8 = vpop.f32.mrb[39].mxu0  ;;  %v1002_v52 = vld [vmem:[%s1814_s3 + $0x30] sm:$0xff] }
 0x142   :  { %v892_v6 = vadd.f32 %v891_v62, %v1676_v48  ;;  %v871_v7 = vadd.f32 %v1288_v63, %v1672_v3  ;;  %1039 = vst [vmem:[%s1815_s4 + $0x58] sm:$0xff] %v1023_v58  ;;  %1029 = vst [vmem:[%s1815_s4 + $0x8] sm:$0xff] %v1013_v59  ;;  %v978_v9 = vadd.f32 %v1685_v5, %v900_v60  ;;  %v894_v11 = vpop.f32.mrb[39].mxu1 }
 0x143   :  { %v968_v48 = vadd.f32 %v1685_v5, %v860_v61  ;;  %v903_v3 = vadd.f32 %v1296_v0, %v1680_v1  ;;  %v863_v10 = vadd.f32 %v862_v8, %v1668_v53  ;;  %1037 = vst [vmem:[%s1815_s4 + $0x48] sm:$0xff] %v1021_v2  ;;  %v986_v12 = vmax.f32 %v970_v4, 0.0 }
 0x144   :  { %v976_v15 = vadd.f32 %v1685_v5, %v892_v6  ;;  %v971_v1 = vadd.f32 %v1685_v5, %v871_v7  ;;  %v895_v53 = vadd.f32 %v894_v11, %v1678_v49  ;;  %v994_v18 = vmax.f32 %v978_v9, 0.0  ;;  %v1011_v49 = vld [vmem:[%s1814_s3 + $0x78] sm:$0xff] }
 0x145   :  { %v984_v19 = vmax.f32 %v968_v48, 0.0  ;;  %v979_v21 = vadd.f32 %v1685_v5, %v903_v3  ;;  %v969_v22 = vadd.f32 %v1685_v5, %v863_v10  ;;  %v1018_v24 = vadd.f32 %v1002_v52, %v986_v12 }
 0x146   :  { %v992_v23 = vmax.f32 %v976_v15, 0.0  ;;  %v987_v26 = vmax.f32 %v971_v1, 0.0  ;;  %v977_v39 = vadd.f32 %v1685_v5, %v895_v53  ;;  %v1026_v27 = vadd.f32 %v1010_v13, %v994_v18 }
 0x147   :  { %v1016_v28 = vadd.f32 %v1000_v14, %v984_v19  ;;  %v995_v29 = vmax.f32 %v979_v21, 0.0  ;;  %v985_v30 = vmax.f32 %v969_v22, 0.0  ;;  %1034 = vst [vmem:[%s1815_s4 + $0x30] sm:$0xff] %v1018_v24 }
 0x148   :  { %v1024_v25 = vadd.f32 %v1008_v20, %v992_v23  ;;  %v1019_v32 = vadd.f32 %v1003_v38, %v987_v26  ;;  %v993_v33 = vmax.f32 %v977_v39, 0.0  ;;  %1042 = vst [vmem:[%s1815_s4 + $0x70] sm:$0xff] %v1026_v27 }
 0x149   :  { %1032 = vst [vmem:[%s1815_s4 + $0x20] sm:$0xff] %v1016_v28  ;;  %v1027_v5 = vadd.f32 %v1011_v49, %v995_v29  ;;  %v1017_v34 = vadd.f32 %v1001_v16, %v985_v30 }
 0x14a   :  { %1040 = vst [vmem:[%s1815_s4 + $0x60] sm:$0xff] %v1024_v25  ;;  %1035 = vst [vmem:[%s1815_s4 + $0x38] sm:$0xff] %v1019_v32  ;;  %v1025_v35 = vadd.f32 %v1009_v31, %v993_v33 }
 0x14b   :  { %1043 = vst [vmem:[%s1815_s4 + $0x78] sm:$0xff] %v1027_v5  ;;  %1033 = vst [vmem:[%s1815_s4 + $0x28] sm:$0xff] %v1017_v34 }
 0x14c   :  { %1041 = vst [vmem:[%s1815_s4 + $0x68] sm:$0xff] %v1025_v35 }

// kernel: _net_forward_padded.15
= control target key start
LH: loop header
LB: loop body
LE: loop exit
PB: predicated region body
PF: predicated region fallthrough
CT: control target
= control target key end

     0   :  { %vm587_vm0 = vcmask 523264   ;;  %s1720_s1 = inlined_call_operand.vmem [shape: bf16[576,128], index: 1, kind: input, shape index: {}]   ;;  %s1721_s0 = inlined_call_operand.vmem [shape: bf16[128,576], index: 0, kind: input, shape index: {}]   ;;  %s1722_s2 = inlined_call_operand.vmem [shape: f32[1,128], index: 2, kind: input, shape index: {}]   ;;  %s1723_s3 = inlined_call_operand.vmem [shape: f32[128,128], index: 3, kind: output, shape index: {}]  }
   0x1   :  { %v1270_v0 = vld [vmem:[%s1720_s1 + $0x40] sm:$0xff]   ;;  %v1274_v4 = vld [vmem:[%s1720_s1 + $0x48] sm:$0xff]   ;;  %v1278_v8 = vld [vmem:[%s1720_s1 + $0x50] sm:$0xff]  }
   0x2   :  { %v1271_v1 = vld [vmem:[%s1720_s1 + $0xc0] sm:$0xff]   ;;  %1098 = vmatprep.subr.bf16.mxu0 %v1270_v0  ;;  %v1275_v5 = vld [vmem:[%s1720_s1 + $0xc8] sm:$0xff]   ;;  %v1279_v9 = vld [vmem:[%s1720_s1 + $0xd0] sm:$0xff]  }
   0x3   :  { %v1272_v2 = vld [vmem:[%s1720_s1] sm:$0xff]   ;;  %1162 = vmatprep.subr.bf16.mxu1 %v1271_v1  ;;  %v1276_v6 = vld [vmem:[%s1720_s1 + $0x8] sm:$0xff]   ;;  %v1280_v10 = vld [vmem:[%s1720_s1 + $0x10] sm:$0xff]  }
   0x4   :  { %v1273_v3 = vld [vmem:[%s1720_s1 + $0x80] sm:$0xff]   ;;  %1099 = vmatpush3.bf16.msra.mxu0 %v1272_v2  ;;  %v1277_v7 = vld [vmem:[%s1720_s1 + $0x88] sm:$0xff]   ;;  %v1281_v11 = vld [vmem:[%s1720_s1 + $0x90] sm:$0xff]  }
   0x5   :  { %1163 = vmatpush3.bf16.msra.mxu1 %v1273_v3  ;;  %1100 = vmatprep.subr.bf16.mxu0 %v1274_v4  ;;  %v1282_v12 = vld [vmem:[%s1720_s1 + $0x58] sm:$0xff]   ;;  %v1286_v16 = vld [vmem:[%s1720_s1 + $0x60] sm:$0xff]   ;;  %v1290_v20 = vld [vmem:[%s1720_s1 + $0x68] sm:$0xff]  }
   0x6   :  { %1164 = vmatprep.subr.bf16.mxu1 %v1275_v5  ;;  %v1283_v13 = vld [vmem:[%s1720_s1 + $0xd8] sm:$0xff]   ;;  %v1287_v17 = vld [vmem:[%s1720_s1 + $0xe0] sm:$0xff]   ;;  %v1291_v21 = vld [vmem:[%s1720_s1 + $0xe8] sm:$0xff]  }
   0x7   :  { %v1284_v14 = vld [vmem:[%s1720_s1 + $0x18] sm:$0xff]   ;;  %v1288_v18 = vld [vmem:[%s1720_s1 + $0x20] sm:$0xff]   ;;  %v1292_v22 = vld [vmem:[%s1720_s1 + $0x28] sm:$0xff]  }
   0x8   :  { %1101 = vmatpush3.bf16.msra.mxu0 %v1276_v6  ;;  %v1285_v15 = vld [vmem:[%s1720_s1 + $0x98] sm:$0xff]   ;;  %v1289_v19 = vld [vmem:[%s1720_s1 + $0xa0] sm:$0xff]   ;;  %v1293_v23 = vld [vmem:[%s1720_s1 + $0xa8] sm:$0xff]  }
   0x9   :  { %1165 = vmatpush3.bf16.msra.mxu1 %v1277_v7  ;;  %1102 = vmatprep.subr.bf16.mxu0 %v1278_v8  ;;  %v1294_v24 = vld [vmem:[%s1720_s1 + $0x70] sm:$0xff]   ;;  %v1298_v28 = vld [vmem:[%s1720_s1 + $0x78] sm:$0xff]   ;;  %v1307_v35 = vld [vmem:[%s1721_s0 + $0xc] ss:$20 sps:$4 sm:$0xff]  }
   0xa   :  { %1166 = vmatprep.subr.bf16.mxu1 %v1279_v9  ;;  %v1295_v25 = vld [vmem:[%s1720_s1 + $0xf0] sm:$0xff]   ;;  %v1299_v29 = vld [vmem:[%s1720_s1 + $0xf8] sm:$0xff]   ;;  %v1308_v36 = vld [vmem:[%s1720_s1 + $0x100] sm:$0xff]   ;;  %741 = vmatprep.mubr.bf16.mxu1 %v1307_v35 }
   0xb   :  { %v1296_v26 = vld [vmem:[%s1720_s1 + $0x30] sm:$0xff]   ;;  %v1300_v30 = vld [vmem:[%s1720_s1 + $0x38] sm:$0xff]   ;;  %v1309_v37 = vld [vmem:[%s1721_s0 + $0x2c] ss:$20 sps:$4 sm:$0xff]  }
   0xc   :  { %1103 = vmatpush3.bf16.msra.mxu0 %v1280_v10  ;;  %v1297_v27 = vld [vmem:[%s1720_s1 + $0xb0] sm:$0xff]   ;;  %v1301_v31 = vld [vmem:[%s1720_s1 + $0xb8] sm:$0xff]   ;;  %v1321_v42 = vld [vmem:[%s1720_s1 + $0x108] sm:$0xff]  }
   0xd   :  { %1167 = vmatpush3.bf16.msra.mxu1 %v1281_v11  ;;  %1104 = vmatprep.subr.bf16.mxu0 %v1282_v12  ;;  %v1302_v32 = vld [vmem:[%s1721_s0] ss:$20 sps:$4 sm:$0xff]   ;;  %v1304_v33 = vld [vmem:[%s1721_s0 + $0x4] ss:$20 sps:$4 sm:$0xff]   ;;  %v1305_v34 = vld [vmem:[%s1721_s0 + $0x8] ss:$20 sps:$4 sm:$0xff]  }
   0xe   :  { %1168 = vmatprep.subr.bf16.mxu1 %v1283_v13  ;;  %644 = vmatprep.mubr.bf16.mxu0 %v1304_v33  ;;  %v1311_v38 = vld [vmem:[%s1721_s0 + $0x34] ss:$20 sps:$4 sm:$0xff]   ;;  %v1314_v40 = vld [vmem:[%s1721_s0 + $0x30] ss:$20 sps:$4 sm:$0xff]   ;;  %v1320_v45 = vld [vmem:[%s1721_s0 + $0x58] ss:$20 sps:$4 sm:$0xff]  }
   0xf   :  { %v1313_v39 = vld [vmem:[%s1721_s0 + $0x28] ss:$20 sps:$4 sm:$0xff]   ;;  %v1319_v44 = vld [vmem:[%s1721_s0 + $0x50] ss:$20 sps:$4 sm:$0xff]   ;;  %v1326_v50 = vld [vmem:[%s1721_s0 + $0x78] ss:$20 sps:$4 sm:$0xff]  }
  0x10   :  { %1105 = vmatpush3.bf16.msra.mxu0 %v1284_v14  ;;  %v1315_v41 = vld [vmem:[%s1721_s0 + $0x54] ss:$20 sps:$4 sm:$0xff]   ;;  %v1317_v43 = vld [vmem:[%s1721_s0 + $0x5c] ss:$20 sps:$4 sm:$0xff]   ;;  %v1324_v48 = vld [vmem:[%s1721_s0 + $0x84] ss:$20 sps:$4 sm:$0xff]  }
  0x11   :  { %1169 = vmatpush3.bf16.msra.mxu1 %v1285_v15  ;;  %1106 = vmatprep.subr.bf16.mxu0 %v1286_v16  ;;  %v1334_v46 = vld [vmem:[%s1720_s1 + $0x110] sm:$0xff]   ;;  %v1347_v49 = vld [vmem:[%s1720_s1 + $0x118] sm:$0xff]   ;;  %v1330_v53 = vld [vmem:[%s1721_s0 + $0xac] ss:$20 sps:$4 sm:$0xff]  }
  0x12   :  { %1170 = vmatprep.subr.bf16.mxu1 %v1287_v17  ;;  %v1322_v47 = vld [vmem:[%s1721_s0 + $0x7c] ss:$20 sps:$4 sm:$0xff]   ;;  %v1327_v51 = vld [vmem:[%s1721_s0 + $0x80] ss:$20 sps:$4 sm:$0xff]   ;;  %v1328_v52 = vld [vmem:[%s1721_s0 + $0xa4] ss:$20 sps:$4 sm:$0xff]  }
  0x13   :  { %v1332_v54 = vld [vmem:[%s1721_s0 + $0xa0] ss:$20 sps:$4 sm:$0xff]   ;;  %v1333_v55 = vld [vmem:[%s1721_s0 + $0xa8] ss:$20 sps:$4 sm:$0xff]   ;;  %v1340_v59 = vld [vmem:[%s1721_s0 + $0xd0] ss:$20 sps:$4 sm:$0xff]  }
  0x14   :  { %1107 = vmatpush3.bf16.msra.mxu0 %v1288_v18  ;;  %v1335_v56 = vld [vmem:[%s1721_s0 + $0xcc] ss:$20 sps:$4 sm:$0xff]   ;;  %v1337_v57 = vld [vmem:[%s1721_s0 + $0xd4] ss:$20 sps:$4 sm:$0xff]   ;;  %v1343_v61 = vld [vmem:[%s1721_s0 + $0xfc] ss:$20 sps:$4 sm:$0xff]  }
  0x15   :  { %1171 = vmatpush3.bf16.msra.mxu1 %v1289_v19  ;;  %1108 = vmatprep.subr.bf16.mxu0 %v1290_v20  ;;  %v1339_v58 = vld [vmem:[%s1721_s0 + $0xc8] ss:$20 sps:$4 sm:$0xff]   ;;  %v1345_v62 = vld [vmem:[%s1721_s0 + $0xf0] ss:$20 sps:$4 sm:$0xff]   ;;  %v1346_v63 = vld [vmem:[%s1721_s0 + $0xf8] ss:$20 sps:$4 sm:$0xff]  }
  0x16   :  { %1172 = vmatprep.subr.bf16.mxu1 %v1291_v21  ;;  %v1341_v60 = vld [vmem:[%s1721_s0 + $0xf4] ss:$20 sps:$4 sm:$0xff]   ;;  %v1348_v0 = vld [vmem:[%s1721_s0 + $0x11c] ss:$20 sps:$4 sm:$0xff]   ;;  %v1350_v1 = vld [vmem:[%s1721_s0 + $0x124] ss:$20 sps:$4 sm:$0xff]  }
  0x17   :  { %v1352_v2 = vld [vmem:[%s1721_s0 + $0x118] ss:$20 sps:$4 sm:$0xff]   ;;  %v1353_v3 = vld [vmem:[%s1721_s0 + $0x120] ss:$20 sps:$4 sm:$0xff]   ;;  %v1354_v4 = vld [vmem:[%s1721_s0 + $0x10] ss:$20 sps:$4 sm:$0xff]  }
  0x18   :  { %1109 = vmatpush3.bf16.msra.mxu0 %v1292_v22  ;;  %v1355_v5 = vld [vmem:[%s1721_s0 + $0xb0] ss:$20 sps:$4 sm:$0xff]   ;;  %v1356_v6 = vld [vmem:[%s1721_s0 + $0x38] ss:$20 sps:$4 sm:$0xff]   ;;  %v1358_v8 = vld [vmem:[%s1721_s0 + $0x60] ss:$20 sps:$4 sm:$0xff]  }
  0x19   :  { %1173 = vmatpush3.bf16.msra.mxu1 %v1293_v23  ;;  %1110 = vmatprep.subr.bf16.mxu0 %v1294_v24  ;;  %v1357_v7 = vld [vmem:[%s1721_s0 + $0xd8] ss:$20 sps:$4 sm:$0xff]   ;;  %v1359_v9 = vld [vmem:[%s1721_s0 + $0x100] ss:$20 sps:$4 sm:$0xff]   ;;  %v1360_v10 = vld [vmem:[%s1721_s0 + $0x88] ss:$20 sps:$4 sm:$0xff]  }
  0x1a   :  { %1174 = vmatprep.subr.bf16.mxu1 %v1295_v25  ;;  %v1361_v11 = vld [vmem:[%s1721_s0 + $0x128] ss:$20 sps:$4 sm:$0xff]  }
  0x1c   :  { %1111 = vmatpush3.bf16.msra.mxu0 %v1296_v26 }
  0x1d   :  { %1175 = vmatpush3.bf16.msra.mxu1 %v1297_v27  ;;  %1112 = vmatprep.subr.bf16.mxu0 %v1298_v28 }
  0x1e   :  { %1176 = vmatprep.subr.bf16.mxu1 %v1299_v29 }
  0x20   :  { %1113 = vmatpush3.bf16.msra.mxu0 %v1300_v30 }
  0x21   :  { %1177 = vmatpush3.bf16.msra.mxu1 %v1301_v31  ;;  %1238 = vmatprep.subr.bf16.mxu0 %v1308_v36 }
  0x22   :  { %1262 = vmatprep.subr.bf16.mxu1 %v1308_v36 }
  0x23   :  { %645 = vmatmul.mubr.bf16.vlgmr.msra.gmra.mrb[0].mxu0 %v1302_v32 }
  0x24   :  { %742 = vmatmul.mubr.bf16.vlgmr.msra.gmra.mrb[0].mxu1 %v1305_v34  ;;  %1239 = vmatpush3.bf16.msra.mxu0 %v1308_v36 }
  0x25   :  { %1266 = vmatpush3.bf16.msra.mxu1 %v1308_v36  ;;  %652 = vmatprep.mubr.bf16.mxu0 %v1309_v37 }
  0x26   :  { %749 = vmatprep.mubr.bf16.mxu1 %v1311_v38  ;;  %1240 = vmatprep.subr.bf16.mxu0 %v1321_v42 }
  0x27   :  { %1263 = vmatprep.subr.bf16.mxu1 %v1321_v42 }
  0x28   :  { %1241 = vmatpush3.bf16.msra.mxu0 %v1321_v42 }
  0x29   :  { %1267 = vmatpush3.bf16.msra.mxu1 %v1321_v42  ;;  %1242 = vmatprep.subr.bf16.mxu0 %v1334_v46 }
  0x2a   :  { %1264 = vmatprep.subr.bf16.mxu1 %v1334_v46 }
  0x2b   :  { %653 = vmatmul.mubr.bf16.gmra.mrb[4].mxu0 %v1313_v39 }
  0x2c   :  { %750 = vmatmul.mubr.bf16.gmra.mrb[4].mxu1 %v1314_v40  ;;  %660 = vmatprep.mubr.bf16.mxu0 %v1315_v41 }
  0x2d   :  { %757 = vmatprep.mubr.bf16.mxu1 %v1317_v43  ;;  %1243 = vmatpush3.bf16.msra.mxu0 %v1334_v46 }
  0x2e   :  { %1268 = vmatpush3.bf16.msra.mxu1 %v1334_v46  ;;  %1244 = vmatprep.subr.bf16.mxu0 %v1347_v49 }
  0x2f   :  { %1265 = vmatprep.subr.bf16.mxu1 %v1347_v49 }
  0x31   :  { %1245 = vmatpush3.bf16.msra.mxu0 %v1347_v49 }
  0x32   :  { %1269 = vmatpush3.bf16.msra.mxu1 %v1347_v49 }
  0x33   :  { %661 = vmatmul.mubr.bf16.gmra.mrb[8].mxu0 %v1319_v44 }
  0x34   :  { %758 = vmatmul.mubr.bf16.gmra.mrb[8].mxu1 %v1320_v45  ;;  %668 = vmatprep.mubr.bf16.mxu0 %v1322_v47 }
  0x35   :  { %765 = vmatprep.mubr.bf16.mxu1 %v1324_v48 }
  0x3b   :  { %669 = vmatmul.mubr.bf16.gmra.mrb[12].mxu0 %v1326_v50 }
  0x3c   :  { %766 = vmatmul.mubr.bf16.gmra.mrb[12].mxu1 %v1327_v51  ;;  %676 = vmatprep.mubr.bf16.mxu0 %v1328_v52 }
  0x3d   :  { %773 = vmatprep.mubr.bf16.mxu1 %v1330_v53 }
  0x43   :  { %677 = vmatmul.mubr.bf16.gmra.mrb[16].mxu0 %v1332_v54 }
  0x44   :  { %774 = vmatmul.mubr.bf16.gmra.mrb[16].mxu1 %v1333_v55  ;;  %684 = vmatprep.mubr.bf16.mxu0 %v1335_v56 }
  0x45   :  { %781 = vmatprep.mubr.bf16.mxu1 %v1337_v57 }
  0x4b   :  { %685 = vmatmul.mubr.bf16.gmra.mrb[20].mxu0 %v1339_v58 }
  0x4c   :  { %782 = vmatmul.mubr.bf16.gmra.mrb[20].mxu1 %v1340_v59  ;;  %692 = vmatprep.mubr.bf16.mxu0 %v1341_v60 }
  0x4d   :  { %789 = vmatprep.mubr.bf16.mxu1 %v1343_v61 }
  0x53   :  { %693 = vmatmul.mubr.bf16.gmra.mrb[24].mxu0 %v1345_v62 }
  0x54   :  { %790 = vmatmul.mubr.bf16.gmra.mrb[24].mxu1 %v1346_v63  ;;  %700 = vmatprep.mubr.bf16.mxu0 %v1348_v0 }
  0x55   :  { %797 = vmatprep.mubr.bf16.mxu1 %v1350_v1 }
  0x5b   :  { %701 = vmatmul.mubr.bf16.gmra.mrb[28].mxu0 %v1352_v2 }
  0x5c   :  { %798 = vmatmul.mubr.bf16.gmra.mrb[28].mxu1 %v1353_v3  ;;  %1246 = vmatprep.mubr.msk.bf16.mxu0 %vm587_vm0, %v1354_v4 }
  0x5d   :  { %1254 = vmatprep.mubr.msk.bf16.mxu1 %vm587_vm0, %v1355_v5 }
  0x63   :  { %1247 = vmatmul.mubr.msk.bf16.vlgmr.msra.gmra.mrb[32].mxu0 %vm587_vm0, %v1356_v6 }
  0x64   :  { %1255 = vmatmul.mubr.msk.bf16.vlgmr.msra.gmra.mrb[32].mxu1 %vm587_vm0, %v1357_v7  ;;  %1250 = vmatprep.mubr.msk.bf16.mxu0 %vm587_vm0, %v1358_v8 }
  0x65   :  { %1258 = vmatprep.mubr.msk.bf16.mxu1 %vm587_vm0, %v1359_v9 }
  0x6b   :  { %1251 = vmatmul.mubr.msk.bf16.gmra.mrb[36].mxu0 %vm587_vm0, %v1360_v10 }
  0x6c   :  { %1259 = vmatmul.mubr.msk.bf16.gmra.mrb[36].mxu1 %vm587_vm0, %v1361_v11 }
  0xf6   :  { %v1114_v12 = vpop.f32.mrb[0].mxu0 }
  0xf7   :  { %v1178_v13 = vpop.f32.mrb[0].mxu1  ;;  %v1115_v14 = vpop.f32.mrb[1].mxu0 }
  0xf8   :  { %v1116_v15 = vadd.f32 %v1115_v14, %v1114_v12  ;;  %v1179_v16 = vpop.f32.mrb[1].mxu1  ;;  %v1117_v17 = vpop.f32.mrb[2].mxu0 }
  0xf9   :  { %v1180_v18 = vadd.f32 %v1179_v16, %v1178_v13  ;;  %v1181_v19 = vpop.f32.mrb[2].mxu1  ;;  %v1118_v20 = vpop.f32.mrb[3].mxu0 }
  0xfa   :  { %v1119_v21 = vadd.f32 %v1118_v20, %v1117_v17  ;;  %v1182_v22 = vpop.f32.mrb[3].mxu1 }
  0xfb   :  { %v1183_v23 = vadd.f32 %v1182_v22, %v1181_v19  ;;  %v1618_v24 = vadd.f32 %v1180_v18, %v1116_v15 }
  0xfd   :  { %v1620_v25 = vadd.f32 %v1183_v23, %v1119_v21 }
  0xfe   :  { %v1120_v26 = vpop.f32.mrb[4].mxu0 }
  0xff   :  { %v1184_v27 = vpop.f32.mrb[4].mxu1  ;;  %v1121_v28 = vpop.f32.mrb[5].mxu0 }
 0x100   :  { %v1122_v29 = vadd.f32 %v1121_v28, %v1120_v26  ;;  %v1185_v30 = vpop.f32.mrb[5].mxu1  ;;  %v1123_v31 = vpop.f32.mrb[6].mxu0 }
 0x101   :  { %v1186_v32 = vadd.f32 %v1185_v30, %v1184_v27  ;;  %v1187_v33 = vpop.f32.mrb[6].mxu1  ;;  %v1124_v34 = vpop.f32.mrb[7].mxu0 }
 0x102   :  { %v1125_v35 = vadd.f32 %v1124_v34, %v1123_v31  ;;  %v1188_v36 = vpop.f32.mrb[7].mxu1 }
 0x103   :  { %v1189_v37 = vadd.f32 %v1188_v36, %v1187_v33  ;;  %v1622_v38 = vadd.f32 %v1186_v32, %v1122_v29 }
 0x105   :  { %v1624_v39 = vadd.f32 %v1189_v37, %v1125_v35 }
 0x106   :  { %v1126_v40 = vpop.f32.mrb[8].mxu0 }
 0x107   :  { %v1190_v41 = vpop.f32.mrb[8].mxu1  ;;  %v1127_v42 = vpop.f32.mrb[9].mxu0 }
 0x108   :  { %v1128_v43 = vadd.f32 %v1127_v42, %v1126_v40  ;;  %v1191_v44 = vpop.f32.mrb[9].mxu1  ;;  %v1129_v45 = vpop.f32.mrb[10].mxu0 }
 0x109   :  { %v1192_v46 = vadd.f32 %v1191_v44, %v1190_v41  ;;  %v1193_v47 = vpop.f32.mrb[10].mxu1  ;;  %v1130_v48 = vpop.f32.mrb[11].mxu0 }
 0x10a   :  { %v1131_v49 = vadd.f32 %v1130_v48, %v1129_v45  ;;  %v1194_v50 = vpop.f32.mrb[11].mxu1 }
 0x10b   :  { %v1195_v51 = vadd.f32 %v1194_v50, %v1193_v47  ;;  %v1626_v52 = vadd.f32 %v1192_v46, %v1128_v43 }
 0x10d   :  { %v1628_v53 = vadd.f32 %v1195_v51, %v1131_v49 }
 0x10e   :  { %v1132_v54 = vpop.f32.mrb[12].mxu0 }
 0x10f   :  { %v1196_v55 = vpop.f32.mrb[12].mxu1  ;;  %v1133_v56 = vpop.f32.mrb[13].mxu0 }
 0x110   :  { %v1134_v57 = vadd.f32 %v1133_v56, %v1132_v54  ;;  %v1197_v58 = vpop.f32.mrb[13].mxu1  ;;  %v1135_v59 = vpop.f32.mrb[14].mxu0 }
 0x111   :  { %v1198_v60 = vadd.f32 %v1197_v58, %v1196_v55  ;;  %v1199_v61 = vpop.f32.mrb[14].mxu1  ;;  %v1136_v62 = vpop.f32.mrb[15].mxu0 }
 0x112   :  { %v1137_v63 = vadd.f32 %v1136_v62, %v1135_v59  ;;  %v1200_v0 = vpop.f32.mrb[15].mxu1 }
 0x113   :  { %v1201_v1 = vadd.f32 %v1200_v0, %v1199_v61  ;;  %v1630_v2 = vadd.f32 %v1198_v60, %v1134_v57 }
 0x115   :  { %v1632_v3 = vadd.f32 %v1201_v1, %v1137_v63 }
 0x116   :  { %v1138_v4 = vpop.f32.mrb[16].mxu0 }
 0x117   :  { %v1202_v5 = vpop.f32.mrb[16].mxu1  ;;  %v1139_v6 = vpop.f32.mrb[17].mxu0 }
 0x118   :  { %v1140_v7 = vadd.f32 %v1139_v6, %v1138_v4  ;;  %v1203_v8 = vpop.f32.mrb[17].mxu1  ;;  %v1141_v9 = vpop.f32.mrb[18].mxu0 }
 0x119   :  { %v1204_v10 = vadd.f32 %v1203_v8, %v1202_v5  ;;  %v1205_v11 = vpop.f32.mrb[18].mxu1  ;;  %v1142_v12 = vpop.f32.mrb[19].mxu0  ;;  %v1643_v5 = vld [vmem:[%s1722_s2] ss:$0 sm:$0xff] }
 0x11a   :  { %v1143_v13 = vadd.f32 %v1142_v12, %v1141_v9  ;;  %v1206_v14 = vpop.f32.mrb[19].mxu1 }
 0x11b   :  { %v1207_v15 = vadd.f32 %v1206_v14, %v1205_v11  ;;  %v776_v16 = vadd.f32 %v1204_v10, %v1140_v7 }
 0x11d   :  { %v1634_v17 = vadd.f32 %v1207_v15, %v1143_v13 }
 0x11e   :  { %v1144_v18 = vpop.f32.mrb[20].mxu0 }
 0x11f   :  { %v1208_v19 = vpop.f32.mrb[20].mxu1  ;;  %v1145_v20 = vpop.f32.mrb[21].mxu0 }
 0x120   :  { %v1146_v21 = vadd.f32 %v1145_v20, %v1144_v18  ;;  %v1209_v22 = vpop.f32.mrb[21].mxu1  ;;  %v1147_v23 = vpop.f32.mrb[22].mxu0 }
 0x121   :  { %v1210_v26 = vadd.f32 %v1209_v22, %v1208_v19  ;;  %v1211_v27 = vpop.f32.mrb[22].mxu1  ;;  %v1148_v28 = vpop.f32.mrb[23].mxu0 }
 0x122   :  { %v1149_v29 = vadd.f32 %v1148_v28, %v1147_v23  ;;  %v1212_v30 = vpop.f32.mrb[23].mxu1 }
 0x123   :  { %v1213_v31 = vadd.f32 %v1212_v30, %v1211_v27  ;;  %v784_v32 = vadd.f32 %v1210_v26, %v1146_v21 }
 0x125   :  { %v787_v33 = vadd.f32 %v1213_v31, %v1149_v29 }
 0x126   :  { %v1150_v34 = vpop.f32.mrb[24].mxu0 }
 0x127   :  { %v1214_v35 = vpop.f32.mrb[24].mxu1  ;;  %v1151_v36 = vpop.f32.mrb[25].mxu0 }
 0x128   :  { %v1152_v37 = vadd.f32 %v1151_v36, %v1150_v34  ;;  %v1215_v40 = vpop.f32.mrb[25].mxu1  ;;  %v1153_v41 = vpop.f32.mrb[26].mxu0 }
 0x129   :  { %v1216_v42 = vadd.f32 %v1215_v40, %v1214_v35  ;;  %v1217_v43 = vpop.f32.mrb[26].mxu1  ;;  %v1154_v44 = vpop.f32.mrb[27].mxu0 }
 0x12a   :  { %v1155_v45 = vadd.f32 %v1154_v44, %v1153_v41  ;;  %v1218_v46 = vpop.f32.mrb[27].mxu1 }
 0x12b   :  { %v1219_v47 = vadd.f32 %v1218_v46, %v1217_v43  ;;  %v1636_v48 = vadd.f32 %v1216_v42, %v1152_v37 }
 0x12d   :  { %v1638_v49 = vadd.f32 %v1219_v47, %v1155_v45 }
 0x12e   :  { %v1156_v50 = vpop.f32.mrb[28].mxu0 }
 0x12f   :  { %v1220_v51 = vpop.f32.mrb[28].mxu1  ;;  %v1157_v54 = vpop.f32.mrb[29].mxu0 }
 0x130   :  { %v1158_v55 = vadd.f32 %v1157_v54, %v1156_v50  ;;  %v1221_v56 = vpop.f32.mrb[29].mxu1  ;;  %v1159_v57 = vpop.f32.mrb[30].mxu0 }
 0x131   :  { %v1222_v58 = vadd.f32 %v1221_v56, %v1220_v51  ;;  %v1223_v59 = vpop.f32.mrb[30].mxu1  ;;  %v1160_v60 = vpop.f32.mrb[31].mxu0 }
 0x132   :  { %v1161_v61 = vadd.f32 %v1160_v60, %v1159_v57  ;;  %v1224_v62 = vpop.f32.mrb[31].mxu1 }
 0x133   :  { %v1225_v63 = vadd.f32 %v1224_v62, %v1223_v59  ;;  %v800_v0 = vadd.f32 %v1222_v58, %v1158_v55 }
 0x135   :  { %v803_v1 = vadd.f32 %v1225_v63, %v1161_v61 }
 0x136   :  { %v1248_v4 = vpop.f32.mrb[32].mxu0 }
 0x137   :  { %v849_v6 = vadd.f32 %v1248_v4, %v1622_v38  ;;  %v1256_v7 = vpop.f32.mrb[32].mxu1  ;;  %v840_v8 = vpop.f32.mrb[33].mxu0 }
 0x138   :  { %v881_v9 = vadd.f32 %v1256_v7, %v784_v32  ;;  %v841_v10 = vadd.f32 %v840_v8, %v1618_v24  ;;  %v872_v11 = vpop.f32.mrb[33].mxu1  ;;  %v1249_v12 = vpop.f32.mrb[34].mxu0 }
 0x139   :  { %v963_v13 = vadd.f32 %v1643_v5, %v849_v6  ;;  %v873_v14 = vadd.f32 %v872_v11, %v776_v16  ;;  %v852_v15 = vadd.f32 %v1249_v12, %v1624_v39  ;;  %v1257_v18 = vpop.f32.mrb[34].mxu1  ;;  %v843_v19 = vpop.f32.mrb[35].mxu0 }
 0x13a   :  { %v971_v20 = vadd.f32 %v1643_v5, %v881_v9  ;;  %v961_v21 = vadd.f32 %v1643_v5, %v841_v10  ;;  %v884_v22 = vadd.f32 %v1257_v18, %v787_v33  ;;  %v844_v38 = vadd.f32 %v843_v19, %v1620_v25  ;;  %v875_v23 = vpop.f32.mrb[35].mxu1 }
 0x13b   :  { %v979_v26 = vmax.f32 %v963_v13, 0.0  ;;  %v969_v24 = vadd.f32 %v1643_v5, %v873_v14  ;;  %v964_v27 = vadd.f32 %v1643_v5, %v852_v15  ;;  %v876_v28 = vadd.f32 %v875_v23, %v1634_v17 }
 0x13c   :  { %v987_v16 = vmax.f32 %v971_v20, 0.0  ;;  %v977_v29 = vmax.f32 %v961_v21, 0.0  ;;  %v972_v39 = vadd.f32 %v1643_v5, %v884_v22  ;;  %v962_v30 = vadd.f32 %v1643_v5, %v844_v38 }
 0x13d   :  { %995 = vst [vmem:[%s1723_s3 + $0x10] sm:$0xff] %v979_v26  ;;  %v985_v31 = vmax.f32 %v969_v24, 0.0  ;;  %v980_v25 = vmax.f32 %v964_v27, 0.0  ;;  %v970_v32 = vadd.f32 %v1643_v5, %v876_v28 }
 0x13e   :  { %1003 = vst [vmem:[%s1723_s3 + $0x50] sm:$0xff] %v987_v16  ;;  %993 = vst [vmem:[%s1723_s3] sm:$0xff] %v977_v29  ;;  %v988_v17 = vmax.f32 %v972_v39, 0.0  ;;  %v978_v33 = vmax.f32 %v962_v30, 0.0  ;;  %v1252_v34 = vpop.f32.mrb[36].mxu0 }
 0x13f   :  { %1001 = vst [vmem:[%s1723_s3 + $0x40] sm:$0xff] %v985_v31  ;;  %996 = vst [vmem:[%s1723_s3 + $0x18] sm:$0xff] %v980_v25  ;;  %v986_v35 = vmax.f32 %v970_v32, 0.0  ;;  %v865_v36 = vadd.f32 %v1252_v34, %v1630_v2  ;;  %v1260_v37 = vpop.f32.mrb[36].mxu1  ;;  %v856_v40 = vpop.f32.mrb[37].mxu0 }
 0x140   :  { %1004 = vst [vmem:[%s1723_s3 + $0x58] sm:$0xff] %v988_v17  ;;  %994 = vst [vmem:[%s1723_s3 + $0x8] sm:$0xff] %v978_v33  ;;  %v897_v41 = vadd.f32 %v1260_v37, %v800_v0  ;;  %v857_v42 = vadd.f32 %v856_v40, %v1626_v52  ;;  %v888_v43 = vpop.f32.mrb[37].mxu1  ;;  %v1253_v44 = vpop.f32.mrb[38].mxu0 }
 0x141   :  { %1002 = vst [vmem:[%s1723_s3 + $0x48] sm:$0xff] %v986_v35  ;;  %v967_v2 = vadd.f32 %v1643_v5, %v865_v36  ;;  %v889_v45 = vadd.f32 %v888_v43, %v1636_v48  ;;  %v868_v46 = vadd.f32 %v1253_v44, %v1632_v3  ;;  %v1261_v47 = vpop.f32.mrb[38].mxu1  ;;  %v859_v50 = vpop.f32.mrb[39].mxu0 }
 0x142   :  { %v975_v51 = vadd.f32 %v1643_v5, %v897_v41  ;;  %v965_v54 = vadd.f32 %v1643_v5, %v857_v42  ;;  %v900_v55 = vadd.f32 %v1261_v47, %v803_v1  ;;  %v860_v52 = vadd.f32 %v859_v50, %v1628_v53  ;;  %v891_v56 = vpop.f32.mrb[39].mxu1 }
 0x143   :  { %v983_v57 = vmax.f32 %v967_v2, 0.0  ;;  %v973_v58 = vadd.f32 %v1643_v5, %v889_v45  ;;  %v968_v59 = vadd.f32 %v1643_v5, %v868_v46  ;;  %v892_v60 = vadd.f32 %v891_v56, %v1638_v49 }
 0x144   :  { %v991_v48 = vmax.f32 %v975_v51, 0.0  ;;  %v981_v61 = vmax.f32 %v965_v54, 0.0  ;;  %v976_v3 = vadd.f32 %v1643_v5, %v900_v55  ;;  %v966_v62 = vadd.f32 %v1643_v5, %v860_v52 }
 0x145   :  { %999 = vst [vmem:[%s1723_s3 + $0x30] sm:$0xff] %v983_v57  ;;  %v989_v63 = vmax.f32 %v973_v58, 0.0  ;;  %v984_v53 = vmax.f32 %v968_v59, 0.0  ;;  %v974_v0 = vadd.f32 %v1643_v5, %v892_v60 }
 0x146   :  { %1007 = vst [vmem:[%s1723_s3 + $0x70] sm:$0xff] %v991_v48  ;;  %997 = vst [vmem:[%s1723_s3 + $0x20] sm:$0xff] %v981_v61  ;;  %v992_v49 = vmax.f32 %v976_v3, 0.0  ;;  %v982_v1 = vmax.f32 %v966_v62, 0.0 }
 0x147   :  { %1005 = vst [vmem:[%s1723_s3 + $0x60] sm:$0xff] %v989_v63  ;;  %1000 = vst [vmem:[%s1723_s3 + $0x38] sm:$0xff] %v984_v53  ;;  %v990_v4 = vmax.f32 %v974_v0, 0.0 }
 0x148   :  { %1008 = vst [vmem:[%s1723_s3 + $0x78] sm:$0xff] %v992_v49  ;;  %998 = vst [vmem:[%s1723_s3 + $0x28] sm:$0xff] %v982_v1 }
 0x149   :  { %1006 = vst [vmem:[%s1723_s3 + $0x68] sm:$0xff] %v990_v4 }

// kernel: _net_forward_padded.16
= control target key start
LH: loop header
LB: loop body
LE: loop exit
PB: predicated region body
PF: predicated region fallthrough
CT: control target
= control target key end

     0   :  { %vm139_vm0 = vcmask 523264   ;;  %s547_s1 = inlined_call_operand.vmem [shape: bf16[64,128], index: 1, kind: input, shape index: {}]   ;;  %s548_s0 = inlined_call_operand.vmem [shape: bf16[128,64], index: 0, kind: input, shape index: {}]   ;;  %s549_s2 = inlined_call_operand.vmem [shape: f32[1,128], index: 2, kind: input, shape index: {}]   ;;  %s550_s3 = inlined_call_operand.vmem [shape: f32[128,128], index: 3, kind: output, shape index: {}]  }
   0x1   :  { %v420_v0 = vld [vmem:[%s547_s1] sm:$0xff]   ;;  %v421_v1 = vld [vmem:[%s547_s1 + $0x8] sm:$0xff]   ;;  %v422_v2 = vld [vmem:[%s547_s1 + $0x10] sm:$0xff]  }
   0x2   :  { %388 = vmatprep.subr.bf16.mxu0 %v420_v0  ;;  %412 = vmatprep.subr.bf16.mxu1 %v420_v0  ;;  %v424_v3 = vld [vmem:[%s548_s0] sm:$0xff]   ;;  %v423_v5 = vld [vmem:[%s547_s1 + $0x18] sm:$0xff]   ;;  %v426_v6 = vld [vmem:[%s548_s0 + $0x8] sm:$0xff]  }
   0x3   :  { %389 = vmatpush3.bf16.msra.mxu0 %v420_v0  ;;  %416 = vmatpush3.bf16.msra.mxu1 %v420_v0  ;;  %v425_v4 = vld [vmem:[%s548_s0 + $0x20] sm:$0xff]   ;;  %v427_v7 = vld [vmem:[%s548_s0 + $0x28] sm:$0xff]   ;;  %v428_v8 = vld [vmem:[%s548_s0 + $0x10] sm:$0xff]  }
   0x4   :  { %390 = vmatprep.subr.bf16.mxu0 %v421_v1  ;;  %413 = vmatprep.subr.bf16.mxu1 %v421_v1  ;;  %v429_v9 = vld [vmem:[%s548_s0 + $0x30] sm:$0xff]   ;;  %v430_v10 = vld [vmem:[%s548_s0 + $0x18] sm:$0xff]   ;;  %v375_v12 = vld [vmem:[%s549_s2] ss:$0 sm:$0xff] }
   0x5   :  { %396 = vmatprep.mubr.msk.bf16.mxu0 %vm139_vm0, %v424_v3  ;;  %404 = vmatprep.mubr.msk.bf16.mxu1 %vm139_vm0, %v425_v4  ;;  %v431_v11 = vld [vmem:[%s548_s0 + $0x38] sm:$0xff]  }
   0x7   :  { %391 = vmatpush3.bf16.msra.mxu0 %v421_v1  ;;  %417 = vmatpush3.bf16.msra.mxu1 %v421_v1 }
   0x8   :  { %392 = vmatprep.subr.bf16.mxu0 %v422_v2  ;;  %414 = vmatprep.subr.bf16.mxu1 %v422_v2 }
   0xb   :  { %393 = vmatpush3.bf16.msra.mxu0 %v422_v2  ;;  %418 = vmatpush3.bf16.msra.mxu1 %v422_v2 }
   0xc   :  { %394 = vmatprep.subr.bf16.mxu0 %v423_v5  ;;  %415 = vmatprep.subr.bf16.mxu1 %v423_v5 }
   0xf   :  { %395 = vmatpush3.bf16.msra.mxu0 %v423_v5  ;;  %419 = vmatpush3.bf16.msra.mxu1 %v423_v5 }
  0x12   :  { %397 = vmatmul.mubr.msk.bf16.vlgmr.msra.gmra.mrb[0].mxu0 %vm139_vm0, %v426_v6  ;;  %405 = vmatmul.mubr.msk.bf16.vlgmr.msra.gmra.mrb[0].mxu1 %vm139_vm0, %v427_v7 }
  0x13   :  { %400 = vmatprep.mubr.msk.bf16.mxu0 %vm139_vm0, %v428_v8  ;;  %408 = vmatprep.mubr.msk.bf16.mxu1 %vm139_vm0, %v429_v9 }
  0x1a   :  { %401 = vmatmul.mubr.msk.bf16.gmra.mrb[4].mxu0 %vm139_vm0, %v430_v10  ;;  %409 = vmatmul.mubr.msk.bf16.gmra.mrb[4].mxu1 %vm139_vm0, %v431_v11 }
  0xe5   :  { %v398_v13 = vpop.f32.mrb[0].mxu0  ;;  %v406_v14 = vpop.f32.mrb[0].mxu1 }
  0xe6   :  { %v321_v15 = vadd.f32 %v398_v13, %v375_v12  ;;  %v329_v16 = vadd.f32 %v406_v14, %v375_v12  ;;  %v198_v17 = vpop.f32.mrb[1].mxu0  ;;  %v230_v18 = vpop.f32.mrb[1].mxu1 }
  0xe7   :  { %v319_v19 = vadd.f32 %v375_v12, %v198_v17  ;;  %v327_v20 = vadd.f32 %v375_v12, %v230_v18  ;;  %v399_v21 = vpop.f32.mrb[2].mxu0  ;;  %v407_v22 = vpop.f32.mrb[2].mxu1 }
  0xe8   :  { %337 = vst [vmem:[%s550_s3 + $0x10] sm:$0xff] %v321_v15  ;;  %345 = vst [vmem:[%s550_s3 + $0x50] sm:$0xff] %v329_v16  ;;  %v322_v23 = vadd.f32 %v399_v21, %v375_v12  ;;  %v330_v24 = vadd.f32 %v407_v22, %v375_v12  ;;  %v201_v25 = vpop.f32.mrb[3].mxu0  ;;  %v233_v26 = vpop.f32.mrb[3].mxu1 }
  0xe9   :  { %335 = vst [vmem:[%s550_s3] sm:$0xff] %v319_v19  ;;  %343 = vst [vmem:[%s550_s3 + $0x40] sm:$0xff] %v327_v20  ;;  %v320_v27 = vadd.f32 %v375_v12, %v201_v25  ;;  %v328_v28 = vadd.f32 %v375_v12, %v233_v26 }
  0xea   :  { %338 = vst [vmem:[%s550_s3 + $0x18] sm:$0xff] %v322_v23  ;;  %346 = vst [vmem:[%s550_s3 + $0x58] sm:$0xff] %v330_v24 }
  0xeb   :  { %336 = vst [vmem:[%s550_s3 + $0x8] sm:$0xff] %v320_v27  ;;  %344 = vst [vmem:[%s550_s3 + $0x48] sm:$0xff] %v328_v28 }
  0xed   :  { %v402_v29 = vpop.f32.mrb[4].mxu0  ;;  %v410_v30 = vpop.f32.mrb[4].mxu1 }
  0xee   :  { %v325_v31 = vadd.f32 %v402_v29, %v375_v12  ;;  %v333_v32 = vadd.f32 %v410_v30, %v375_v12  ;;  %v214_v33 = vpop.f32.mrb[5].mxu0  ;;  %v246_v34 = vpop.f32.mrb[5].mxu1 }
  0xef   :  { %v323_v35 = vadd.f32 %v375_v12, %v214_v33  ;;  %v331_v36 = vadd.f32 %v375_v12, %v246_v34  ;;  %v403_v37 = vpop.f32.mrb[6].mxu0  ;;  %v411_v38 = vpop.f32.mrb[6].mxu1 }
  0xf0   :  { %341 = vst [vmem:[%s550_s3 + $0x30] sm:$0xff] %v325_v31  ;;  %349 = vst [vmem:[%s550_s3 + $0x70] sm:$0xff] %v333_v32  ;;  %v326_v39 = vadd.f32 %v403_v37, %v375_v12  ;;  %v334_v40 = vadd.f32 %v411_v38, %v375_v12  ;;  %v217_v41 = vpop.f32.mrb[7].mxu0  ;;  %v249_v42 = vpop.f32.mrb[7].mxu1 }
  0xf1   :  { %339 = vst [vmem:[%s550_s3 + $0x20] sm:$0xff] %v323_v35  ;;  %347 = vst [vmem:[%s550_s3 + $0x60] sm:$0xff] %v331_v36  ;;  %v324_v43 = vadd.f32 %v375_v12, %v217_v41  ;;  %v332_v44 = vadd.f32 %v375_v12, %v249_v42 }
  0xf2   :  { %342 = vst [vmem:[%s550_s3 + $0x38] sm:$0xff] %v326_v39  ;;  %350 = vst [vmem:[%s550_s3 + $0x78] sm:$0xff] %v334_v40 }
  0xf3   :  { %340 = vst [vmem:[%s550_s3 + $0x28] sm:$0xff] %v324_v43  ;;  %348 = vst [vmem:[%s550_s3 + $0x68] sm:$0xff] %v332_v44 }

// kernel: _net_forward_padded.17
= control target key start
LH: loop header
LB: loop body
LE: loop exit
PB: predicated region body
PF: predicated region fallthrough
CT: control target
= control target key end

     0   :  { %s3004_s1 = inlined_call_operand.vmem [shape: bf16[1152,128], index: 1, kind: input, shape index: {}]   ;;  %s3005_s0 = inlined_call_operand.vmem [shape: bf16[128,1152], index: 0, kind: input, shape index: {}]   ;;  %s3006_s2 = inlined_call_operand.vmem [shape: f32[1,128], index: 2, kind: input, shape index: {}]   ;;  %s3007_s3 = inlined_call_operand.vmem [shape: f32[128,128], index: 3, kind: input, shape index: {}]   ;;  %s3008_s4 = inlined_call_operand.vmem [shape: f32[128,128], index: 4, kind: output, shape index: {}]  }
   0x1   :  { %v2170_v0 = vld [vmem:[%s3004_s1 + $0x40] sm:$0xff]   ;;  %v2174_v4 = vld [vmem:[%s3004_s1 + $0x48] sm:$0xff]   ;;  %v2178_v8 = vld [vmem:[%s3004_s1 + $0x50] sm:$0xff]  }
   0x2   :  { %v2171_v1 = vld [vmem:[%s3004_s1 + $0xc0] sm:$0xff]   ;;  %1850 = vmatprep.subr.bf16.mxu0 %v2170_v0  ;;  %v2175_v5 = vld [vmem:[%s3004_s1 + $0xc8] sm:$0xff]   ;;  %v2179_v9 = vld [vmem:[%s3004_s1 + $0xd0] sm:$0xff]  }
   0x3   :  { %v2172_v2 = vld [vmem:[%s3004_s1] sm:$0xff]   ;;  %1914 = vmatprep.subr.bf16.mxu1 %v2171_v1  ;;  %v2176_v6 = vld [vmem:[%s3004_s1 + $0x8] sm:$0xff]   ;;  %v2180_v10 = vld [vmem:[%s3004_s1 + $0x10] sm:$0xff]  }
   0x4   :  { %v2173_v3 = vld [vmem:[%s3004_s1 + $0x80] sm:$0xff]   ;;  %1851 = vmatpush3.bf16.msra.mxu0 %v2172_v2  ;;  %v2177_v7 = vld [vmem:[%s3004_s1 + $0x88] sm:$0xff]   ;;  %v2181_v11 = vld [vmem:[%s3004_s1 + $0x90] sm:$0xff]  }
   0x5   :  { %1915 = vmatpush3.bf16.msra.mxu1 %v2173_v3  ;;  %1852 = vmatprep.subr.bf16.mxu0 %v2174_v4  ;;  %v2182_v12 = vld [vmem:[%s3004_s1 + $0x58] sm:$0xff]   ;;  %v2186_v16 = vld [vmem:[%s3004_s1 + $0x60] sm:$0xff]   ;;  %v2190_v20 = vld [vmem:[%s3004_s1 + $0x68] sm:$0xff]  }
   0x6   :  { %1916 = vmatprep.subr.bf16.mxu1 %v2175_v5  ;;  %v2183_v13 = vld [vmem:[%s3004_s1 + $0xd8] sm:$0xff]   ;;  %v2187_v17 = vld [vmem:[%s3004_s1 + $0xe0] sm:$0xff]   ;;  %v2191_v21 = vld [vmem:[%s3004_s1 + $0xe8] sm:$0xff]  }
   0x7   :  { %v2184_v14 = vld [vmem:[%s3004_s1 + $0x18] sm:$0xff]   ;;  %v2188_v18 = vld [vmem:[%s3004_s1 + $0x20] sm:$0xff]   ;;  %v2192_v22 = vld [vmem:[%s3004_s1 + $0x28] sm:$0xff]  }
   0x8   :  { %1853 = vmatpush3.bf16.msra.mxu0 %v2176_v6  ;;  %v2185_v15 = vld [vmem:[%s3004_s1 + $0x98] sm:$0xff]   ;;  %v2189_v19 = vld [vmem:[%s3004_s1 + $0xa0] sm:$0xff]   ;;  %v2193_v23 = vld [vmem:[%s3004_s1 + $0xa8] sm:$0xff]  }
   0x9   :  { %1917 = vmatpush3.bf16.msra.mxu1 %v2177_v7  ;;  %1854 = vmatprep.subr.bf16.mxu0 %v2178_v8  ;;  %v2194_v24 = vld [vmem:[%s3004_s1 + $0x70] sm:$0xff]   ;;  %v2198_v28 = vld [vmem:[%s3004_s1 + $0x78] sm:$0xff]   ;;  %v2202_v32 = vld [vmem:[%s3005_s0] ss:$36 sps:$4 sm:$0xff]  }
   0xa   :  { %1918 = vmatprep.subr.bf16.mxu1 %v2179_v9  ;;  %v2195_v25 = vld [vmem:[%s3004_s1 + $0xf0] sm:$0xff]   ;;  %v2199_v29 = vld [vmem:[%s3004_s1 + $0xf8] sm:$0xff]   ;;  %v2204_v33 = vld [vmem:[%s3005_s0 + $0x4] ss:$36 sps:$4 sm:$0xff]  }
   0xb   :  { %v2196_v26 = vld [vmem:[%s3004_s1 + $0x30] sm:$0xff]   ;;  %v2200_v30 = vld [vmem:[%s3004_s1 + $0x38] sm:$0xff]   ;;  %v2205_v34 = vld [vmem:[%s3005_s0 + $0x8] ss:$36 sps:$4 sm:$0xff]   ;;  %1110 = vmatprep.mubr.bf16.mxu0 %v2204_v33 }
   0xc   :  { %1855 = vmatpush3.bf16.msra.mxu0 %v2180_v10  ;;  %v2197_v27 = vld [vmem:[%s3004_s1 + $0xb0] sm:$0xff]   ;;  %v2201_v31 = vld [vmem:[%s3004_s1 + $0xb8] sm:$0xff]   ;;  %v2208_v36 = vld [vmem:[%s3004_s1 + $0x140] sm:$0xff]  }
   0xd   :  { %1919 = vmatpush3.bf16.msra.mxu1 %v2181_v11  ;;  %1856 = vmatprep.subr.bf16.mxu0 %v2182_v12  ;;  %v2207_v35 = vld [vmem:[%s3005_s0 + $0xc] ss:$36 sps:$4 sm:$0xff]   ;;  %v2209_v37 = vld [vmem:[%s3004_s1 + $0x1c0] sm:$0xff]   ;;  %v2214_v41 = vld [vmem:[%s3005_s0 + $0x54] ss:$36 sps:$4 sm:$0xff]  }
   0xe   :  { %1920 = vmatprep.subr.bf16.mxu1 %v2183_v13  ;;  %1207 = vmatprep.mubr.bf16.mxu1 %v2207_v35  ;;  %v2210_v38 = vld [vmem:[%s3004_s1 + $0x100] sm:$0xff]   ;;  %v2212_v40 = vld [vmem:[%s3005_s0 + $0x4c] ss:$36 sps:$4 sm:$0xff]   ;;  %v2222_v48 = vld [vmem:[%s3005_s0 + $0x94] ss:$36 sps:$4 sm:$0xff]  }
   0xf   :  { %v2211_v39 = vld [vmem:[%s3004_s1 + $0x180] sm:$0xff]   ;;  %v2216_v42 = vld [vmem:[%s3005_s0 + $0x48] ss:$36 sps:$4 sm:$0xff]   ;;  %v2217_v43 = vld [vmem:[%s3005_s0 + $0x50] ss:$36 sps:$4 sm:$0xff]  }
  0x10   :  { %1857 = vmatpush3.bf16.msra.mxu0 %v2184_v14  ;;  %v2218_v44 = vld [vmem:[%s3004_s1 + $0x148] sm:$0xff]   ;;  %v2224_v49 = vld [vmem:[%s3005_s0 + $0x9c] ss:$36 sps:$4 sm:$0xff]   ;;  %v2226_v50 = vld [vmem:[%s3005_s0 + $0x90] ss:$36 sps:$4 sm:$0xff]  }
  0x11   :  { %1921 = vmatpush3.bf16.msra.mxu1 %v2185_v15  ;;  %1858 = vmatprep.subr.bf16.mxu0 %v2186_v16  ;;  %v2219_v45 = vld [vmem:[%s3004_s1 + $0x1c8] sm:$0xff]   ;;  %v2227_v51 = vld [vmem:[%s3005_s0 + $0x98] ss:$36 sps:$4 sm:$0xff]   ;;  %v2228_v52 = vld [vmem:[%s3004_s1 + $0x150] sm:$0xff]  }
  0x12   :  { %1922 = vmatprep.subr.bf16.mxu1 %v2187_v17  ;;  %v2220_v46 = vld [vmem:[%s3004_s1 + $0x108] sm:$0xff]   ;;  %v2229_v53 = vld [vmem:[%s3004_s1 + $0x1d0] sm:$0xff]   ;;  %v2232_v56 = vld [vmem:[%s3005_s0 + $0xdc] ss:$36 sps:$4 sm:$0xff]  }
  0x13   :  { %v2221_v47 = vld [vmem:[%s3004_s1 + $0x188] sm:$0xff]   ;;  %v2230_v54 = vld [vmem:[%s3004_s1 + $0x110] sm:$0xff]   ;;  %v2236_v58 = vld [vmem:[%s3005_s0 + $0xd8] ss:$36 sps:$4 sm:$0xff]  }
  0x14   :  { %1859 = vmatpush3.bf16.msra.mxu0 %v2188_v18  ;;  %v2231_v55 = vld [vmem:[%s3004_s1 + $0x190] sm:$0xff]   ;;  %v2234_v57 = vld [vmem:[%s3005_s0 + $0xe4] ss:$36 sps:$4 sm:$0xff]   ;;  %v2238_v60 = vld [vmem:[%s3004_s1 + $0x158] sm:$0xff]  }
  0x15   :  { %1923 = vmatpush3.bf16.msra.mxu1 %v2189_v19  ;;  %1860 = vmatprep.subr.bf16.mxu0 %v2190_v20  ;;  %v2237_v59 = vld [vmem:[%s3005_s0 + $0xe0] ss:$36 sps:$4 sm:$0xff]   ;;  %v2239_v61 = vld [vmem:[%s3004_s1 + $0x1d8] sm:$0xff]   ;;  %v2244_v1 = vld [vmem:[%s3005_s0 + $0x12c] ss:$36 sps:$4 sm:$0xff]  }
  0x16   :  { %1924 = vmatprep.subr.bf16.mxu1 %v2191_v21  ;;  %v2240_v62 = vld [vmem:[%s3004_s1 + $0x118] sm:$0xff]   ;;  %v2242_v0 = vld [vmem:[%s3005_s0 + $0x124] ss:$36 sps:$4 sm:$0xff]   ;;  %v2252_v8 = vld [vmem:[%s3005_s0 + $0x16c] ss:$36 sps:$4 sm:$0xff]  }
  0x17   :  { %v2241_v63 = vld [vmem:[%s3004_s1 + $0x198] sm:$0xff]   ;;  %v2246_v2 = vld [vmem:[%s3005_s0 + $0x120] ss:$36 sps:$4 sm:$0xff]   ;;  %v2247_v4 = vld [vmem:[%s3005_s0 + $0x128] ss:$36 sps:$4 sm:$0xff]  }
  0x18   :  { %1861 = vmatpush3.bf16.msra.mxu0 %v2192_v22  ;;  %v2248_v3 = vld [vmem:[%s3004_s1 + $0x160] sm:$0xff]   ;;  %v2254_v9 = vld [vmem:[%s3005_s0 + $0x174] ss:$36 sps:$4 sm:$0xff]   ;;  %v2258_v10 = vld [vmem:[%s3004_s1 + $0x168] sm:$0xff]  }
  0x19   :  { %1925 = vmatpush3.bf16.msra.mxu1 %v2193_v23  ;;  %1862 = vmatprep.subr.bf16.mxu0 %v2194_v24  ;;  %v2249_v5 = vld [vmem:[%s3004_s1 + $0x1e0] sm:$0xff]   ;;  %v2259_v11 = vld [vmem:[%s3004_s1 + $0x1e8] sm:$0xff]   ;;  %v2257_v15 = vld [vmem:[%s3005_s0 + $0x170] ss:$36 sps:$4 sm:$0xff]  }
  0x1a   :  { %1926 = vmatprep.subr.bf16.mxu1 %v2195_v25  ;;  %v2250_v6 = vld [vmem:[%s3004_s1 + $0x120] sm:$0xff]   ;;  %v2256_v12 = vld [vmem:[%s3005_s0 + $0x168] ss:$36 sps:$4 sm:$0xff]   ;;  %v2262_v16 = vld [vmem:[%s3005_s0 + $0x1b4] ss:$36 sps:$4 sm:$0xff]  }
  0x1b   :  { %v2251_v7 = vld [vmem:[%s3004_s1 + $0x1a0] sm:$0xff]   ;;  %v2260_v13 = vld [vmem:[%s3004_s1 + $0x128] sm:$0xff]   ;;  %v2268_v18 = vld [vmem:[%s3004_s1 + $0x170] sm:$0xff]  }
  0x1c   :  { %1863 = vmatpush3.bf16.msra.mxu0 %v2196_v26  ;;  %v2261_v14 = vld [vmem:[%s3004_s1 + $0x1a8] sm:$0xff]   ;;  %v2264_v17 = vld [vmem:[%s3005_s0 + $0x1bc] ss:$36 sps:$4 sm:$0xff]   ;;  %v2269_v19 = vld [vmem:[%s3004_s1 + $0x1f0] sm:$0xff]  }
  0x1d   :  { %1927 = vmatpush3.bf16.msra.mxu1 %v2197_v27  ;;  %1864 = vmatprep.subr.bf16.mxu0 %v2198_v28  ;;  %v2270_v20 = vld [vmem:[%s3004_s1 + $0x130] sm:$0xff]   ;;  %v2267_v23 = vld [vmem:[%s3005_s0 + $0x1b8] ss:$36 sps:$4 sm:$0xff]   ;;  %v2274_v25 = vld [vmem:[%s3005_s0 + $0x204] ss:$36 sps:$4 sm:$0xff]  }
  0x1e   :  { %1928 = vmatprep.subr.bf16.mxu1 %v2199_v29  ;;  %v2271_v21 = vld [vmem:[%s3004_s1 + $0x1b0] sm:$0xff]   ;;  %v2272_v24 = vld [vmem:[%s3005_s0 + $0x1fc] ss:$36 sps:$4 sm:$0xff]  }
  0x1f   :  { %v2266_v22 = vld [vmem:[%s3005_s0 + $0x1b0] ss:$36 sps:$4 sm:$0xff]   ;;  %v2278_v26 = vld [vmem:[%s3004_s1 + $0x178] sm:$0xff]  }
  0x20   :  { %1865 = vmatpush3.bf16.msra.mxu0 %v2200_v30  ;;  %v2279_v27 = vld [vmem:[%s3004_s1 + $0x1f8] sm:$0xff]   ;;  %v2282_v35 = vld [vmem:[%s3005_s0 + $0x10] ss:$36 sps:$4 sm:$0xff]  }
  0x21   :  { %1929 = vmatpush3.bf16.msra.mxu1 %v2201_v31  ;;  %1978 = vmatprep.subr.bf16.mxu0 %v2208_v36  ;;  %v2280_v28 = vld [vmem:[%s3004_s1 + $0x138] sm:$0xff]   ;;  %v2277_v31 = vld [vmem:[%s3005_s0 + $0x200] ss:$36 sps:$4 sm:$0xff]  }
  0x22   :  { %2042 = vmatprep.subr.bf16.mxu1 %v2209_v37  ;;  %v2281_v29 = vld [vmem:[%s3004_s1 + $0x1b8] sm:$0xff]  }
  0x23   :  { %1111 = vmatmul.mubr.bf16.vlgmr.msra.gmra.mrb[0].mxu0 %v2202_v32  ;;  %v2276_v30 = vld [vmem:[%s3005_s0 + $0x1f8] ss:$36 sps:$4 sm:$0xff]   ;;  %v2288_v32 = vld [vmem:[%s3004_s1 + $0x200] sm:$0xff]  }
  0x24   :  { %1208 = vmatmul.mubr.bf16.vlgmr.msra.gmra.mrb[0].mxu1 %v2205_v34  ;;  %1979 = vmatpush3.bf16.msra.mxu0 %v2210_v38  ;;  %v2284_v33 = vld [vmem:[%s3005_s0 + $0x14] ss:$36 sps:$4 sm:$0xff]   ;;  %v2287_v34 = vld [vmem:[%s3005_s0 + $0x1c] ss:$36 sps:$4 sm:$0xff]   ;;  %v2291_v38 = vld [vmem:[%s3005_s0 + $0x64] ss:$36 sps:$4 sm:$0xff]  }
  0x25   :  { %2043 = vmatpush3.bf16.msra.mxu1 %v2211_v39  ;;  %1118 = vmatprep.mubr.bf16.mxu0 %v2212_v40  ;;  %v2285_v36 = vld [vmem:[%s3005_s0 + $0x18] ss:$36 sps:$4 sm:$0xff]   ;;  %v2295_v39 = vld [vmem:[%s3004_s1 + $0x208] sm:$0xff]   ;;  %v2302_v40 = vld [vmem:[%s3004_s1 + $0x210] sm:$0xff]  }
  0x26   :  { %1215 = vmatprep.mubr.bf16.mxu1 %v2214_v41  ;;  %1980 = vmatprep.subr.bf16.mxu0 %v2218_v44  ;;  %v2289_v37 = vld [vmem:[%s3005_s0 + $0x5c] ss:$36 sps:$4 sm:$0xff]   ;;  %v2298_v44 = vld [vmem:[%s3005_s0 + $0xac] ss:$36 sps:$4 sm:$0xff]  }
  0x27   :  { %2044 = vmatprep.subr.bf16.mxu1 %v2219_v45  ;;  %v2293_v41 = vld [vmem:[%s3005_s0 + $0x58] ss:$36 sps:$4 sm:$0xff]  }
  0x28   :  { %1981 = vmatpush3.bf16.msra.mxu0 %v2220_v46  ;;  %v2309_v45 = vld [vmem:[%s3004_s1 + $0x218] sm:$0xff]   ;;  %v2316_v46 = vld [vmem:[%s3004_s1 + $0x220] sm:$0xff]  }
  0x29   :  { %2045 = vmatpush3.bf16.msra.mxu1 %v2221_v47  ;;  %1982 = vmatprep.subr.bf16.mxu0 %v2228_v52  ;;  %v2300_v47 = vld [vmem:[%s3005_s0 + $0xa0] ss:$36 sps:$4 sm:$0xff]   ;;  %v2307_v52 = vld [vmem:[%s3005_s0 + $0xe8] ss:$36 sps:$4 sm:$0xff]  }
  0x2a   :  { %2046 = vmatprep.subr.bf16.mxu1 %v2229_v53  ;;  %v2330_v53 = vld [vmem:[%s3004_s1 + $0x230] sm:$0xff]  }
  0x2b   :  { %1119 = vmatmul.mubr.bf16.gmra.mrb[4].mxu0 %v2216_v42  ;;  %v2294_v42 = vld [vmem:[%s3005_s0 + $0x60] ss:$36 sps:$4 sm:$0xff]  }
  0x2c   :  { %1216 = vmatmul.mubr.bf16.gmra.mrb[4].mxu1 %v2217_v43  ;;  %1126 = vmatprep.mubr.bf16.mxu0 %v2222_v48  ;;  %v2296_v43 = vld [vmem:[%s3005_s0 + $0xa4] ss:$36 sps:$4 sm:$0xff]  }
  0x2d   :  { %1223 = vmatprep.mubr.bf16.mxu1 %v2224_v49  ;;  %1983 = vmatpush3.bf16.msra.mxu0 %v2230_v54  ;;  %v2301_v48 = vld [vmem:[%s3005_s0 + $0xa8] ss:$36 sps:$4 sm:$0xff]   ;;  %v2308_v54 = vld [vmem:[%s3005_s0 + $0xf0] ss:$36 sps:$4 sm:$0xff]  }
  0x2e   :  { %2047 = vmatpush3.bf16.msra.mxu1 %v2231_v55  ;;  %1984 = vmatprep.subr.bf16.mxu0 %v2238_v60  ;;  %v2303_v49 = vld [vmem:[%s3005_s0 + $0xec] ss:$36 sps:$4 sm:$0xff]   ;;  %v2310_v55 = vld [vmem:[%s3005_s0 + $0x134] ss:$36 sps:$4 sm:$0xff]   ;;  %v2317_v60 = vld [vmem:[%s3005_s0 + $0x17c] ss:$36 sps:$4 sm:$0xff]  }
  0x2f   :  { %2048 = vmatprep.subr.bf16.mxu1 %v2239_v61  ;;  %v2319_v61 = vld [vmem:[%s3005_s0 + $0x184] ss:$36 sps:$4 sm:$0xff]  }
  0x31   :  { %1985 = vmatpush3.bf16.msra.mxu0 %v2240_v62  ;;  %v2321_v62 = vld [vmem:[%s3005_s0 + $0x178] ss:$36 sps:$4 sm:$0xff]  }
  0x32   :  { %2049 = vmatpush3.bf16.msra.mxu1 %v2241_v63  ;;  %1986 = vmatprep.subr.bf16.mxu0 %v2248_v3  ;;  %v2322_v63 = vld [vmem:[%s3005_s0 + $0x180] ss:$36 sps:$4 sm:$0xff]   ;;  %v2329_v3 = vld [vmem:[%s3005_s0 + $0x1c8] ss:$36 sps:$4 sm:$0xff]  }
  0x33   :  { %1127 = vmatmul.mubr.bf16.gmra.mrb[8].mxu0 %v2226_v50  ;;  %2050 = vmatprep.subr.bf16.mxu1 %v2249_v5  ;;  %v2305_v50 = vld [vmem:[%s3005_s0 + $0xf4] ss:$36 sps:$4 sm:$0xff]  }
  0x34   :  { %1224 = vmatmul.mubr.bf16.gmra.mrb[8].mxu1 %v2227_v51  ;;  %1134 = vmatprep.mubr.bf16.mxu0 %v2232_v56  ;;  %v2323_v51 = vld [vmem:[%s3004_s1 + $0x228] sm:$0xff]   ;;  %v2312_v56 = vld [vmem:[%s3005_s0 + $0x13c] ss:$36 sps:$4 sm:$0xff]   ;;  %v2333_v5 = vld [vmem:[%s3005_s0 + $0x214] ss:$36 sps:$4 sm:$0xff]  }
  0x35   :  { %1231 = vmatprep.mubr.bf16.mxu1 %v2234_v57  ;;  %1987 = vmatpush3.bf16.msra.mxu0 %v2250_v6  ;;  %v2337_v57 = vld [vmem:[%s3004_s1 + $0x238] sm:$0xff]   ;;  %v2335_v6 = vld [vmem:[%s3005_s0 + $0x208] ss:$36 sps:$4 sm:$0xff]  }
  0x36   :  { %2051 = vmatpush3.bf16.msra.mxu1 %v2251_v7  ;;  %1988 = vmatprep.subr.bf16.mxu0 %v2258_v10  ;;  %v2336_v7 = vld [vmem:[%s3005_s0 + $0x210] ss:$36 sps:$4 sm:$0xff]   ;;  %v2340_v10 = vld [vmem:[%s3005_s0 + $0x68] ss:$36 sps:$4 sm:$0xff]  }
  0x37   :  { %2052 = vmatprep.subr.bf16.mxu1 %v2259_v11  ;;  %v2341_v11 = vld [vmem:[%s3005_s0 + $0x188] ss:$36 sps:$4 sm:$0xff]  }
  0x39   :  { %1989 = vmatpush3.bf16.msra.mxu0 %v2260_v13  ;;  %v2343_v13 = vld [vmem:[%s3005_s0 + $0x1d0] ss:$36 sps:$4 sm:$0xff]  }
  0x3a   :  { %2053 = vmatpush3.bf16.msra.mxu1 %v2261_v14  ;;  %1990 = vmatprep.subr.bf16.mxu0 %v2268_v18  ;;  %v2344_v14 = vld [vmem:[%s3005_s0 + $0xf8] ss:$36 sps:$4 sm:$0xff]  }
  0x3b   :  { %1135 = vmatmul.mubr.bf16.gmra.mrb[12].mxu0 %v2236_v58  ;;  %2054 = vmatprep.subr.bf16.mxu1 %v2269_v19  ;;  %v2314_v58 = vld [vmem:[%s3005_s0 + $0x130] ss:$36 sps:$4 sm:$0xff]  }
  0x3c   :  { %1232 = vmatmul.mubr.bf16.gmra.mrb[12].mxu1 %v2237_v59  ;;  %1142 = vmatprep.mubr.bf16.mxu0 %v2242_v0  ;;  %v2315_v59 = vld [vmem:[%s3005_s0 + $0x138] ss:$36 sps:$4 sm:$0xff]   ;;  %v2324_v0 = vld [vmem:[%s3005_s0 + $0x1c4] ss:$36 sps:$4 sm:$0xff]  }
  0x3d   :  { %1239 = vmatprep.mubr.bf16.mxu1 %v2244_v1  ;;  %1991 = vmatpush3.bf16.msra.mxu0 %v2270_v20  ;;  %v2326_v1 = vld [vmem:[%s3005_s0 + $0x1cc] ss:$36 sps:$4 sm:$0xff]  }
  0x3e   :  { %2055 = vmatpush3.bf16.msra.mxu1 %v2271_v21  ;;  %1992 = vmatprep.subr.bf16.mxu0 %v2278_v26 }
  0x3f   :  { %2056 = vmatprep.subr.bf16.mxu1 %v2279_v27 }
  0x41   :  { %1993 = vmatpush3.bf16.msra.mxu0 %v2280_v28 }
  0x42   :  { %2057 = vmatpush3.bf16.msra.mxu1 %v2281_v29  ;;  %2122 = vmatprep.subr.bf16.mxu0 %v2288_v32 }
  0x43   :  { %1143 = vmatmul.mubr.bf16.gmra.mrb[16].mxu0 %v2246_v2  ;;  %2154 = vmatprep.subr.bf16.mxu1 %v2288_v32  ;;  %v2328_v2 = vld [vmem:[%s3005_s0 + $0x1c0] ss:$36 sps:$4 sm:$0xff]  }
  0x44   :  { %1240 = vmatmul.mubr.bf16.gmra.mrb[16].mxu1 %v2247_v4  ;;  %1150 = vmatprep.mubr.bf16.mxu0 %v2252_v8  ;;  %v2331_v4 = vld [vmem:[%s3005_s0 + $0x20c] ss:$36 sps:$4 sm:$0xff]   ;;  %v2338_v8 = vld [vmem:[%s3005_s0 + $0x20] ss:$36 sps:$4 sm:$0xff]  }
  0x45   :  { %1247 = vmatprep.mubr.bf16.mxu1 %v2254_v9  ;;  %v2339_v9 = vld [vmem:[%s3005_s0 + $0x140] ss:$36 sps:$4 sm:$0xff]  }
  0x4b   :  { %1151 = vmatmul.mubr.bf16.gmra.mrb[20].mxu0 %v2256_v12  ;;  %v2342_v12 = vld [vmem:[%s3005_s0 + $0xb0] ss:$36 sps:$4 sm:$0xff]  }
  0x4c   :  { %1248 = vmatmul.mubr.bf16.gmra.mrb[20].mxu1 %v2257_v15  ;;  %1158 = vmatprep.mubr.bf16.mxu0 %v2262_v16  ;;  %v2345_v15 = vld [vmem:[%s3005_s0 + $0x218] ss:$36 sps:$4 sm:$0xff]  }
  0x4d   :  { %1255 = vmatprep.mubr.bf16.mxu1 %v2264_v17 }
  0x53   :  { %1159 = vmatmul.mubr.bf16.gmra.mrb[24].mxu0 %v2266_v22 }
  0x54   :  { %1256 = vmatmul.mubr.bf16.gmra.mrb[24].mxu1 %v2267_v23  ;;  %1166 = vmatprep.mubr.bf16.mxu0 %v2272_v24 }
  0x55   :  { %1263 = vmatprep.mubr.bf16.mxu1 %v2274_v25 }
  0x5b   :  { %1167 = vmatmul.mubr.bf16.gmra.mrb[28].mxu0 %v2276_v30 }
  0x5c   :  { %1264 = vmatmul.mubr.bf16.gmra.mrb[28].mxu1 %v2277_v31  ;;  %1304 = vmatprep.mubr.bf16.mxu0 %v2284_v33 }
  0x5d   :  { %1401 = vmatprep.mubr.bf16.mxu1 %v2287_v34 }
  0x63   :  { %1305 = vmatmul.mubr.bf16.vlgmr.msra.gmra.mrb[32].mxu0 %v2282_v35 }
  0x64   :  { %1402 = vmatmul.mubr.bf16.vlgmr.msra.gmra.mrb[32].mxu1 %v2285_v36  ;;  %2123 = vmatpush3.bf16.msra.mxu0 %v2288_v32 }
  0x65   :  { %2162 = vmatpush3.bf16.msra.mxu1 %v2288_v32  ;;  %1312 = vmatprep.mubr.bf16.mxu0 %v2289_v37 }
  0x66   :  { %1409 = vmatprep.mubr.bf16.mxu1 %v2291_v38  ;;  %2124 = vmatprep.subr.bf16.mxu0 %v2295_v39 }
  0x67   :  { %2155 = vmatprep.subr.bf16.mxu1 %v2295_v39 }
  0x68   :  { %2125 = vmatpush3.bf16.msra.mxu0 %v2295_v39 }
  0x69   :  { %2163 = vmatpush3.bf16.msra.mxu1 %v2295_v39  ;;  %2126 = vmatprep.subr.bf16.mxu0 %v2302_v40 }
  0x6a   :  { %2156 = vmatprep.subr.bf16.mxu1 %v2302_v40 }
  0x6b   :  { %1313 = vmatmul.mubr.bf16.gmra.mrb[36].mxu0 %v2293_v41 }
  0x6c   :  { %1410 = vmatmul.mubr.bf16.gmra.mrb[36].mxu1 %v2294_v42  ;;  %1320 = vmatprep.mubr.bf16.mxu0 %v2296_v43 }
  0x6d   :  { %1417 = vmatprep.mubr.bf16.mxu1 %v2298_v44  ;;  %2127 = vmatpush3.bf16.msra.mxu0 %v2302_v40 }
  0x6e   :  { %2164 = vmatpush3.bf16.msra.mxu1 %v2302_v40  ;;  %2128 = vmatprep.subr.bf16.mxu0 %v2309_v45 }
  0x6f   :  { %2157 = vmatprep.subr.bf16.mxu1 %v2309_v45 }
  0x71   :  { %2129 = vmatpush3.bf16.msra.mxu0 %v2309_v45 }
  0x72   :  { %2165 = vmatpush3.bf16.msra.mxu1 %v2309_v45  ;;  %2130 = vmatprep.subr.bf16.mxu0 %v2316_v46 }
  0x73   :  { %1321 = vmatmul.mubr.bf16.gmra.mrb[40].mxu0 %v2300_v47  ;;  %2158 = vmatprep.subr.bf16.mxu1 %v2316_v46 }
  0x74   :  { %1418 = vmatmul.mubr.bf16.gmra.mrb[40].mxu1 %v2301_v48  ;;  %1328 = vmatprep.mubr.bf16.mxu0 %v2303_v49 }
  0x75   :  { %1425 = vmatprep.mubr.bf16.mxu1 %v2305_v50  ;;  %2131 = vmatpush3.bf16.msra.mxu0 %v2316_v46 }
  0x76   :  { %2166 = vmatpush3.bf16.msra.mxu1 %v2316_v46  ;;  %2132 = vmatprep.subr.bf16.mxu0 %v2323_v51 }
  0x77   :  { %2159 = vmatprep.subr.bf16.mxu1 %v2323_v51 }
  0x79   :  { %2133 = vmatpush3.bf16.msra.mxu0 %v2323_v51 }
  0x7a   :  { %2167 = vmatpush3.bf16.msra.mxu1 %v2323_v51  ;;  %2134 = vmatprep.subr.bf16.mxu0 %v2330_v53 }
  0x7b   :  { %1329 = vmatmul.mubr.bf16.gmra.mrb[44].mxu0 %v2307_v52  ;;  %2160 = vmatprep.subr.bf16.mxu1 %v2330_v53 }
  0x7c   :  { %1426 = vmatmul.mubr.bf16.gmra.mrb[44].mxu1 %v2308_v54  ;;  %1336 = vmatprep.mubr.bf16.mxu0 %v2310_v55 }
  0x7d   :  { %1433 = vmatprep.mubr.bf16.mxu1 %v2312_v56  ;;  %2135 = vmatpush3.bf16.msra.mxu0 %v2330_v53 }
  0x7e   :  { %2168 = vmatpush3.bf16.msra.mxu1 %v2330_v53  ;;  %2136 = vmatprep.subr.bf16.mxu0 %v2337_v57 }
  0x7f   :  { %2161 = vmatprep.subr.bf16.mxu1 %v2337_v57 }
  0x81   :  { %2137 = vmatpush3.bf16.msra.mxu0 %v2337_v57 }
  0x82   :  { %2169 = vmatpush3.bf16.msra.mxu1 %v2337_v57 }
  0x83   :  { %1337 = vmatmul.mubr.bf16.gmra.mrb[48].mxu0 %v2314_v58 }
  0x84   :  { %1434 = vmatmul.mubr.bf16.gmra.mrb[48].mxu1 %v2315_v59  ;;  %1344 = vmatprep.mubr.bf16.mxu0 %v2317_v60 }
  0x85   :  { %1441 = vmatprep.mubr.bf16.mxu1 %v2319_v61 }
  0x8b   :  { %1345 = vmatmul.mubr.bf16.gmra.mrb[52].mxu0 %v2321_v62 }
  0x8c   :  { %1442 = vmatmul.mubr.bf16.gmra.mrb[52].mxu1 %v2322_v63  ;;  %1352 = vmatprep.mubr.bf16.mxu0 %v2324_v0 }
  0x8d   :  { %1449 = vmatprep.mubr.bf16.mxu1 %v2326_v1 }
  0x93   :  { %1353 = vmatmul.mubr.bf16.gmra.mrb[56].mxu0 %v2328_v2 }
  0x94   :  { %1450 = vmatmul.mubr.bf16.gmra.mrb[56].mxu1 %v2329_v3  ;;  %1360 = vmatprep.mubr.bf16.mxu0 %v2331_v4 }
  0x95   :  { %1457 = vmatprep.mubr.bf16.mxu1 %v2333_v5 }
  0x9b   :  { %1361 = vmatmul.mubr.bf16.gmra.mrb[60].mxu0 %v2335_v6 }
  0x9c   :  { %1458 = vmatmul.mubr.bf16.gmra.mrb[60].mxu1 %v2336_v7  ;;  %2138 = vmatprep.mubr.bf16.mxu0 %v2338_v8 }
  0x9d   :  { %2146 = vmatprep.mubr.bf16.mxu1 %v2339_v9 }
  0xa3   :  { %2139 = vmatmul.mubr.bf16.vlgmr.msra.gmra.mrb[64].mxu0 %v2340_v10 }
  0xa4   :  { %2147 = vmatmul.mubr.bf16.vlgmr.msra.gmra.mrb[64].mxu1 %v2341_v11  ;;  %2142 = vmatprep.mubr.bf16.mxu0 %v2342_v12 }
  0xa5   :  { %2150 = vmatprep.mubr.bf16.mxu1 %v2343_v13 }
  0xab   :  { %2143 = vmatmul.mubr.bf16.gmra.mrb[68].mxu0 %v2344_v14 }
  0xac   :  { %2151 = vmatmul.mubr.bf16.gmra.mrb[68].mxu1 %v2345_v15 }
  0xf6   :  { %v1866_v16 = vpop.f32.mrb[0].mxu0 }
  0xf7   :  { %v1930_v17 = vpop.f32.mrb[0].mxu1  ;;  %v1867_v18 = vpop.f32.mrb[1].mxu0 }
  0xf8   :  { %v1868_v19 = vadd.f32 %v1867_v18, %v1866_v16  ;;  %v1931_v20 = vpop.f32.mrb[1].mxu1  ;;  %v1869_v21 = vpop.f32.mrb[2].mxu0 }
  0xf9   :  { %v1932_v22 = vadd.f32 %v1931_v20, %v1930_v17  ;;  %v1933_v23 = vpop.f32.mrb[2].mxu1  ;;  %v1870_v24 = vpop.f32.mrb[3].mxu0 }
  0xfa   :  { %v1871_v25 = vadd.f32 %v1870_v24, %v1869_v21  ;;  %v1934_v26 = vpop.f32.mrb[3].mxu1 }
  0xfb   :  { %v2803_v27 = vadd.f32 %v1932_v22, %v1868_v19  ;;  %v1935_v28 = vadd.f32 %v1934_v26, %v1933_v23 }
  0xfd   :  { %v2805_v29 = vadd.f32 %v1935_v28, %v1871_v25 }
  0xfe   :  { %v1872_v30 = vpop.f32.mrb[4].mxu0 }
  0xff   :  { %v1936_v31 = vpop.f32.mrb[4].mxu1  ;;  %v1873_v32 = vpop.f32.mrb[5].mxu0 }
 0x100   :  { %v1874_v33 = vadd.f32 %v1873_v32, %v1872_v30  ;;  %v1937_v34 = vpop.f32.mrb[5].mxu1  ;;  %v1875_v35 = vpop.f32.mrb[6].mxu0 }
 0x101   :  { %v1938_v36 = vadd.f32 %v1937_v34, %v1936_v31  ;;  %v1939_v37 = vpop.f32.mrb[6].mxu1  ;;  %v1876_v38 = vpop.f32.mrb[7].mxu0 }
 0x102   :  { %v1877_v39 = vadd.f32 %v1876_v38, %v1875_v35  ;;  %v1940_v40 = vpop.f32.mrb[7].mxu1 }
 0x103   :  { %v2807_v41 = vadd.f32 %v1938_v36, %v1874_v33  ;;  %v1941_v42 = vadd.f32 %v1940_v40, %v1939_v37 }
 0x105   :  { %v2809_v43 = vadd.f32 %v1941_v42, %v1877_v39 }
 0x106   :  { %v1878_v44 = vpop.f32.mrb[8].mxu0 }
 0x107   :  { %v1942_v45 = vpop.f32.mrb[8].mxu1  ;;  %v1879_v46 = vpop.f32.mrb[9].mxu0 }
 0x108   :  { %v1880_v47 = vadd.f32 %v1879_v46, %v1878_v44  ;;  %v1943_v48 = vpop.f32.mrb[9].mxu1  ;;  %v1881_v49 = vpop.f32.mrb[10].mxu0 }
 0x109   :  { %v1944_v50 = vadd.f32 %v1943_v48, %v1942_v45  ;;  %v1945_v51 = vpop.f32.mrb[10].mxu1  ;;  %v1882_v52 = vpop.f32.mrb[11].mxu0 }
 0x10a   :  { %v1883_v53 = vadd.f32 %v1882_v52, %v1881_v49  ;;  %v1946_v54 = vpop.f32.mrb[11].mxu1 }
 0x10b   :  { %v2811_v55 = vadd.f32 %v1944_v50, %v1880_v47  ;;  %v1947_v56 = vadd.f32 %v1946_v54, %v1945_v51 }
 0x10d   :  { %v2813_v57 = vadd.f32 %v1947_v56, %v1883_v53 }
 0x10e   :  { %v1884_v58 = vpop.f32.mrb[12].mxu0 }
 0x10f   :  { %v1948_v59 = vpop.f32.mrb[12].mxu1  ;;  %v1885_v60 = vpop.f32.mrb[13].mxu0 }
 0x110   :  { %v1886_v61 = vadd.f32 %v1885_v60, %v1884_v58  ;;  %v1949_v62 = vpop.f32.mrb[13].mxu1  ;;  %v1887_v63 = vpop.f32.mrb[14].mxu0 }
 0x111   :  { %v1950_v0 = vadd.f32 %v1949_v62, %v1948_v59  ;;  %v1951_v1 = vpop.f32.mrb[14].mxu1  ;;  %v1888_v2 = vpop.f32.mrb[15].mxu0 }
 0x112   :  { %v1889_v3 = vadd.f32 %v1888_v2, %v1887_v63  ;;  %v1952_v4 = vpop.f32.mrb[15].mxu1 }
 0x113   :  { %v2815_v5 = vadd.f32 %v1950_v0, %v1886_v61  ;;  %v1953_v6 = vadd.f32 %v1952_v4, %v1951_v1 }
 0x115   :  { %v2817_v7 = vadd.f32 %v1953_v6, %v1889_v3 }
 0x116   :  { %v1890_v8 = vpop.f32.mrb[16].mxu0 }
 0x117   :  { %v1954_v9 = vpop.f32.mrb[16].mxu1  ;;  %v1891_v10 = vpop.f32.mrb[17].mxu0 }
 0x118   :  { %v1892_v11 = vadd.f32 %v1891_v10, %v1890_v8  ;;  %v1955_v12 = vpop.f32.mrb[17].mxu1  ;;  %v1893_v13 = vpop.f32.mrb[18].mxu0 }
 0x119   :  { %v1956_v14 = vadd.f32 %v1955_v12, %v1954_v9  ;;  %v1957_v15 = vpop.f32.mrb[18].mxu1  ;;  %v1894_v16 = vpop.f32.mrb[19].mxu0 }
 0x11a   :  { %v1895_v17 = vadd.f32 %v1894_v16, %v1893_v13  ;;  %v1958_v18 = vpop.f32.mrb[19].mxu1 }
 0x11b   :  { %v2819_v19 = vadd.f32 %v1956_v14, %v1892_v11  ;;  %v1959_v20 = vadd.f32 %v1958_v18, %v1957_v15 }
 0x11d   :  { %v2821_v21 = vadd.f32 %v1959_v20, %v1895_v17 }
 0x11e   :  { %v1896_v22 = vpop.f32.mrb[20].mxu0 }
 0x11f   :  { %v1960_v23 = vpop.f32.mrb[20].mxu1  ;;  %v1897_v24 = vpop.f32.mrb[21].mxu0 }
 0x120   :  { %v1898_v25 = vadd.f32 %v1897_v24, %v1896_v22  ;;  %v1961_v26 = vpop.f32.mrb[21].mxu1  ;;  %v1899_v28 = vpop.f32.mrb[22].mxu0 }
 0x121   :  { %v1962_v30 = vadd.f32 %v1961_v26, %v1960_v23  ;;  %v1963_v31 = vpop.f32.mrb[22].mxu1  ;;  %v1900_v32 = vpop.f32.mrb[23].mxu0 }
 0x122   :  { %v1901_v33 = vadd.f32 %v1900_v32, %v1899_v28  ;;  %v1964_v34 = vpop.f32.mrb[23].mxu1 }
 0x123   :  { %v2823_v35 = vadd.f32 %v1962_v30, %v1898_v25  ;;  %v1965_v36 = vadd.f32 %v1964_v34, %v1963_v31 }
 0x125   :  { %v2825_v37 = vadd.f32 %v1965_v36, %v1901_v33 }
 0x126   :  { %v1902_v38 = vpop.f32.mrb[24].mxu0 }
 0x127   :  { %v1966_v39 = vpop.f32.mrb[24].mxu1  ;;  %v1903_v40 = vpop.f32.mrb[25].mxu0 }
 0x128   :  { %v1904_v42 = vadd.f32 %v1903_v40, %v1902_v38  ;;  %v1967_v44 = vpop.f32.mrb[25].mxu1  ;;  %v1905_v45 = vpop.f32.mrb[26].mxu0 }
 0x129   :  { %v1968_v46 = vadd.f32 %v1967_v44, %v1966_v39  ;;  %v1969_v47 = vpop.f32.mrb[26].mxu1  ;;  %v1906_v48 = vpop.f32.mrb[27].mxu0 }
 0x12a   :  { %v1907_v49 = vadd.f32 %v1906_v48, %v1905_v45  ;;  %v1970_v50 = vpop.f32.mrb[27].mxu1 }
 0x12b   :  { %v2827_v51 = vadd.f32 %v1968_v46, %v1904_v42  ;;  %v1971_v52 = vadd.f32 %v1970_v50, %v1969_v47 }
 0x12d   :  { %v2829_v53 = vadd.f32 %v1971_v52, %v1907_v49 }
 0x12e   :  { %v1908_v54 = vpop.f32.mrb[28].mxu0 }
 0x12f   :  { %v1972_v56 = vpop.f32.mrb[28].mxu1  ;;  %v1909_v58 = vpop.f32.mrb[29].mxu0 }
 0x130   :  { %v1910_v59 = vadd.f32 %v1909_v58, %v1908_v54  ;;  %v1973_v60 = vpop.f32.mrb[29].mxu1  ;;  %v1911_v61 = vpop.f32.mrb[30].mxu0 }
 0x131   :  { %v1974_v62 = vadd.f32 %v1973_v60, %v1972_v56  ;;  %v1975_v63 = vpop.f32.mrb[30].mxu1  ;;  %v1912_v0 = vpop.f32.mrb[31].mxu0 }
 0x132   :  { %v1913_v1 = vadd.f32 %v1912_v0, %v1911_v61  ;;  %v1976_v2 = vpop.f32.mrb[31].mxu1 }
 0x133   :  { %v2831_v3 = vadd.f32 %v1974_v62, %v1910_v59  ;;  %v1977_v4 = vadd.f32 %v1976_v2, %v1975_v63 }
 0x135   :  { %v2833_v6 = vadd.f32 %v1977_v4, %v1913_v1 }
 0x136   :  { %v1994_v8 = vpop.f32.mrb[32].mxu0 }
 0x137   :  { %v2058_v9 = vpop.f32.mrb[32].mxu1  ;;  %v1995_v10 = vpop.f32.mrb[33].mxu0 }
 0x138   :  { %v1996_v11 = vadd.f32 %v1995_v10, %v1994_v8  ;;  %v2059_v12 = vpop.f32.mrb[33].mxu1  ;;  %v1997_v13 = vpop.f32.mrb[34].mxu0 }
 0x139   :  { %v2060_v14 = vadd.f32 %v2059_v12, %v2058_v9  ;;  %v2061_v15 = vpop.f32.mrb[34].mxu1  ;;  %v1998_v16 = vpop.f32.mrb[35].mxu0 }
 0x13a   :  { %v1307_v17 = vadd.f32 %v1996_v11, %v2803_v27  ;;  %v1999_v18 = vadd.f32 %v1998_v16, %v1997_v13  ;;  %v2062_v20 = vpop.f32.mrb[35].mxu1 }
 0x13b   :  { %v2063_v22 = vadd.f32 %v2062_v20, %v2061_v15 }
 0x13c   :  { %v1310_v23 = vadd.f32 %v1999_v18, %v2805_v29  ;;  %v2837_v24 = vadd.f32 %v2060_v14, %v1307_v17 }
 0x13e   :  { %v2000_v25 = vpop.f32.mrb[36].mxu0  ;;  %v2839_v26 = vadd.f32 %v2063_v22, %v1310_v23 }
 0x13f   :  { %v2064_v28 = vpop.f32.mrb[36].mxu1  ;;  %v2001_v30 = vpop.f32.mrb[37].mxu0 }
 0x140   :  { %v2002_v31 = vadd.f32 %v2001_v30, %v2000_v25  ;;  %v2065_v32 = vpop.f32.mrb[37].mxu1  ;;  %v2003_v33 = vpop.f32.mrb[38].mxu0 }
 0x141   :  { %v2066_v34 = vadd.f32 %v2065_v32, %v2064_v28  ;;  %v2067_v36 = vpop.f32.mrb[38].mxu1  ;;  %v2004_v38 = vpop.f32.mrb[39].mxu0 }
 0x142   :  { %v1315_v27 = vadd.f32 %v2002_v31, %v2807_v41  ;;  %v2005_v39 = vadd.f32 %v2004_v38, %v2003_v33  ;;  %v2068_v40 = vpop.f32.mrb[39].mxu1 }
 0x143   :  { %v2069_v42 = vadd.f32 %v2068_v40, %v2067_v36 }
 0x144   :  { %v1318_v29 = vadd.f32 %v2005_v39, %v2809_v43  ;;  %v2843_v44 = vadd.f32 %v2066_v34, %v1315_v27 }
 0x146   :  { %v2006_v45 = vpop.f32.mrb[40].mxu0  ;;  %v2845_v46 = vadd.f32 %v2069_v42, %v1318_v29 }
 0x147   :  { %v2070_v47 = vpop.f32.mrb[40].mxu1  ;;  %v2007_v48 = vpop.f32.mrb[41].mxu0 }
 0x148   :  { %v2008_v49 = vadd.f32 %v2007_v48, %v2006_v45  ;;  %v2071_v50 = vpop.f32.mrb[41].mxu1  ;;  %v2009_v52 = vpop.f32.mrb[42].mxu0 }
 0x149   :  { %v2072_v54 = vadd.f32 %v2071_v50, %v2070_v47  ;;  %v2073_v56 = vpop.f32.mrb[42].mxu1  ;;  %v2010_v58 = vpop.f32.mrb[43].mxu0 }
 0x14a   :  { %v1323_v41 = vadd.f32 %v2008_v49, %v2811_v55  ;;  %v2011_v59 = vadd.f32 %v2010_v58, %v2009_v52  ;;  %v2074_v60 = vpop.f32.mrb[43].mxu1 }
 0x14b   :  { %v2075_v61 = vadd.f32 %v2074_v60, %v2073_v56 }
 0x14c   :  { %v1326_v43 = vadd.f32 %v2011_v59, %v2813_v57  ;;  %v2849_v62 = vadd.f32 %v2072_v54, %v1323_v41 }
 0x14e   :  { %v2012_v63 = vpop.f32.mrb[44].mxu0  ;;  %v2851_v0 = vadd.f32 %v2075_v61, %v1326_v43 }
 0x14f   :  { %v2076_v1 = vpop.f32.mrb[44].mxu1  ;;  %v2013_v2 = vpop.f32.mrb[45].mxu0 }
 0x150   :  { %v2014_v4 = vadd.f32 %v2013_v2, %v2012_v63  ;;  %v2077_v8 = vpop.f32.mrb[45].mxu1  ;;  %v2015_v9 = vpop.f32.mrb[46].mxu0 }
 0x151   :  { %v2078_v10 = vadd.f32 %v2077_v8, %v2076_v1  ;;  %v2079_v11 = vpop.f32.mrb[46].mxu1  ;;  %v2016_v12 = vpop.f32.mrb[47].mxu0 }
 0x152   :  { %v1331_v55 = vadd.f32 %v2014_v4, %v2815_v5  ;;  %v2017_v13 = vadd.f32 %v2016_v12, %v2015_v9  ;;  %v2080_v14 = vpop.f32.mrb[47].mxu1 }
 0x153   :  { %v2081_v15 = vadd.f32 %v2080_v14, %v2079_v11 }
 0x154   :  { %v1334_v57 = vadd.f32 %v2017_v13, %v2817_v7  ;;  %v2855_v16 = vadd.f32 %v2078_v10, %v1331_v55 }
 0x156   :  { %v2018_v17 = vpop.f32.mrb[48].mxu0  ;;  %v2857_v18 = vadd.f32 %v2081_v15, %v1334_v57 }
 0x157   :  { %v2082_v20 = vpop.f32.mrb[48].mxu1  ;;  %v2019_v22 = vpop.f32.mrb[49].mxu0 }
 0x158   :  { %v2020_v23 = vadd.f32 %v2019_v22, %v2018_v17  ;;  %v2083_v25 = vpop.f32.mrb[49].mxu1  ;;  %v2021_v28 = vpop.f32.mrb[50].mxu0 }
 0x159   :  { %v2084_v30 = vadd.f32 %v2083_v25, %v2082_v20  ;;  %v2085_v31 = vpop.f32.mrb[50].mxu1  ;;  %v2022_v32 = vpop.f32.mrb[51].mxu0 }
 0x15a   :  { %v1339_v5 = vadd.f32 %v2020_v23, %v2819_v19  ;;  %v2023_v33 = vadd.f32 %v2022_v32, %v2021_v28  ;;  %v2086_v34 = vpop.f32.mrb[51].mxu1 }
 0x15b   :  { %v2087_v36 = vadd.f32 %v2086_v34, %v2085_v31 }
 0x15c   :  { %v1342_v7 = vadd.f32 %v2023_v33, %v2821_v21  ;;  %v1436_v38 = vadd.f32 %v2084_v30, %v1339_v5  ;;  %v2876_v33 = vld [vmem:[%s3006_s2] ss:$0 sm:$0xff] }
 0x15e   :  { %v2024_v27 = vpop.f32.mrb[52].mxu0  ;;  %v2861_v39 = vadd.f32 %v2087_v36, %v1342_v7 }
 0x15f   :  { %v2088_v40 = vpop.f32.mrb[52].mxu1  ;;  %v2025_v42 = vpop.f32.mrb[53].mxu0 }
 0x160   :  { %v2026_v29 = vadd.f32 %v2025_v42, %v2024_v27  ;;  %v2089_v45 = vpop.f32.mrb[53].mxu1  ;;  %v2027_v47 = vpop.f32.mrb[54].mxu0 }
 0x161   :  { %v2090_v48 = vadd.f32 %v2089_v45, %v2088_v40  ;;  %v2091_v49 = vpop.f32.mrb[54].mxu1  ;;  %v2028_v50 = vpop.f32.mrb[55].mxu0 }
 0x162   :  { %v1347_v52 = vadd.f32 %v2026_v29, %v2823_v35  ;;  %v2029_v19 = vadd.f32 %v2028_v50, %v2027_v47  ;;  %v2092_v54 = vpop.f32.mrb[55].mxu1  ;;  %v1655_v50 = vld [vmem:[%s3007_s3 + $0x10] sm:$0xff] }
 0x163   :  { %v2093_v56 = vadd.f32 %v2092_v54, %v2091_v49 }
 0x164   :  { %v1350_v58 = vadd.f32 %v2029_v19, %v2825_v37  ;;  %v1444_v21 = vadd.f32 %v2090_v48, %v1347_v52 }
 0x166   :  { %v2030_v41 = vpop.f32.mrb[56].mxu0  ;;  %v1447_v59 = vadd.f32 %v2093_v56, %v1350_v58 }
 0x167   :  { %v2094_v60 = vpop.f32.mrb[56].mxu1  ;;  %v2031_v61 = vpop.f32.mrb[57].mxu0 }
 0x168   :  { %v2032_v43 = vadd.f32 %v2031_v61, %v2030_v41  ;;  %v2095_v63 = vpop.f32.mrb[57].mxu1  ;;  %v2033_v1 = vpop.f32.mrb[58].mxu0  ;;  %v1656_v61 = vld [vmem:[%s3007_s3 + $0x18] sm:$0xff] }
 0x169   :  { %v2096_v2 = vadd.f32 %v2095_v63, %v2094_v60  ;;  %v2097_v4 = vpop.f32.mrb[58].mxu1  ;;  %v2034_v8 = vpop.f32.mrb[59].mxu0 }
 0x16a   :  { %v1355_v9 = vadd.f32 %v2032_v43, %v2827_v51  ;;  %v2035_v10 = vadd.f32 %v2034_v8, %v2033_v1  ;;  %v2098_v35 = vpop.f32.mrb[59].mxu1  ;;  %v1654_v8 = vld [vmem:[%s3007_s3 + $0x8] sm:$0xff] }
 0x16b   :  { %v2099_v11 = vadd.f32 %v2098_v35, %v2097_v4 }
 0x16c   :  { %v1358_v12 = vadd.f32 %v2035_v10, %v2829_v53  ;;  %v2867_v55 = vadd.f32 %v2096_v2, %v1355_v9 }
 0x16e   :  { %v2036_v37 = vpop.f32.mrb[60].mxu0  ;;  %v2869_v13 = vadd.f32 %v2099_v11, %v1358_v12 }
 0x16f   :  { %v2100_v14 = vpop.f32.mrb[60].mxu1  ;;  %v2037_v15 = vpop.f32.mrb[61].mxu0 }
 0x170   :  { %v2038_v57 = vadd.f32 %v2037_v15, %v2036_v37  ;;  %v2101_v17 = vpop.f32.mrb[61].mxu1  ;;  %v2039_v20 = vpop.f32.mrb[62].mxu0  ;;  %v1662_v37 = vld [vmem:[%s3007_s3 + $0x48] sm:$0xff] }
 0x171   :  { %v2102_v22 = vadd.f32 %v2101_v17, %v2100_v14  ;;  %v2103_v23 = vpop.f32.mrb[62].mxu1  ;;  %v2040_v25 = vpop.f32.mrb[63].mxu0 }
 0x172   :  { %v1363_v51 = vadd.f32 %v2038_v57, %v2831_v3  ;;  %v2041_v28 = vadd.f32 %v2040_v25, %v2039_v20  ;;  %v2104_v30 = vpop.f32.mrb[63].mxu1 }
 0x173   :  { %v2105_v31 = vadd.f32 %v2104_v30, %v2103_v23 }
 0x174   :  { %v1366_v53 = vadd.f32 %v2041_v28, %v2833_v6  ;;  %v1460_v32 = vadd.f32 %v2102_v22, %v1363_v51 }
 0x176   :  { %v2140_v5 = vpop.f32.mrb[64].mxu0  ;;  %v2878_v34 = vadd.f32 %v2105_v31, %v1366_v53 }
 0x177   :  { %v1509_v36 = vadd.f32 %v2140_v5, %v2843_v44  ;;  %v2148_v7 = vpop.f32.mrb[64].mxu1  ;;  %v1500_v27 = vpop.f32.mrb[65].mxu0 }
 0x178   :  { %v1541_v40 = vadd.f32 %v2148_v7, %v1444_v21  ;;  %v1501_v3 = vadd.f32 %v1500_v27, %v2837_v24  ;;  %v1532_v42 = vpop.f32.mrb[65].mxu1  ;;  %v2141_v29 = vpop.f32.mrb[66].mxu0 }
 0x179   :  { %v1623_v6 = vadd.f32 %v2876_v33, %v1509_v36  ;;  %v1533_v45 = vadd.f32 %v1532_v42, %v1436_v38  ;;  %v1512_v47 = vadd.f32 %v2141_v29, %v2845_v46  ;;  %v2149_v48 = vpop.f32.mrb[66].mxu1  ;;  %v1503_v49 = vpop.f32.mrb[67].mxu0  ;;  %v1663_v38 = vld [vmem:[%s3007_s3 + $0x50] sm:$0xff]  ;;  %v1653_v46 = vld [vmem:[%s3007_s3] sm:$0xff] }
 0x17a   :  { %v1631_v44 = vadd.f32 %v2876_v33, %v1541_v40  ;;  %v1621_v52 = vadd.f32 %v2876_v33, %v1501_v3  ;;  %v1544_v19 = vadd.f32 %v2149_v48, %v1447_v59  ;;  %v1504_v24 = vadd.f32 %v1503_v49, %v2839_v26  ;;  %v1535_v54 = vpop.f32.mrb[67].mxu1  ;;  %v1661_v26 = vld [vmem:[%s3007_s3 + $0x40] sm:$0xff] }
 0x17b   :  { %v1639_v56 = vmax.f32 %v1623_v6, 0.0  ;;  %v1629_v58 = vadd.f32 %v2876_v33, %v1533_v45  ;;  %v1624_v21 = vadd.f32 %v2876_v33, %v1512_v47  ;;  %v1536_v41 = vadd.f32 %v1535_v54, %v2861_v39  ;;  %v1664_v39 = vld [vmem:[%s3007_s3 + $0x58] sm:$0xff]  ;;  %v1667_v6 = vld [vmem:[%s3007_s3 + $0x70] sm:$0xff]  ;;  %v1657_v45 = vld [vmem:[%s3007_s3 + $0x20] sm:$0xff] }
 0x17c   :  { %v1647_v60 = vmax.f32 %v1631_v44, 0.0  ;;  %v1637_v59 = vmax.f32 %v1621_v52, 0.0  ;;  %v1632_v43 = vadd.f32 %v2876_v33, %v1544_v19  ;;  %v1622_v63 = vadd.f32 %v2876_v33, %v1504_v24  ;;  %v1660_v44 = vld [vmem:[%s3007_s3 + $0x38] sm:$0xff] }
 0x17d   :  { %v1671_v1 = vadd.f32 %v1655_v50, %v1639_v56  ;;  %v1645_v2 = vmax.f32 %v1629_v58, 0.0  ;;  %v1640_v4 = vmax.f32 %v1624_v21, 0.0  ;;  %v1630_v9 = vadd.f32 %v2876_v33, %v1536_v41  ;;  %v1665_v50 = vld [vmem:[%s3007_s3 + $0x60] sm:$0xff] }
 0x17e   :  { %v1679_v10 = vadd.f32 %v1663_v38, %v1647_v60  ;;  %v1669_v35 = vadd.f32 %v1653_v46, %v1637_v59  ;;  %v1648_v11 = vmax.f32 %v1632_v43, 0.0  ;;  %v1638_v12 = vmax.f32 %v1622_v63, 0.0  ;;  %v2144_v14 = vpop.f32.mrb[68].mxu0  ;;  %v1658_v38 = vld [vmem:[%s3007_s3 + $0x28] sm:$0xff] }
 0x17f   :  { %1687 = vst [vmem:[%s3008_s4 + $0x10] sm:$0xff] %v1671_v1  ;;  %v1677_v15 = vadd.f32 %v1661_v26, %v1645_v2  ;;  %v1672_v57 = vadd.f32 %v1656_v61, %v1640_v4  ;;  %v1646_v17 = vmax.f32 %v1630_v9, 0.0  ;;  %v1525_v20 = vadd.f32 %v2144_v14, %v2855_v16  ;;  %v2152_v22 = vpop.f32.mrb[68].mxu1  ;;  %v1516_v23 = vpop.f32.mrb[69].mxu0  ;;  %v1666_v59 = vld [vmem:[%s3007_s3 + $0x68] sm:$0xff] }
 0x180   :  { %1695 = vst [vmem:[%s3008_s4 + $0x50] sm:$0xff] %v1679_v10  ;;  %1685 = vst [vmem:[%s3008_s4] sm:$0xff] %v1669_v35  ;;  %v1680_v25 = vadd.f32 %v1664_v39, %v1648_v11  ;;  %v1670_v51 = vadd.f32 %v1654_v8, %v1638_v12  ;;  %v1557_v28 = vadd.f32 %v2152_v22, %v1460_v32  ;;  %v1548_v31 = vpop.f32.mrb[69].mxu1  ;;  %v2145_v53 = vpop.f32.mrb[70].mxu0 }
 0x181   :  { %v1517_v30 = vadd.f32 %v1516_v23, %v2849_v62  ;;  %1693 = vst [vmem:[%s3008_s4 + $0x40] sm:$0xff] %v1677_v15  ;;  %1688 = vst [vmem:[%s3008_s4 + $0x18] sm:$0xff] %v1672_v57  ;;  %v1678_v16 = vadd.f32 %v1662_v37, %v1646_v17  ;;  %v1627_v5 = vadd.f32 %v2876_v33, %v1525_v20  ;;  %v2153_v32 = vpop.f32.mrb[70].mxu1  ;;  %v1519_v27 = vpop.f32.mrb[71].mxu0  ;;  %v1659_v62 = vld [vmem:[%s3007_s3 + $0x30] sm:$0xff] }
 0x182   :  { %v1549_v36 = vadd.f32 %v1548_v31, %v2867_v55  ;;  %v1528_v7 = vadd.f32 %v2145_v53, %v2857_v18  ;;  %1696 = vst [vmem:[%s3008_s4 + $0x58] sm:$0xff] %v1680_v25  ;;  %1686 = vst [vmem:[%s3008_s4 + $0x8] sm:$0xff] %v1670_v51  ;;  %v1635_v40 = vadd.f32 %v2876_v33, %v1557_v28  ;;  %v1551_v42 = vpop.f32.mrb[71].mxu1 }
 0x183   :  { %v1625_v55 = vadd.f32 %v2876_v33, %v1517_v30  ;;  %v1560_v18 = vadd.f32 %v2153_v32, %v2878_v34  ;;  %v1520_v3 = vadd.f32 %v1519_v27, %v2851_v0  ;;  %1694 = vst [vmem:[%s3008_s4 + $0x48] sm:$0xff] %v1678_v16  ;;  %v1643_v29 = vmax.f32 %v1627_v5, 0.0 }
 0x184   :  { %v1633_v47 = vadd.f32 %v2876_v33, %v1549_v36  ;;  %v1628_v34 = vadd.f32 %v2876_v33, %v1528_v7  ;;  %v1552_v0 = vadd.f32 %v1551_v42, %v2869_v13  ;;  %v1651_v48 = vmax.f32 %v1635_v40, 0.0  ;;  %v1668_v13 = vld [vmem:[%s3007_s3 + $0x78] sm:$0xff] }
 0x185   :  { %v1641_v49 = vmax.f32 %v1625_v55, 0.0  ;;  %v1636_v52 = vadd.f32 %v2876_v33, %v1560_v18  ;;  %v1626_v19 = vadd.f32 %v2876_v33, %v1520_v3  ;;  %v1675_v24 = vadd.f32 %v1659_v62, %v1643_v29 }
 0x186   :  { %v1649_v54 = vmax.f32 %v1633_v47, 0.0  ;;  %v1644_v56 = vmax.f32 %v1628_v34, 0.0  ;;  %v1634_v46 = vadd.f32 %v2876_v33, %v1552_v0  ;;  %v1683_v58 = vadd.f32 %v1667_v6, %v1651_v48 }
 0x187   :  { %v1673_v21 = vadd.f32 %v1657_v45, %v1641_v49  ;;  %v1652_v41 = vmax.f32 %v1636_v52, 0.0  ;;  %v1642_v60 = vmax.f32 %v1626_v19, 0.0  ;;  %1691 = vst [vmem:[%s3008_s4 + $0x30] sm:$0xff] %v1675_v24 }
 0x188   :  { %v1681_v26 = vadd.f32 %v1665_v50, %v1649_v54  ;;  %v1676_v61 = vadd.f32 %v1660_v44, %v1644_v56  ;;  %v1650_v43 = vmax.f32 %v1634_v46, 0.0  ;;  %1699 = vst [vmem:[%s3008_s4 + $0x70] sm:$0xff] %v1683_v58 }
 0x189   :  { %1689 = vst [vmem:[%s3008_s4 + $0x20] sm:$0xff] %v1673_v21  ;;  %v1684_v33 = vadd.f32 %v1668_v13, %v1652_v41  ;;  %v1674_v63 = vadd.f32 %v1658_v38, %v1642_v60 }
 0x18a   :  { %1697 = vst [vmem:[%s3008_s4 + $0x60] sm:$0xff] %v1681_v26  ;;  %1692 = vst [vmem:[%s3008_s4 + $0x38] sm:$0xff] %v1676_v61  ;;  %v1682_v1 = vadd.f32 %v1666_v59, %v1650_v43 }
 0x18b   :  { %1700 = vst [vmem:[%s3008_s4 + $0x78] sm:$0xff] %v1684_v33  ;;  %1690 = vst [vmem:[%s3008_s4 + $0x28] sm:$0xff] %v1674_v63 }
 0x18c   :  { %1698 = vst [vmem:[%s3008_s4 + $0x68] sm:$0xff] %v1682_v1 }

// kernel: _net_forward_padded.19
= control target key start
LH: loop header
LB: loop body
LE: loop exit
PB: predicated region body
PF: predicated region fallthrough
CT: control target
= control target key end

     0   :  { %v229_v1 = vmov 0.0   ;;  %vm230_vm0 = vmmov 0   ;;  %s294_s0 = inlined_call_operand.vmem [shape: bf16[8,128], index: 0, kind: input, shape index: {}]   ;;  %s295_s1 = inlined_call_operand.vmem [shape: bf16[128,128], index: 1, kind: input, shape index: {}]   ;;  %s296_s2 = inlined_call_operand.vmem [shape: f32[1,128], index: 2, kind: input, shape index: {}]   ;;  %s297_s3 = inlined_call_operand.hbm [shape: f32[8,128], index: 3, kind: output, shape index: {}]  }
   0x1   :  { %v197_v0 = vld [vmem:[%s295_s1] sm:$0xff]   ;;  %174 = vmatprep.subr.bf16.mxu0 %v229_v1  ;;  %v198_v2 = vld [vmem:[%s295_s1 + $0x8] sm:$0xff]   ;;  %190 = vmatprep.mubr.msk.bf16.mxu0 %vm230_vm0, %v229_v1  ;;  %v199_v3 = vld [vmem:[%s295_s1 + $0x10] sm:$0xff]  }
   0x2   :  { %175 = vmatpush3.bf16.msra.mxu0 %v197_v0 }
   0x3   :  { %176 = vmatprep.subr.bf16.mxu0 %v229_v1 }
   0x6   :  { %177 = vmatpush3.bf16.msra.mxu0 %v198_v2 }
   0x7   :  { %178 = vmatprep.subr.bf16.mxu0 %v229_v1 }
   0x8   :  { %8 = vsyncpa [#allocation4], 0  ;;  %v200_v4 = vld [vmem:[%s295_s1 + $0x18] sm:$0xff]   ;;  %v201_v5 = vld [vmem:[%s295_s1 + $0x20] sm:$0xff]   ;;  %s231_s5 = smov [#allocation3]  }
   0x9   :  { %v202_v6 = vld [vmem:[%s295_s1 + $0x28] sm:$0xff]   ;;  %v203_v7 = vld [vmem:[%s295_s1 + $0x30] sm:$0xff]   ;;  %v204_v8 = vld [vmem:[%s295_s1 + $0x38] sm:$0xff]   ;;  %s148_s6 = sshll.u32 %s231_s5, 4  ;;  %s149_s6 = int_to_ptr.vmem [resolvable:$true] %s148_s6 }
   0xa   :  { %179 = vmatpush3.bf16.msra.mxu0 %v199_v3  ;;  %v22_v9 = vld [vmem:[%s294_s0] sm:$0xf]  ;;  %s205_s1 = scalar_lea.vmem %s149_s6, 128  ;;  %p210_p1 = scmp.lt.s32.totalorder %s149_s6, %s149_s6 }
   0xb   :  { %180 = vmatprep.subr.bf16.mxu0 %v229_v1  ;;  %v164_v10 = vld [vmem:[%s296_s2] ss:$0 sm:$0xff]  ;;  %p206_p0 = scmp.ne.s32.totalorder %s149_s6, %s205_s1  ;;  %p211_p2 = scmp.lt.s32.totalorder %s205_s1, %s205_s1 }
   0xd   :  { %p212_p3 = por %p211_p2, %p210_p1 }
   0xe   :  { %181 = vmatpush3.bf16.msra.mxu0 %v200_v4 }
   0xf   :  { %182 = vmatprep.subr.bf16.mxu0 %v229_v1  ;;  %p213_p4 = pnand %p212_p3, %p206_p0 }
  0x12   :  { %183 = vmatpush3.bf16.msra.mxu0 %v201_v5 }
  0x13   :  { %184 = vmatprep.subr.bf16.mxu0 %v229_v1 }
  0x16   :  { %185 = vmatpush3.bf16.msra.mxu0 %v202_v6 }
  0x17   :  { %186 = vmatprep.subr.bf16.mxu0 %v229_v1 }
  0x1a   :  { %187 = vmatpush3.bf16.msra.mxu0 %v203_v7 }
  0x1b   :  { %188 = vmatprep.subr.bf16.mxu0 %v229_v1 }
  0x1e   :  { %189 = vmatpush3.bf16.msra.mxu0 %v204_v8 }
  0x21   :  { %191 = vmatmul.mubr.bf16.vlgmr.msra.gmra.mrb[0].mxu0 %v22_v9 }
  0xf4   :  { %v121_v11 = vpop.f32.mrb[0].mxu0 }
  0xf5   :  { %v140_v12 = vadd.f32 %v164_v10, %v121_v11  ;;  %v192_v13 = vpop.f32.mrb[1].mxu0 }
  0xf6   :  { %v124_v14 = vpop.f32.mrb[2].mxu0 }
  0xf7   :  { %141 = vst [vmem:[#allocation3] sm:$0xff] %v140_v12  ;;  %v193_v15 = vpop.f32.mrb[3].mxu0 }
  0xf8   :  { %216 = shalt.err (!%p213_p4)
}
  0xf9   :  { %s217_s2 = scalar_lea.hbm %s297_s3, 128 }
  0xfa   :  { %p218_p5 = scmp.ne.s32.totalorder %s297_s3, %s217_s2  ;;  %p221_p6 = scmp.lt.u32.totalorder %s217_s2, %s297_s3 }
  0xfc   :  { %p223_p7 = pnand %p221_p6, %p218_p5 }
  0xfe   :  { %226 = shalt.err (!%p223_p7)
}
  0xff   :  { %151 = dma.vmem_to_hbm [thread:$0]  %s149_s6, 128, %s297_s3, [#allocation4]  }
 0x100   :  { %227 = dma.done.wait [#allocation4], 128  }
 0x101   :  { %228 = vsyncadd [#allocation4], 4294967168 }
 0x102   :  { %155 = vsyncpa [#allocation4], 1 }

// kernel: _net_forward_padded.18
= control target key start
LH: loop header
LB: loop body
LE: loop exit
PB: predicated region body
PF: predicated region fallthrough
CT: control target
= control target key end

     0   :  { %s1114_s0 = inlined_call_operand.vmem [shape: s32[8,64], index: 0, kind: input, shape index: {}]   ;;  %s1115_s1 = inlined_call_operand.vmem [shape: f32[128,128], index: 1, kind: input, shape index: {}]   ;;  %s1116_s2 = inlined_call_operand.vmem [shape: f32[8,1,64], index: 2, kind: input, shape index: {}]   ;;  %s1117_s3 = inlined_call_operand.vmem [shape: f32[8,1,128], index: 3, kind: output, shape index: {}]  }
   0x1   :  { %s8_s14 = sshll.u32 %s1114_s0, 4  ;;  %s9_s14 = int_to_ptr.vmem [resolvable:$true] %s8_s14 }
   0x2   :  { %s968_s15 = scalar_lea.vmem %s9_s14, 128  ;;  %p973_p1 = scmp.lt.s32.totalorder %s9_s14, %s9_s14 }
   0x3   :  { %p969_p0 = scmp.ne.s32.totalorder %s9_s14, %s968_s15  ;;  %p974_p2 = scmp.lt.s32.totalorder %s968_s15, %s968_s15 }
   0x5   :  { %p975_p3 = por %p974_p2, %p973_p1 }
   0x7   :  { %p976_p4 = pnand %p975_p3, %p969_p0 }
   0x9   :  { %979 = shalt.err (!%p976_p4)  }
   0xa   :  { %s1000_s16 = smov [#allocation5]  }
   0xb   :  { %11 = dma.vmem_to_smem %s9_s14, 128, %s1000_s16, [#allocation4] }
   0xc   :  { %988 = dma.done.wait [#allocation4], 128 }
   0xd   :  { %989 = vsyncadd [#allocation4], 4294967168 }
   0xe   :  { %13 = sfence }
   0xf   :  { %s1027_s17 = smov 0  }
  0x10 LB: > { %s1033_s0 = sadd.s32 4294967295, %s994_s17   ;;  %p888_p5 = scmp.ge.s32.totalorder %s994_s17, 1  ;;  %s994_s17 = sphi %s1027_s17, %s19_s17  }
  0x11   : > { %p93_p6 = scmp.lt.s32.totalorder %s994_s17, 9 }
  0x13   : > { %p94_p7 = pnand %p888_p5, %p93_p6 }
  0x14   : > { %p109_p8 = scmp.lt.s32.totalorder (!%p94_p7), %s1033_s0, 7  ;;  %s1039_s18 = sshll.u32 (!%p94_p7), %s1033_s0, 7 }
  0x15   : > { %97 = sbr.rel (%p94_p7) target bundleno = 364 (0x16c), region = 24  ;;  %s116_s19 = sld [smem:[#allocation5 + %s1039_s18]] (!%p94_p7) }
  0x1b   : > { %s117_s29 = scalar_lea.vmem (!%p94_p7), %s1115_s1, %s116_s19 }
  0x1c   : > { %s1043_s20 = scalar_select %p109_p8, %s1033_s0, 7  ;;  %v135_v0 = vld [vmem:[%s117_s29] sm:$0x1] }
  0x1d   : > { %136 = vst [vmem:[#allocation2] sm:$0x1] %v135_v0 }
  0x1e   : > { %s111_s23 = scalar_lea.vmem %s1116_s2, %s1043_s20  ;;  %s114_s26 = scalar_lea.vmem %s1117_s3, %s1043_s20 }
  0x1f   : > { %161 = vsyncadd [#allocation3], 16  ;;  %s162_s30 = sadd.s32 1, %s1039_s18 }
  0x20   : > { %s163_s4 = sld [smem:[#allocation5 + %s162_s30]] }
  0x26   : > { %s164_s7 = scalar_lea.vmem %s1115_s1, %s163_s4 }
  0x27   : > { %v184_v1 = vld [vmem:[%s164_s7] sm:$0x1] }
  0x28   : > { %185 = vst [vmem:[#allocation2 + $0x1] sm:$0x1] %v184_v1 }
  0x29   : > { %210 = vsyncadd [#allocation3 + $0x1], 16  ;;  %s211_s8 = sadd.s32 2, %s1039_s18 }
  0x2a   : > { %s212_s9 = sld [smem:[#allocation5 + %s211_s8]] }
  0x30   : > { %s213_s12 = scalar_lea.vmem %s1115_s1, %s212_s9 }
  0x31   : > { %v233_v2 = vld [vmem:[%s213_s12] sm:$0x1] }
  0x32   : > { %234 = vst [vmem:[#allocation2 + $0x2] sm:$0x1] %v233_v2 }
  0x33   : > { %259 = vsyncadd [#allocation3 + $0x2], 16  ;;  %s260_s13 = sadd.s32 3, %s1039_s18 }
  0x34   : > { %s261_s14 = sld [smem:[#allocation5 + %s260_s13]] }
  0x3a   : > { %s262_s19 = scalar_lea.vmem %s1115_s1, %s261_s14 }
  0x3b   : > { %v282_v3 = vld [vmem:[%s262_s19] sm:$0x1] }
  0x3c   : > { %283 = vst [vmem:[#allocation2 + $0x3] sm:$0x1] %v282_v3 }
  0x3d   : > { %308 = vsyncadd [#allocation3 + $0x3], 16  ;;  %s309_s21 = sadd.s32 4, %s1039_s18 }
  0x3e   : > { %s310_s22 = sld [smem:[#allocation5 + %s309_s21]] }
  0x44   : > { %s311_s27 = scalar_lea.vmem %s1115_s1, %s310_s22 }
  0x45   : > { %v331_v4 = vld [vmem:[%s311_s27] sm:$0x1] }
  0x46   : > { %332 = vst [vmem:[#allocation2 + $0x4] sm:$0x1] %v331_v4 }
  0x47   : > { %357 = vsyncadd [#allocation3 + $0x4], 16  ;;  %s358_s28 = sadd.s32 5, %s1039_s18 }
  0x48   : > { %s359_s29 = sld [smem:[#allocation5 + %s358_s28]] }
  0x4e   : > { %s360_s5 = scalar_lea.vmem %s1115_s1, %s359_s29 }
  0x4f   : > { %v380_v5 = vld [vmem:[%s360_s5] sm:$0x1] }
  0x50   : > { %381 = vst [vmem:[#allocation2 + $0x5] sm:$0x1] %v380_v5 }
  0x51   : > { %406 = vsyncadd [#allocation3 + $0x5], 16  ;;  %s407_s6 = sadd.s32 6, %s1039_s18 }
  0x52   : > { %s408_s7 = sld [smem:[#allocation5 + %s407_s6]] }
  0x58   : > { %s409_s10 = scalar_lea.vmem %s1115_s1, %s408_s7 }
  0x59   : > { %v429_v6 = vld [vmem:[%s409_s10] sm:$0x1] }
  0x5a   : > { %430 = vst [vmem:[#allocation2 + $0x6] sm:$0x1] %v429_v6 }
  0x5b   : > { %455 = vsyncadd [#allocation3 + $0x6], 16  ;;  %s456_s11 = sadd.s32 7, %s1039_s18 }
  0x5c   : > { %s457_s12 = sld [smem:[#allocation5 + %s456_s11]] }
  0x62   : > { %s458_s15 = scalar_lea.vmem %s1115_s1, %s457_s12 }
  0x63   : > { %v478_v7 = vld [vmem:[%s458_s15] sm:$0x1] }
  0x64   : > { %479 = vst [vmem:[#allocation2 + $0x7] sm:$0x1] %v478_v7 }
  0x65   : > { %504 = vsyncadd [#allocation3 + $0x7], 16  ;;  %s1084_s16 = smov 0  }
  0x66 LB: >> { %p511_p9 = scmp.lt.s32.totalorder %s998_s16, 0  ;;  %s512_s18 = ssub.s32 0, %s998_s16  ;;  %s998_s16 = sphi %s1084_s16, %s510_s16  }
  0x67   : >> { %s890_s19 = smin.u32 %s998_s16, %s512_s18 }
  0x68   : >> { %s514_s21 = sand.u32 7, %s890_s19  }
  0x69   : >> { %s515_s22 = ssub.s32 0, %s514_s21 }
  0x6a   : >> { %s1119_s22 = smov (!%p511_p9, %s515_s22), %s514_s21 }
  0x6b   : >> { %p892_p10 = scmp.lt.s32.totalorder %s1119_s22, 0  ;;  %s521_s24 = sadd.s32 8, %s1119_s22 }
  0x6d   : >> { %s1121_s24 = smov (!%p892_p10, %s521_s24), %s1119_s22 }
  0x6e   : >> { %s523_s25 = scalar_lea.sflag [#allocation3], %s1121_s24 }
  0x6f   : >> { %990 = dma.done.wait %s523_s25, 16 }
  0x70   : >> { %991 = vsyncadd %s523_s25, 4294967280  ;;  %s527_s27 = sadd.s32 8, %s998_s16 }
  0x71   : >> { %p893_p11 = scmp.ge.s32.totalorder %s527_s27, 64 }
  0x72   : >> { %s532_s28 = sshra.s32 (!%p893_p11), %s527_s27, 7  ;;  %s537_s29 = sand.u32 (!%p893_p11), 127, %s527_s27 }
  0x73   : >> { %531 = sbr.rel (%p893_p11) target bundleno = 128 (0x80), region = 275  ;;  %s534_s30 = sadd.s32 (!%p893_p11), %s1033_s0, %s532_s28 }
  0x74   : >> { %s894_s4 = sshll.u32 (!%p893_p11), %s534_s30, 7  ;;  %s780_s10 = scalar_lea.vmem (!%p893_p11), [#allocation2], %s998_s16 }
  0x75   : >> { %s538_s5 = sadd.s32 (!%p893_p11), %s894_s4, %s537_s29 }
  0x76   : >> { %s539_s6 = sld [smem:[#allocation5 + %s538_s5]] (!%p893_p11) }
  0x7c   : >> { %s540_s9 = scalar_lea.vmem %s1115_s1, %s539_s6 }
  0x7d   : >> { %v559_v8 = vld [vmem:[%s540_s9] sm:$0x1] }
  0x7e   : >> { %896 = vst [vmem:[%s780_s10 + $0x8] sm:$0x1] %v559_v8 }
  0x7f   : >> { %585 = vsyncadd %s523_s25, 16 }
  0x80 PF: >> { %s510_s16 = sadd.s32 1, %s998_s16  }
  0x81   : >> { %p507_p12 = scmp.ge.s32.totalorder %s510_s16, 64  }
  0x82   : > { %v1001_v12 = vmov (%p507_p12), 0.0|0.0   ;;  %vm1002_vm0 = vmmov (%p507_p12), 0   ;;  %v1003_v15 = vmov (%p507_p12), 0.0   ;;  %v586_v23 = vld [vmem:[%s111_s23] sm:$0x1] (%p507_p12)  ;;  %vm595_vm1 = vcmask (%p507_p12), 523264  }
  0x83   : > { %509 = sbr.rel (!%p507_p12) target bundleno = 102 (0x66), region = 457  ;;  %936 = vmatprep.subr.bf16.mxu0 (%p507_p12), %v1001_v12  ;;  %933 = vmatprep.mubr.msk.f32.mxu0 (%p507_p12), %vm1002_vm0, %v1003_v15 }
  0x85   : > { %v587_v9 = vld [vmem:[#allocation2] sm:$0xff] (%p507_p12)  ;;  %v588_v10 = vld [vmem:[#allocation2 + $0x8] sm:$0xff] (%p507_p12)  ;;  %v589_v11 = vld [vmem:[#allocation2 + $0x10] sm:$0xff] (%p507_p12) }
  0x86   : > { %v937_v13 = vpack.c.bf16 (%p507_p12), %v588_v10, %v587_v9  ;;  %v590_v14 = vld [vmem:[#allocation2 + $0x18] sm:$0xff] (%p507_p12)  ;;  %v591_v17 = vld [vmem:[#allocation2 + $0x20] sm:$0xff] (%p507_p12)  ;;  %v592_v18 = vld [vmem:[#allocation2 + $0x28] sm:$0xff] (%p507_p12) }
  0x87   : > { %v940_v16 = vpack.c.bf16 (%p507_p12), %v590_v14, %v589_v11  ;;  %v943_v19 = vpack.c.bf16 (%p507_p12), %v592_v18, %v591_v17  ;;  %v593_v20 = vld [vmem:[#allocation2 + $0x30] sm:$0xff] (%p507_p12)  ;;  %v594_v21 = vld [vmem:[#allocation2 + $0x38] sm:$0xff] (%p507_p12) }
  0x88   : > { %938 = vmatpush3.bf16.msra.mxu0 (%p507_p12), %v937_v13  ;;  %v946_v22 = vpack.c.bf16 (%p507_p12), %v594_v21, %v593_v20 }
  0x89   : > { %939 = vmatprep.subr.bf16.mxu0 (%p507_p12), %v1001_v12 }
  0x8c   : > { %941 = vmatpush3.bf16.msra.mxu0 %v940_v16 }
  0x8d   : > { %942 = vmatprep.subr.bf16.mxu0 %v1001_v12 }
  0x90   : > { %944 = vmatpush3.bf16.msra.mxu0 %v943_v19 }
  0x91   : > { %945 = vmatprep.subr.bf16.mxu0 %v1001_v12 }
  0x94   : > { %947 = vmatpush3.bf16.msra.mxu0 %v946_v22 }
  0x97   : > { %934 = vmatmul.mubr.msk.f32.vlgmr.msra.gmra.mrb[0].mxu0 %vm595_vm1, %v586_v23 }
 0x16a   : > { %v665_v24 = vpop.f32.mrb[0].mxu0 }
 0x16b   : > { %669 = vst [vmem:[%s114_s26] sm:$0x1] %v665_v24  ;;  %v935_v25 = vpop.f32.mrb[1].mxu0 }
 0x16c PF: > { %s19_s17 = sadd.s32 1, %s994_s17  }
 0x16d   : > { %p16_p13 = scmp.ge.s32.totalorder %s19_s17, 10  }
 0x16f   :  { %18 = sbr.rel (!%p16_p13) target bundleno = 16 (0x10), region = 468 }
 0x176   :  { %687 = vsyncmov [#allocation3] }
 0x179   :  { %s688_s14 = vpop.sfrf %687 }
 0x17a   :  { %p900_p0 = scmp.ne.s32.totalorder %s688_s14, 0 }
 0x17c   :  { %692 = shalt.err (%p900_p0)  }
 0x17d   :  { %694 = vsyncmov [#allocation3 + $0x1] }
 0x180   :  { %s695_s23 = vpop.sfrf %694 }
 0x181   :  { %p901_p1 = scmp.ne.s32.totalorder %s695_s23, 0 }
 0x183   :  { %699 = shalt.err (%p901_p1)  }
 0x184   :  { %701 = vsyncmov [#allocation3 + $0x2] }
 0x187   :  { %s702_s15 = vpop.sfrf %701 }
 0x188   :  { %p902_p2 = scmp.ne.s32.totalorder %s702_s15, 0 }
 0x18a   :  { %706 = shalt.err (%p902_p2)  }
 0x18b   :  { %708 = vsyncmov [#allocation3 + $0x3] }
 0x18e   :  { %s709_s20 = vpop.sfrf %708 }
 0x18f   :  { %p903_p3 = scmp.ne.s32.totalorder %s709_s20, 0 }
 0x191   :  { %713 = shalt.err (%p903_p3)  }
 0x192   :  { %715 = vsyncmov [#allocation3 + $0x4] }
 0x195   :  { %s716_s26 = vpop.sfrf %715 }
 0x196   :  { %p904_p4 = scmp.ne.s32.totalorder %s716_s26, 0 }
 0x198   :  { %720 = shalt.err (%p904_p4)  }
 0x199   :  { %722 = vsyncmov [#allocation3 + $0x5] }
 0x19c   :  { %s723_s1 = vpop.sfrf %722 }
 0x19d   :  { %p905_p5 = scmp.ne.s32.totalorder %s723_s1, 0 }
 0x19f   :  { %727 = shalt.err (%p905_p5)  }
 0x1a0   :  { %729 = vsyncmov [#allocation3 + $0x6] }
 0x1a3   :  { %s730_s2 = vpop.sfrf %729 }
 0x1a4   :  { %p906_p6 = scmp.ne.s32.totalorder %s730_s2, 0 }
 0x1a6   :  { %734 = shalt.err (%p906_p6)  }
 0x1a7   :  { %736 = vsyncmov [#allocation3 + $0x7] }
 0x1aa   :  { %s737_s3 = vpop.sfrf %736 }
 0x1ab   :  { %p907_p7 = scmp.ne.s32.totalorder %s737_s3, 0 }
 0x1ad   :  { %741 = shalt.err (%p907_p7)  }

</bundles_post_ra>
